<compile_context>
chip_gen: v7x
topology: tpu7x:2x2x1
jax: 0.10.0
libtpu: 0.0.40
codegen_flags: <defaults>
</compile_context>

<pallas_src>
import math

import numpy as np
import jax
import jax.numpy as jnp
from jax import lax
from jax.experimental import pallas as pl
from jax.experimental.pallas import tpu as pltpu

D_MODEL = 32
N_HEADS = 4
HEAD_DIM = D_MODEL // N_HEADS
DIM_FF = 64
N_LEVELS = 4
NEIGH = 3                                    # 3x3 neighborhood per level
K_PER_QUERY = N_LEVELS * NEIGH * NEIGH       # 36 real keys per query
K_PAD = 40                                   # padded to a sublane multiple; 4 dummies masked
SLAB_W = D_MODEL + 2 * HEAD_DIM              # 48: features | cos8 | signed sin8
KVP_W = 5 * D_MODEL                          # 160: k | rot(k) | kcos32 | ksin32 | v
LN_EPS = 1e-5
ROPE_SPATIAL_THETA = 100.0
ROPE_LEVEL_THETA = 10.0
MASK_NEG = -1e30

# Query tile per grid step.  256 keeps the f32 intermediates (~25-35 MB) safe on
# v7x's 64 MiB physical VMEM; v6e (128 MiB) can push 512, v5e stay at 256.
TQ_DEFAULT = 256
VMEM_LIMIT_BYTES = 96 * 1024 * 1024


def _round_up(a, m):
    return ((a + m - 1) // m) * m


# ----------------------------- kernel helpers -----------------------------
def _layer_norm(v, w, b):
    mu = jnp.mean(v, axis=-1, keepdims=True)
    var = jnp.mean((v - mu) ** 2, axis=-1, keepdims=True)
    return (v - mu) * lax.rsqrt(var + LN_EPS) * w + b


def _gelu(u):
    # TODO(synk): tanh approximation; PyTorch default GELU is erf-based.
    c = math.sqrt(2.0 / math.pi)
    return 0.5 * u * (1.0 + jnp.tanh(c * (u + 0.044715 * u * u * u)))


# ------------------------------ Pallas kernel ------------------------------
def seg_map_layer_kernel(
    x_ref, slab_ref, qcs_ref,
    ln_ref, wq_ref, bq_ref, wkv_ref, bkv_ref, wo_ref, bo_ref,
    w1_ref, b1_ref, w2_ref, b2_ref, pool_ref,
    out_ref,
):
    tq = x_ref.shape[0]
    rows = slab_ref.shape[0]                                  # tq * K_PAD
    x = x_ref[...]                                            # [TQ, 32] f32

    # ---- SparseNeighborhoodAttentionBlock (pre-norm, residual) ----
    xn = _layer_norm(x, ln_ref[0:1, :], ln_ref[1:2, :])

    # Fused q / rot(q) projection (rotate-half permutation and 1/sqrt(head_dim)
    # folded into the weights on the host), then RoPE with the 32-wide tables.
    qq = jnp.dot(xn.astype(jnp.bfloat16), wq_ref[...],
                 preferred_element_type=jnp.float32) + bq_ref[...]        # [TQ, 64]
    qt = qq * qcs_ref[...].astype(jnp.float32)
    q_rope = qt[:, :D_MODEL] + qt[:, D_MODEL:]                            # [TQ, 32]

    # Fused k / rot(k) / v projection AND per-head replication of the shared
    # key RoPE tables: one bf16 MXU matmul on the padded key/value stream.
    # kvp columns: [ k | rot(k) | kcos32 | ksin32 | v ]
    kvp = jnp.dot(slab_ref[...], wkv_ref[...],
                  preferred_element_type=jnp.float32) + bkv_ref[...]      # [rows, 160]
    kt = kvp[:, :2 * D_MODEL] * kvp[:, 2 * D_MODEL:4 * D_MODEL]           # [rows, 64]
    k_rope = kt[:, :D_MODEL] + kt[:, D_MODEL:]                            # [rows, 32]

    # Scores for all heads at once: q*k products pooled per head with a
    # constant block-ones [32,32] matrix so each head's score is already
    # replicated over its 8 lanes (softmax output doubles as value weights).
    k3 = k_rope.reshape(tq, K_PAD, D_MODEL)            # free: K_PAD % 8 == 0
    prod = q_rope[:, None, :] * k3                                         # [TQ,40,32]
    s = jnp.dot(prod.reshape(rows, D_MODEL), pool_ref[...],
                preferred_element_type=jnp.float32).reshape(tq, K_PAD, D_MODEL)

    # Mask the 4 padded dummy keys, softmax over the neighborhood keys.
    key_idx = lax.broadcasted_iota(jnp.int32, (1, K_PAD, D_MODEL), 1)
    s = s + jnp.where(key_idx < K_PER_QUERY, 0.0, MASK_NEG)
    m = jnp.max(s, axis=1, keepdims=True)
    p = jnp.exp(s - m)
    l = jnp.sum(p, axis=1, keepdims=True)
    # approx reciprocal (EUP slot); ~1e-4 rel error -- fine for inference.
    p = p * pl.reciprocal(l, approx=True)

    # Weighted value sum (p already replicated over each head's 8 lanes).
    v3 = kvp[:, 4 * D_MODEL:].reshape(tq, K_PAD, D_MODEL)
    attn = jnp.sum(p * v3, axis=1)                                         # [TQ, 32]

    attn = jnp.dot(attn.astype(jnp.bfloat16), wo_ref[...],
                   preferred_element_type=jnp.float32) + bo_ref[...]
    x = x + attn                                   # dropout = identity (eval)

    # ---- FFNBlock (pre-norm, residual) ----
    xn2 = _layer_norm(x, ln_ref[2:3, :], ln_ref[3:4, :])
    hid = _gelu(jnp.dot(xn2.astype(jnp.bfloat16), w1_ref[...],
                        preferred_element_type=jnp.float32) + b1_ref[...])
    out_ref[...] = (x
                    + jnp.dot(hid.astype(jnp.bfloat16), w2_ref[...],
                              preferred_element_type=jnp.float32)
                    + b2_ref[...])


# ------------------------------- host-side glue ----------------------------
def _rotate_half_matrix():
    """(t @ R)[h*8+j] = t[h*8 + (j+4) % 8] (per head, sign folded into sin)."""
    r = np.zeros((D_MODEL, D_MODEL), np.float32)
    for h in range(N_HEADS):
        for j in range(HEAD_DIM):
            r[h * HEAD_DIM + (j + HEAD_DIM // 2) % HEAD_DIM, h * HEAD_DIM + j] = 1.0
    return r


def _head_pool_ones():
    """[32,32] block-diagonal ones: (prod @ P)[:, d] = per-head score of head d//8."""
    p = np.zeros((D_MODEL, D_MODEL), np.float32)
    for h in range(N_HEADS):
        p[h * HEAD_DIM:(h + 1) * HEAD_DIM, h * HEAD_DIM:(h + 1) * HEAD_DIM] = 1.0
    return p


def _head_rep_matrix():
    """[8,32] replication: (t8 @ R)[:, h*8+j] = t8[:, j] (rope_share_heads)."""
    r = np.zeros((HEAD_DIM, D_MODEL), np.float32)
    for h in range(N_HEADS):
        for j in range(HEAD_DIM):
            r[j, h * HEAD_DIM + j] = 1.0
    return r


_SIGN8 = np.concatenate([-np.ones(HEAD_DIM // 2, np.float32),
                         np.ones(HEAD_DIM // 2, np.float32)])


def rope_cos_sin(y_pix, x_pix, level):
    """cos/sin tables (width HEAD_DIM) for rotate-half RoPE, shared over heads."""
    f0 = 1.0
    f1 = ROPE_SPATIAL_THETA ** -0.5
    fl = ROPE_LEVEL_THETA ** -0.5
    ang = jnp.stack([y_pix * f0, x_pix * f0, y_pix * f1, level * fl], axis=-1)
    cos = jnp.concatenate([jnp.cos(ang), jnp.cos(ang)], axis=-1)   # [..., 8]
    sin = jnp.concatenate([jnp.sin(ang), jnp.sin(ang)], axis=-1)
    return cos, sin


def gather_neighborhoods(feature_map, query_positions, batch_idx, level_shapes_np):
    """Gather a 3x3 neighborhood per level around each normalized query position."""
    L = feature_map.shape[3]
    offs = np.stack(
        np.meshgrid(np.arange(-1, 2), np.arange(-1, 2), indexing="ij"), axis=-1
    ).reshape(-1, 2)
    offs = jnp.asarray(offs, jnp.int32)                                   # [9, 2]
    feats, key_y, key_x, key_l = [], [], [], []
    for lvl in range(L):
        hl = int(level_shapes_np[lvl, 0])
        wl = int(level_shapes_np[lvl, 1])
        center = jnp.floor(query_positions * jnp.asarray([hl, wl], jnp.float32)).astype(jnp.int32)
        idx = center[:, None, :] + offs[None, :, :]                       # [N, 9, 2]
        ii = jnp.clip(idx[..., 0], 0, hl - 1)
        jj = jnp.clip(idx[..., 1], 0, wl - 1)
        feats.append(feature_map[batch_idx[:, None], ii, jj, lvl, :])     # [N, 9, D]
        key_y.append((ii.astype(jnp.float32) + 0.5) / hl)
        key_x.append((jj.astype(jnp.float32) + 0.5) / wl)
        key_l.append(jnp.full(ii.shape, float(lvl), jnp.float32))
    return (jnp.concatenate(feats, axis=1),
            jnp.concatenate(key_y, axis=1),
            jnp.concatenate(key_x, axis=1),
            jnp.concatenate(key_l, axis=1))


def init_params(key):
    ks = jax.random.split(key, 6)

    def lin(k, fan_in, shape):
        bound = 1.0 / math.sqrt(fan_in)
        return jax.random.uniform(k, shape, jnp.float32, -bound, bound)

    ln1w = jnp.ones((1, D_MODEL), jnp.float32)
    ln1b = jnp.zeros((1, D_MODEL), jnp.float32)
    wq = lin(ks[0], D_MODEL, (D_MODEL, D_MODEL)); bq = jnp.zeros((1, D_MODEL), jnp.float32)
    wk = lin(ks[1], D_MODEL, (D_MODEL, D_MODEL)); bk = jnp.zeros((1, D_MODEL), jnp.float32)
    wv = lin(ks[2], D_MODEL, (D_MODEL, D_MODEL)); bv = jnp.zeros((1, D_MODEL), jnp.float32)
    wo = lin(ks[3], D_MODEL, (D_MODEL, D_MODEL)); bo = jnp.zeros((1, D_MODEL), jnp.float32)
    ln2w = jnp.ones((1, D_MODEL), jnp.float32)
    ln2b = jnp.zeros((1, D_MODEL), jnp.float32)
    w1 = lin(ks[4], D_MODEL, (D_MODEL, DIM_FF)); b1 = jnp.zeros((1, DIM_FF), jnp.float32)
    w2 = lin(ks[5], DIM_FF, (DIM_FF, D_MODEL)); b2 = jnp.zeros((1, D_MODEL), jnp.float32)
    return (ln1w, ln1b, wq, bq, wk, bk, wv, bv, wo, bo, ln2w, ln2b, w1, b1, w2, b2)


def pack_params(params):
    """Fold rotate-half / score scale / head replication into bf16 weight slabs."""
    (ln1w, ln1b, wq, bq, wk, bk, wv, bv, wo, bo, ln2w, ln2b, w1, b1, w2, b2) = params
    r = jnp.asarray(_rotate_half_matrix())
    rep = jnp.asarray(_head_rep_matrix())
    scale = 1.0 / math.sqrt(HEAD_DIM)

    wq2 = (jnp.concatenate([wq, wq @ r], axis=1) * scale).astype(jnp.bfloat16)   # [32, 64]
    bq2 = jnp.concatenate([bq, bq @ r], axis=1) * scale                           # [1, 64] f32

    # [48, 160] fused key/value weight: features -> k | rot(k) | . | . | v,
    # cos8 -> head-replicated kcos32, sin8 -> head-replicated ksin32.
    wkv = jnp.zeros((SLAB_W, KVP_W), jnp.float32)
    wkv = wkv.at[:D_MODEL, :D_MODEL].set(wk)
    wkv = wkv.at[:D_MODEL, D_MODEL:2 * D_MODEL].set(wk @ r)
    wkv = wkv.at[:D_MODEL, 4 * D_MODEL:].set(wv)
    wkv = wkv.at[D_MODEL:D_MODEL + HEAD_DIM, 2 * D_MODEL:3 * D_MODEL].set(rep)
    wkv = wkv.at[D_MODEL + HEAD_DIM:, 3 * D_MODEL:4 * D_MODEL].set(rep)
    wkv = wkv.astype(jnp.bfloat16)
    bkv = jnp.concatenate(
        [bk, bk @ r, jnp.zeros((1, 2 * D_MODEL), jnp.float32), bv], axis=1)       # [1, 160]

    ln_pack = jnp.concatenate([ln1w, ln1b, ln2w, ln2b], axis=0)                   # [4, 32]
    pool = jnp.asarray(_head_pool_ones())                                         # [32, 32]
    return (ln_pack, wq2, bq2, wkv, bkv,
            wo.astype(jnp.bfloat16), bo,
            w1.astype(jnp.bfloat16), b1,
            w2.astype(jnp.bfloat16), b2, pool)


def segmentation_map_layer(params, queries, query_batch_offsets, query_positions,
                           stacked_feature_map, level_spatial_shapes, *, tq=TQ_DEFAULT):
    # --- module-level control logic (host-side, static) ---
    shapes_np = np.asarray(level_spatial_shapes)
    max_level_index = np.unique(shapes_np.argmax(axis=0))
    assert len(max_level_index) == 1
    max_level = int(max_level_index[0])

    n = queries.shape[0]
    batch_idx = (
        jnp.searchsorted(query_batch_offsets,
                         jnp.arange(n, dtype=query_batch_offsets.dtype), side="right") - 1
    )

    # --- neighborhood gather + RoPE tables (data-dependent glue, plain JAX) ---
    # TODO(synk): fuse this gather into the kernel via scalar-prefetched indices
    # + manual DMA to avoid materializing the kv slab in HBM a second time.
    kv, key_y, key_x, key_l = gather_neighborhoods(
        stacked_feature_map, query_positions, batch_idx, shapes_np)
    max_h = float(shapes_np[max_level, 0])
    max_w = float(shapes_np[max_level, 1])
    q_level = jnp.full((n,), float(max_level), jnp.float32)       # query_level_indices
    qcos8, qsin8 = rope_cos_sin(query_positions[:, 0] * max_h,
                                query_positions[:, 1] * max_w, q_level)   # [N, 8]
    kcos8, ksin8 = rope_cos_sin(key_y * max_h, key_x * max_w, key_l)      # [N, 36, 8]

    sign8 = jnp.asarray(_SIGN8)
    qcs = jnp.concatenate([jnp.tile(qcos8, (1, N_HEADS)),
                           jnp.tile(qsin8 * sign8, (1, N_HEADS))], axis=1)        # [N, 64]
    slab36 = jnp.concatenate([kv, kcos8, ksin8 * sign8], axis=-1)                 # [N, 36, 48]

    # --- tile size: multiple of 8; keep the grid >= 2 when there is enough
    # work so the "parallel" axis feeds both v7x TensorCores ---
    tq = max(8, min(tq, _round_up(n, 8)))
    if n > 16:
        tq = min(tq, _round_up((n + 1) // 2, 8))
    n_pad = _round_up(n, tq)
    pad_q = n_pad - n

    x_p = jnp.pad(queries, ((0, pad_q), (0, 0))) if pad_q else queries
    qcs_p = (jnp.pad(qcs, ((0, pad_q), (0, 0))) if pad_q else qcs).astype(jnp.bfloat16)
    slab = jnp.pad(slab36, ((0, pad_q), (0, K_PAD - K_PER_QUERY), (0, 0)))
    slab = slab.reshape(n_pad * K_PAD, SLAB_W).astype(jnp.bfloat16)        # lane-dense rows

    packed = pack_params(params)

    row_map = lambda i: (i, 0)
    data_specs = [
        pl.BlockSpec((tq, D_MODEL), row_map),              # x (residual stream, f32)
        pl.BlockSpec((tq * K_PAD, SLAB_W), row_map),       # key slab (bf16) -- dominant stream
        pl.BlockSpec((tq, 2 * D_MODEL), row_map),          # query RoPE cos|signed-sin (bf16)
    ]
    param_specs = [pl.BlockSpec(p.shape, lambda i: (0, 0)) for p in packed]

    out = pl.pallas_call(
        seg_map_layer_kernel,
        out_shape=jax.ShapeDtypeStruct((n_pad, D_MODEL), jnp.float32),
        grid=(n_pad // tq,),
        in_specs=data_specs + param_specs,
        out_specs=pl.BlockSpec((tq, D_MODEL), row_map),
        compiler_params=pltpu.CompilerParams(
            dimension_semantics=("parallel",),   # v7x: shard query tiles over both TCs
            vmem_limit_bytes=VMEM_LIMIT_BYTES),
    )(x_p, slab, qcs_p, *packed)
    return out[:n]


if __name__ == "__main__":
    key = jax.random.PRNGKey(0)
    k_q, k_fm, k_pos, k_par = jax.random.split(key, 4)

    batch = 2
    n_per_batch = 4
    n_queries = batch * n_per_batch
    h_max = w_max = 16

    queries = jax.random.normal(k_q, (n_queries, D_MODEL), jnp.float32)
    query_batch_offsets = jnp.array([0, n_per_batch, n_queries], jnp.int32)
    query_positions = jax.random.uniform(k_pos, (n_queries, 2), jnp.float32)  # normalized [0,1)
    stacked_feature_map = jax.random.normal(
        k_fm, (batch, h_max, w_max, N_LEVELS, D_MODEL), jnp.float32)
    level_spatial_shapes = jnp.array([[4, 4], [8, 8], [12, 12], [16, 16]], jnp.int32)

    params = init_params(k_par)
    out = segmentation_map_layer(params, queries, query_batch_offsets, query_positions,
                                 stacked_feature_map, level_spatial_shapes)
    out = jax.block_until_ready(out)
    assert out.shape == (n_queries, D_MODEL)
    assert bool(jnp.all(jnp.isfinite(out)))
    print("KERNEL_OK")
</pallas_src>

<mosaic_0001>
module attributes {stable_mosaic.version = 11 : i64} {
  func.func @seg_map_layer_kernel(%arg0: i32, %arg1: memref<8x32xf32, #tpu.memory_space<vmem>>, %arg2: memref<320x48xbf16, #tpu.memory_space<vmem>>, %arg3: memref<8x64xbf16, #tpu.memory_space<vmem>>, %arg4: memref<4x32xf32, #tpu.memory_space<vmem>>, %arg5: memref<32x64xbf16, #tpu.memory_space<vmem>>, %arg6: memref<1x64xf32, #tpu.memory_space<vmem>>, %arg7: memref<48x160xbf16, #tpu.memory_space<vmem>>, %arg8: memref<1x160xf32, #tpu.memory_space<vmem>>, %arg9: memref<32x32xbf16, #tpu.memory_space<vmem>>, %arg10: memref<1x32xf32, #tpu.memory_space<vmem>>, %arg11: memref<32x64xbf16, #tpu.memory_space<vmem>>, %arg12: memref<1x64xf32, #tpu.memory_space<vmem>>, %arg13: memref<64x32xbf16, #tpu.memory_space<vmem>>, %arg14: memref<1x32xf32, #tpu.memory_space<vmem>>, %arg15: memref<32x32xf32, #tpu.memory_space<vmem>>, %arg16: memref<8x32xf32, #tpu.memory_space<vmem>>) attributes {dimension_semantics = [#tpu.dimension_semantics<parallel>], iteration_bounds = array<i64: 1>, scalar_prefetch = 0 : i64, scratch_operands = 0 : i64, tpu.core_type = #tpu.core_type<tc>, window_params = [{transform_indices = @transform_0, window_bounds = array<i64: 8, 32>}, {transform_indices = @transform_1, window_bounds = array<i64: 320, 48>}, {transform_indices = @transform_2, window_bounds = array<i64: 8, 64>}, {pipeline_mode = #tpu.pipeline_mode<synchronous>, transform_indices = @transform_3, window_bounds = array<i64: 4, 32>}, {pipeline_mode = #tpu.pipeline_mode<synchronous>, transform_indices = @transform_4, window_bounds = array<i64: 32, 64>}, {pipeline_mode = #tpu.pipeline_mode<synchronous>, transform_indices = @transform_5, window_bounds = array<i64: 1, 64>}, {pipeline_mode = #tpu.pipeline_mode<synchronous>, transform_indices = @transform_6, window_bounds = array<i64: 48, 160>}, {pipeline_mode = #tpu.pipeline_mode<synchronous>, transform_indices = @transform_7, window_bounds = array<i64: 1, 160>}, {pipeline_mode = #tpu.pipeline_mode<synchronous>, transform_indices = @transform_8, window_bounds = array<i64: 32, 32>}, {pipeline_mode = #tpu.pipeline_mode<synchronous>, transform_indices = @transform_9, window_bounds = array<i64: 1, 32>}, {pipeline_mode = #tpu.pipeline_mode<synchronous>, transform_indices = @transform_10, window_bounds = array<i64: 32, 64>}, {pipeline_mode = #tpu.pipeline_mode<synchronous>, transform_indices = @transform_11, window_bounds = array<i64: 1, 64>}, {pipeline_mode = #tpu.pipeline_mode<synchronous>, transform_indices = @transform_12, window_bounds = array<i64: 64, 32>}, {pipeline_mode = #tpu.pipeline_mode<synchronous>, transform_indices = @transform_13, window_bounds = array<i64: 1, 32>}, {pipeline_mode = #tpu.pipeline_mode<synchronous>, transform_indices = @transform_14, window_bounds = array<i64: 32, 32>}, {transform_indices = @transform_15, window_bounds = array<i64: 8, 32>}]} {
    %c0 = arith.constant 0 : index
    %c0_0 = arith.constant 0 : index
    %0 = vector.load %arg1[%c0, %c0_0] : memref<8x32xf32, #tpu.memory_space<vmem>>, vector<8x32xf32>
    %c0_1 = arith.constant 0 : index
    %c0_2 = arith.constant 0 : index
    %1 = vector.load %arg4[%c0_1, %c0_2] : memref<4x32xf32, #tpu.memory_space<vmem>>, vector<1x32xf32>
    %c1 = arith.constant 1 : index
    %c0_3 = arith.constant 0 : index
    %2 = vector.load %arg4[%c1, %c0_3] : memref<4x32xf32, #tpu.memory_space<vmem>>, vector<1x32xf32>
    %cst = arith.constant dense<0.000000e+00> : vector<8xf32>
    %3 = vector.multi_reduction <add>, %0, %cst [1] : vector<8x32xf32> to vector<8xf32>
    %4 = vector.shape_cast %3 : vector<8xf32> to vector<8x1xf32>
    %cst_4 = arith.constant 3.200000e+01 : f32
    %5 = vector.broadcast %cst_4 : f32 to vector<8x1xf32>
    %6 = arith.divf %4, %5 : vector<8x1xf32>
    %7 = vector.broadcast %6 : vector<8x1xf32> to vector<8x32xf32>
    %8 = arith.subf %0, %7 : vector<8x32xf32>
    %9 = arith.mulf %8, %8 : vector<8x32xf32>
    %cst_5 = arith.constant dense<0.000000e+00> : vector<8xf32>
    %10 = vector.multi_reduction <add>, %9, %cst_5 [1] : vector<8x32xf32> to vector<8xf32>
    %11 = vector.shape_cast %10 : vector<8xf32> to vector<8x1xf32>
    %cst_6 = arith.constant 3.200000e+01 : f32
    %12 = vector.broadcast %cst_6 : f32 to vector<8x1xf32>
    %13 = arith.divf %11, %12 : vector<8x1xf32>
    %14 = vector.broadcast %6 : vector<8x1xf32> to vector<8x32xf32>
    %15 = arith.subf %0, %14 : vector<8x32xf32>
    %cst_7 = arith.constant 9.99999974E-6 : f32
    %16 = vector.broadcast %cst_7 : f32 to vector<8x1xf32>
    %17 = arith.addf %13, %16 : vector<8x1xf32>
    %18 = math.rsqrt %17 : vector<8x1xf32>
    %19 = vector.broadcast %18 : vector<8x1xf32> to vector<8x32xf32>
    %20 = arith.mulf %15, %19 : vector<8x32xf32>
    %21 = vector.broadcast %1 : vector<1x32xf32> to vector<8x32xf32>
    %22 = arith.mulf %20, %21 : vector<8x32xf32>
    %23 = vector.broadcast %2 : vector<1x32xf32> to vector<8x32xf32>
    %24 = arith.addf %22, %23 : vector<8x32xf32>
    %25 = arith.truncf %24 : vector<8x32xf32> to vector<8x32xbf16>
    %c0_8 = arith.constant 0 : index
    %c0_9 = arith.constant 0 : index
    %26 = vector.load %arg5[%c0_8, %c0_9] : memref<32x64xbf16, #tpu.memory_space<vmem>>, vector<32x64xbf16>
    %cst_10 = arith.constant dense<0.000000e+00> : vector<8x64xf32>
    %27 = tpu.matmul %25, %26, %cst_10 {dimension_numbers = #tpu.dot_dimension_numbers<[1], [0], [0], [1], [0, 0, 1, 1], [], []>} : vector<8x32xbf16>, vector<32x64xbf16>, vector<8x64xf32> -> vector<8x64xf32>
    %c0_11 = arith.constant 0 : index
    %c0_12 = arith.constant 0 : index
    %28 = vector.load %arg6[%c0_11, %c0_12] : memref<1x64xf32, #tpu.memory_space<vmem>>, vector<1x64xf32>
    %29 = vector.broadcast %28 : vector<1x64xf32> to vector<8x64xf32>
    %30 = arith.addf %27, %29 : vector<8x64xf32>
    %c0_13 = arith.constant 0 : index
    %c0_14 = arith.constant 0 : index
    %31 = vector.load %arg3[%c0_13, %c0_14] : memref<8x64xbf16, #tpu.memory_space<vmem>>, vector<8x64xbf16>
    %32 = arith.extf %31 : vector<8x64xbf16> to vector<8x64xf32>
    %33 = arith.mulf %30, %32 : vector<8x64xf32>
    %34 = vector.extract_strided_slice %33 {offsets = [0, 0], sizes = [8, 32], strides = [1, 1]} : vector<8x64xf32> to vector<8x32xf32>
    %35 = vector.extract_strided_slice %33 {offsets = [0, 32], sizes = [8, 32], strides = [1, 1]} : vector<8x64xf32> to vector<8x32xf32>
    %36 = arith.addf %34, %35 : vector<8x32xf32>
    %c0_15 = arith.constant 0 : index
    %c0_16 = arith.constant 0 : index
    %37 = vector.load %arg2[%c0_15, %c0_16] : memref<320x48xbf16, #tpu.memory_space<vmem>>, vector<320x48xbf16>
    %c0_17 = arith.constant 0 : index
    %c0_18 = arith.constant 0 : index
    %38 = vector.load %arg7[%c0_17, %c0_18] : memref<48x160xbf16, #tpu.memory_space<vmem>>, vector<48x160xbf16>
    %cst_19 = arith.constant dense<0.000000e+00> : vector<320x160xf32>
    %39 = tpu.matmul %37, %38, %cst_19 {dimension_numbers = #tpu.dot_dimension_numbers<[1], [0], [0], [1], [0, 0, 1, 1], [], []>} : vector<320x48xbf16>, vector<48x160xbf16>, vector<320x160xf32> -> vector<320x160xf32>
    %c0_20 = arith.constant 0 : index
    %c0_21 = arith.constant 0 : index
    %40 = vector.load %arg8[%c0_20, %c0_21] : memref<1x160xf32, #tpu.memory_space<vmem>>, vector<1x160xf32>
    %41 = vector.broadcast %40 : vector<1x160xf32> to vector<320x160xf32>
    %42 = arith.addf %39, %41 : vector<320x160xf32>
    %43 = vector.extract_strided_slice %42 {offsets = [0, 0], sizes = [320, 64], strides = [1, 1]} : vector<320x160xf32> to vector<320x64xf32>
    %44 = vector.extract_strided_slice %42 {offsets = [0, 64], sizes = [320, 64], strides = [1, 1]} : vector<320x160xf32> to vector<320x64xf32>
    %45 = arith.mulf %43, %44 : vector<320x64xf32>
    %46 = vector.extract_strided_slice %45 {offsets = [0, 0], sizes = [320, 32], strides = [1, 1]} : vector<320x64xf32> to vector<320x32xf32>
    %47 = vector.extract_strided_slice %45 {offsets = [0, 32], sizes = [320, 32], strides = [1, 1]} : vector<320x64xf32> to vector<320x32xf32>
    %48 = arith.addf %46, %47 : vector<320x32xf32>
    %49 = vector.shape_cast %48 : vector<320x32xf32> to vector<8x40x32xf32>
    %50 = vector.shape_cast %36 : vector<8x32xf32> to vector<8x1x32xf32>
    %51 = vector.broadcast %50 : vector<8x1x32xf32> to vector<8x40x32xf32>
    %52 = arith.mulf %51, %49 : vector<8x40x32xf32>
    %53 = vector.shape_cast %52 : vector<8x40x32xf32> to vector<320x32xf32>
    %c0_22 = arith.constant 0 : index
    %c0_23 = arith.constant 0 : index
    %54 = vector.load %arg15[%c0_22, %c0_23] : memref<32x32xf32, #tpu.memory_space<vmem>>, vector<32x32xf32>
    %cst_24 = arith.constant dense<0.000000e+00> : vector<320x32xf32>
    %55 = tpu.matmul %53, %54, %cst_24 {dimension_numbers = #tpu.dot_dimension_numbers<[1], [0], [0], [1], [0, 0, 1, 1], [], []>} : vector<320x32xf32>, vector<32x32xf32>, vector<320x32xf32> -> vector<320x32xf32>
    %56 = vector.shape_cast %55 : vector<320x32xf32> to vector<8x40x32xf32>
    %57 = tpu.iota {dimensions = array<i32: 1>} : vector<1x40x32xi32>
    %c36_i32 = arith.constant 36 : i32
    %58 = vector.broadcast %c36_i32 : i32 to vector<1x40x32xi32>
    %59 = arith.cmpi slt, %57, %58 : vector<1x40x32xi32>
    %cst_25 = arith.constant 0.000000e+00 : f32
    %cst_26 = arith.constant -1.000000e+30 : f32
    %60 = vector.broadcast %cst_25 : f32 to vector<1x40x32xf32>
    %61 = vector.broadcast %cst_26 : f32 to vector<1x40x32xf32>
    %62 = arith.select %59, %60, %61 : vector<1x40x32xi1>, vector<1x40x32xf32>
    %63 = vector.broadcast %62 : vector<1x40x32xf32> to vector<8x40x32xf32>
    %64 = arith.addf %56, %63 : vector<8x40x32xf32>
    %cst_27 = arith.constant dense<0xFF800000> : vector<8x32xf32>
    %65 = vector.multi_reduction <maximumf>, %64, %cst_27 [1] : vector<8x40x32xf32> to vector<8x32xf32>
    %66 = vector.shape_cast %65 : vector<8x32xf32> to vector<8x1x32xf32>
    %67 = vector.broadcast %66 : vector<8x1x32xf32> to vector<8x40x32xf32>
    %68 = arith.subf %64, %67 : vector<8x40x32xf32>
    %69 = math.exp %68 : vector<8x40x32xf32>
    %cst_28 = arith.constant dense<0.000000e+00> : vector<8x32xf32>
    %70 = vector.multi_reduction <add>, %69, %cst_28 [1] : vector<8x40x32xf32> to vector<8x32xf32>
    %71 = vector.shape_cast %70 : vector<8x32xf32> to vector<8x1x32xf32>
    %72 = tpu.reciprocal %71 {approx = true} : vector<8x1x32xf32> -> vector<8x1x32xf32>
    %73 = vector.broadcast %72 : vector<8x1x32xf32> to vector<8x40x32xf32>
    %74 = arith.mulf %69, %73 : vector<8x40x32xf32>
    %75 = vector.extract_strided_slice %42 {offsets = [0, 128], sizes = [320, 32], strides = [1, 1]} : vector<320x160xf32> to vector<320x32xf32>
    %76 = vector.shape_cast %75 : vector<320x32xf32> to vector<8x40x32xf32>
    %77 = arith.mulf %74, %76 : vector<8x40x32xf32>
    %cst_29 = arith.constant dense<0.000000e+00> : vector<8x32xf32>
    %78 = vector.multi_reduction <add>, %77, %cst_29 [1] : vector<8x40x32xf32> to vector<8x32xf32>
    %79 = arith.truncf %78 : vector<8x32xf32> to vector<8x32xbf16>
    %c0_30 = arith.constant 0 : index
    %c0_31 = arith.constant 0 : index
    %80 = vector.load %arg9[%c0_30, %c0_31] : memref<32x32xbf16, #tpu.memory_space<vmem>>, vector<32x32xbf16>
    %cst_32 = arith.constant dense<0.000000e+00> : vector<8x32xf32>
    %81 = tpu.matmul %79, %80, %cst_32 {dimension_numbers = #tpu.dot_dimension_numbers<[1], [0], [0], [1], [0, 0, 1, 1], [], []>} : vector<8x32xbf16>, vector<32x32xbf16>, vector<8x32xf32> -> vector<8x32xf32>
    %c0_33 = arith.constant 0 : index
    %c0_34 = arith.constant 0 : index
    %82 = vector.load %arg10[%c0_33, %c0_34] : memref<1x32xf32, #tpu.memory_space<vmem>>, vector<1x32xf32>
    %83 = vector.broadcast %82 : vector<1x32xf32> to vector<8x32xf32>
    %84 = arith.addf %81, %83 : vector<8x32xf32>
    %85 = arith.addf %0, %84 : vector<8x32xf32>
    %c2 = arith.constant 2 : index
    %c0_35 = arith.constant 0 : index
    %86 = vector.load %arg4[%c2, %c0_35] : memref<4x32xf32, #tpu.memory_space<vmem>>, vector<1x32xf32>
    %c3 = arith.constant 3 : index
    %c0_36 = arith.constant 0 : index
    %87 = vector.load %arg4[%c3, %c0_36] : memref<4x32xf32, #tpu.memory_space<vmem>>, vector<1x32xf32>
    %cst_37 = arith.constant dense<0.000000e+00> : vector<8xf32>
    %88 = vector.multi_reduction <add>, %85, %cst_37 [1] : vector<8x32xf32> to vector<8xf32>
    %89 = vector.shape_cast %88 : vector<8xf32> to vector<8x1xf32>
    %cst_38 = arith.constant 3.200000e+01 : f32
    %90 = vector.broadcast %cst_38 : f32 to vector<8x1xf32>
    %91 = arith.divf %89, %90 : vector<8x1xf32>
    %92 = vector.broadcast %91 : vector<8x1xf32> to vector<8x32xf32>
    %93 = arith.subf %85, %92 : vector<8x32xf32>
    %94 = arith.mulf %93, %93 : vector<8x32xf32>
    %cst_39 = arith.constant dense<0.000000e+00> : vector<8xf32>
    %95 = vector.multi_reduction <add>, %94, %cst_39 [1] : vector<8x32xf32> to vector<8xf32>
    %96 = vector.shape_cast %95 : vector<8xf32> to vector<8x1xf32>
    %cst_40 = arith.constant 3.200000e+01 : f32
    %97 = vector.broadcast %cst_40 : f32 to vector<8x1xf32>
    %98 = arith.divf %96, %97 : vector<8x1xf32>
    %99 = vector.broadcast %91 : vector<8x1xf32> to vector<8x32xf32>
    %100 = arith.subf %85, %99 : vector<8x32xf32>
    %cst_41 = arith.constant 9.99999974E-6 : f32
    %101 = vector.broadcast %cst_41 : f32 to vector<8x1xf32>
    %102 = arith.addf %98, %101 : vector<8x1xf32>
    %103 = math.rsqrt %102 : vector<8x1xf32>
    %104 = vector.broadcast %103 : vector<8x1xf32> to vector<8x32xf32>
    %105 = arith.mulf %100, %104 : vector<8x32xf32>
    %106 = vector.broadcast %86 : vector<1x32xf32> to vector<8x32xf32>
    %107 = arith.mulf %105, %106 : vector<8x32xf32>
    %108 = vector.broadcast %87 : vector<1x32xf32> to vector<8x32xf32>
    %109 = arith.addf %107, %108 : vector<8x32xf32>
    %110 = arith.truncf %109 : vector<8x32xf32> to vector<8x32xbf16>
    %c0_42 = arith.constant 0 : index
    %c0_43 = arith.constant 0 : index
    %111 = vector.load %arg11[%c0_42, %c0_43] : memref<32x64xbf16, #tpu.memory_space<vmem>>, vector<32x64xbf16>
    %cst_44 = arith.constant dense<0.000000e+00> : vector<8x64xf32>
    %112 = tpu.matmul %110, %111, %cst_44 {dimension_numbers = #tpu.dot_dimension_numbers<[1], [0], [0], [1], [0, 0, 1, 1], [], []>} : vector<8x32xbf16>, vector<32x64xbf16>, vector<8x64xf32> -> vector<8x64xf32>
    %c0_45 = arith.constant 0 : index
    %c0_46 = arith.constant 0 : index
    %113 = vector.load %arg12[%c0_45, %c0_46] : memref<1x64xf32, #tpu.memory_space<vmem>>, vector<1x64xf32>
    %114 = vector.broadcast %113 : vector<1x64xf32> to vector<8x64xf32>
    %115 = arith.addf %112, %114 : vector<8x64xf32>
    %cst_47 = arith.constant 5.000000e-01 : f32
    %116 = vector.broadcast %cst_47 : f32 to vector<8x64xf32>
    %117 = arith.mulf %116, %115 : vector<8x64xf32>
    %cst_48 = arith.constant 4.471500e-02 : f32
    %118 = vector.broadcast %cst_48 : f32 to vector<8x64xf32>
    %119 = arith.mulf %118, %115 : vector<8x64xf32>
    %120 = arith.mulf %119, %115 : vector<8x64xf32>
    %121 = arith.mulf %120, %115 : vector<8x64xf32>
    %122 = arith.addf %115, %121 : vector<8x64xf32>
    %cst_49 = arith.constant 0.797884583 : f32
    %123 = vector.broadcast %cst_49 : f32 to vector<8x64xf32>
    %124 = arith.mulf %123, %122 : vector<8x64xf32>
    %125 = math.tanh %124 : vector<8x64xf32>
    %cst_50 = arith.constant 1.000000e+00 : f32
    %126 = vector.broadcast %cst_50 : f32 to vector<8x64xf32>
    %127 = arith.addf %126, %125 : vector<8x64xf32>
    %128 = arith.mulf %117, %127 : vector<8x64xf32>
    %129 = arith.truncf %128 : vector<8x64xf32> to vector<8x64xbf16>
    %c0_51 = arith.constant 0 : index
    %c0_52 = arith.constant 0 : index
    %130 = vector.load %arg13[%c0_51, %c0_52] : memref<64x32xbf16, #tpu.memory_space<vmem>>, vector<64x32xbf16>
    %cst_53 = arith.constant dense<0.000000e+00> : vector<8x32xf32>
    %131 = tpu.matmul %129, %130, %cst_53 {dimension_numbers = #tpu.dot_dimension_numbers<[1], [0], [0], [1], [0, 0, 1, 1], [], []>} : vector<8x64xbf16>, vector<64x32xbf16>, vector<8x32xf32> -> vector<8x32xf32>
    %132 = arith.addf %85, %131 : vector<8x32xf32>
    %c0_54 = arith.constant 0 : index
    %c0_55 = arith.constant 0 : index
    %133 = vector.load %arg14[%c0_54, %c0_55] : memref<1x32xf32, #tpu.memory_space<vmem>>, vector<1x32xf32>
    %134 = vector.broadcast %133 : vector<1x32xf32> to vector<8x32xf32>
    %135 = arith.addf %132, %134 : vector<8x32xf32>
    %c0_56 = arith.constant 0 : index
    %c0_57 = arith.constant 0 : index
    %136 = vector.load %arg16[%c0_56, %c0_57] : memref<8x32xf32, #tpu.memory_space<vmem>>, vector<8x32xf32>
    tpu.vector_store %arg16[%c0_56, %c0_57], %135 {strides = array<i32>} : memref<8x32xf32, #tpu.memory_space<vmem>>, vector<8x32xf32>,
    return
  }
  func.func @transform_0(%arg0: i32) -> (i32, i32) {
    %c0_i32 = arith.constant 0 : i32
    %c0_i32_0 = arith.constant 0 : i32
    return %arg0, %c0_i32 : i32, i32
  }
  func.func @transform_1(%arg0: i32) -> (i32, i32) {
    %c0_i32 = arith.constant 0 : i32
    %c0_i32_0 = arith.constant 0 : i32
    return %arg0, %c0_i32 : i32, i32
  }
  func.func @transform_2(%arg0: i32) -> (i32, i32) {
    %c0_i32 = arith.constant 0 : i32
    %c0_i32_0 = arith.constant 0 : i32
    return %arg0, %c0_i32 : i32, i32
  }
  func.func @transform_3(%arg0: i32) -> (i32, i32) {
    %c0_i32 = arith.constant 0 : i32
    %c0_i32_0 = arith.constant 0 : i32
    %c0_i32_1 = arith.constant 0 : i32
    return %c0_i32, %c0_i32_0 : i32, i32
  }
  func.func @transform_4(%arg0: i32) -> (i32, i32) {
    %c0_i32 = arith.constant 0 : i32
    %c0_i32_0 = arith.constant 0 : i32
    %c0_i32_1 = arith.constant 0 : i32
    return %c0_i32, %c0_i32_0 : i32, i32
  }
  func.func @transform_5(%arg0: i32) -> (i32, i32) {
    %c0_i32 = arith.constant 0 : i32
    %c0_i32_0 = arith.constant 0 : i32
    %c0_i32_1 = arith.constant 0 : i32
    return %c0_i32, %c0_i32_0 : i32, i32
  }
  func.func @transform_6(%arg0: i32) -> (i32, i32) {
    %c0_i32 = arith.constant 0 : i32
    %c0_i32_0 = arith.constant 0 : i32
    %c0_i32_1 = arith.constant 0 : i32
    return %c0_i32, %c0_i32_0 : i32, i32
  }
  func.func @transform_7(%arg0: i32) -> (i32, i32) {
    %c0_i32 = arith.constant 0 : i32
    %c0_i32_0 = arith.constant 0 : i32
    %c0_i32_1 = arith.constant 0 : i32
    return %c0_i32, %c0_i32_0 : i32, i32
  }
  func.func @transform_8(%arg0: i32) -> (i32, i32) {
    %c0_i32 = arith.constant 0 : i32
    %c0_i32_0 = arith.constant 0 : i32
    %c0_i32_1 = arith.constant 0 : i32
    return %c0_i32, %c0_i32_0 : i32, i32
  }
  func.func @transform_9(%arg0: i32) -> (i32, i32) {
    %c0_i32 = arith.constant 0 : i32
    %c0_i32_0 = arith.constant 0 : i32
    %c0_i32_1 = arith.constant 0 : i32
    return %c0_i32, %c0_i32_0 : i32, i32
  }
  func.func @transform_10(%arg0: i32) -> (i32, i32) {
    %c0_i32 = arith.constant 0 : i32
    %c0_i32_0 = arith.constant 0 : i32
    %c0_i32_1 = arith.constant 0 : i32
    return %c0_i32, %c0_i32_0 : i32, i32
  }
  func.func @transform_11(%arg0: i32) -> (i32, i32) {
    %c0_i32 = arith.constant 0 : i32
    %c0_i32_0 = arith.constant 0 : i32
    %c0_i32_1 = arith.constant 0 : i32
    return %c0_i32, %c0_i32_0 : i32, i32
  }
  func.func @transform_12(%arg0: i32) -> (i32, i32) {
    %c0_i32 = arith.constant 0 : i32
    %c0_i32_0 = arith.constant 0 : i32
    %c0_i32_1 = arith.constant 0 : i32
    return %c0_i32, %c0_i32_0 : i32, i32
  }
  func.func @transform_13(%arg0: i32) -> (i32, i32) {
    %c0_i32 = arith.constant 0 : i32
    %c0_i32_0 = arith.constant 0 : i32
    %c0_i32_1 = arith.constant 0 : i32
    return %c0_i32, %c0_i32_0 : i32, i32
  }
  func.func @transform_14(%arg0: i32) -> (i32, i32) {
    %c0_i32 = arith.constant 0 : i32
    %c0_i32_0 = arith.constant 0 : i32
    %c0_i32_1 = arith.constant 0 : i32
    return %c0_i32, %c0_i32_0 : i32, i32
  }
  func.func @transform_15(%arg0: i32) -> (i32, i32) {
    %c0_i32 = arith.constant 0 : i32
    %c0_i32_0 = arith.constant 0 : i32
    return %arg0, %c0_i32 : i32, i32
  }
}

</mosaic_0001>

<bundles_post_ra>
// kernel: tpu_custom_call.1
= control target key start
LH: loop header
LB: loop body
LE: loop exit
PB: predicated region body
PF: predicated region fallthrough
CT: control target
= control target key end

     0   :  { %s5143_s0 = inlined_call_operand.hbm [shape: f32[8,32], index: 0, kind: input, shape index: {}]   ;;  %s5144_s1 = inlined_call_operand.hbm [shape: bf16[320,48], index: 1, kind: input, shape index: {}]   ;;  %s5145_s2 = inlined_call_operand.hbm [shape: bf16[8,64], index: 2, kind: input, shape index: {}]   ;;  %s5146_s3 = inlined_call_operand.hbm [shape: f32[4,32], index: 3, kind: input, shape index: {}]   ;;  %s5147_s4 = inlined_call_operand.hbm [shape: bf16[32,64], index: 4, kind: input, shape index: {}]   ;;  %s5148_s5 = inlined_call_operand.hbm [shape: f32[1,64], index: 5, kind: input, shape index: {}]   ;;  %s5149_s6 = inlined_call_operand.hbm [shape: bf16[48,160], index: 6, kind: input, shape index: {}]   ;;  %s5150_s7 = inlined_call_operand.hbm [shape: f32[1,160], index: 7, kind: input, shape index: {}]   ;;  %s5151_s8 = inlined_call_operand.hbm [shape: bf16[32,32], index: 8, kind: input, shape index: {}]   ;;  %s5152_s9 = inlined_call_operand.hbm [shape: f32[1,32], index: 9, kind: input, shape index: {}]   ;;  %s5153_s10 = inlined_call_operand.hbm [shape: bf16[32,64], index: 10, kind: input, shape index: {}]   ;;  %s5154_s11 = inlined_call_operand.hbm [shape: f32[1,64], index: 11, kind: input, shape index: {}]   ;;  %s5155_s12 = inlined_call_operand.hbm [shape: bf16[64,32], index: 12, kind: input, shape index: {}]   ;;  %s5156_s13 = inlined_call_operand.hbm [shape: f32[1,32], index: 13, kind: input, shape index: {}]   ;;  %s5157_s14 = inlined_call_operand.hbm [shape: f32[32,32], index: 14, kind: input, shape index: {}]   ;;  %s5158_s15 = inlined_call_operand.hbm [shape: f32[8,32], index: 15, kind: output, shape index: {}]  }
   0x1   :  { %5167 = sst [smem:[#allocation80_spill]] %s5158_s15 }
   0x2   :  { %20 = vsyncpa [#allocation3], 0 }
   0x3   :  { %21 = vsyncpa [#allocation6], 0 }
   0x4   :  { %22 = vsyncpa [#allocation9], 0 }
   0x5   :  { %23 = vsyncpa [#allocation12], 0 }
   0x6   :  { %24 = vsyncpa [#allocation15], 0 }
   0x7   :  { %25 = vsyncpa [#allocation18], 0 }
   0x8   :  { %26 = vsyncpa [#allocation21], 0 }
   0x9   :  { %27 = vsyncpa [#allocation24], 0 }
   0xa   :  { %28 = vsyncpa [#allocation4], 0  ;;  %s3505_s18 = smov [#allocation5]   ;;  %s3135_s22 = scalar_lea.hbm %s5144_s1, 2560 }
   0xb   :  { %s44_s19 = sshll.u32 %s3505_s18, 4  ;;  %p3136_p0 = scmp.ne.s32.totalorder %s5144_s1, %s3135_s22  ;;  %s45_s19 = int_to_ptr.vmem [resolvable:$true] %s44_s19 }
   0xc   :  { %p3139_p1 = scmp.lt.u32.totalorder %s3135_s22, %s5144_s1 }
   0xe   :  { %p3141_p2 = pnand %p3139_p1, %p3136_p0 }
  0x10   :  { %3144 = shalt.err (!%p3141_p2)
}
  0x11   :  { %s3145_s27 = scalar_lea.vmem %s45_s19, 2560  ;;  %p3150_p4 = scmp.lt.s32.totalorder %s45_s19, %s45_s19 }
  0x12   :  { %p3146_p3 = scmp.ne.s32.totalorder %s45_s19, %s3145_s27  ;;  %p3151_p5 = scmp.lt.s32.totalorder %s3145_s27, %s3145_s27 }
  0x14   :  { %p3152_p6 = por %p3151_p5, %p3150_p4 }
  0x16   :  { %p3153_p7 = pnand %p3152_p6, %p3146_p3 }
  0x18   :  { %3156 = shalt.err (!%p3153_p7)
}
  0x19   :  { %s3506_s28 = smov 64   ;;  %s3507_s29 = smov 4  }
  0x1a   :  { %50 = dma.hbm_to_vmem [thread:$0]  %s5144_s1, 2560, %s45_s19, [#allocation6], %s3506_s28, %s3506_s28, %s3507_s29  }
  0x1b   :  { %s3508_s17 = smov [#allocation8]   ;;  %s3509_s20 = smov [#allocation11]  }
  0x1c   :  { %s67_s18 = sshll.u32 %s3508_s17, 4  ;;  %s89_s21 = sshll.u32 %s3509_s20, 4  ;;  %s68_s18 = int_to_ptr.vmem [resolvable:$true] %s67_s18  ;;  %s90_s21 = int_to_ptr.vmem [resolvable:$true] %s89_s21 }
  0x1d   :  { %s3157_s24 = scalar_lea.hbm %s5146_s3, 64 }
  0x1e   :  { %p3158_p8 = scmp.ne.s32.totalorder %s5146_s3, %s3157_s24  ;;  %p3161_p9 = scmp.lt.u32.totalorder %s3157_s24, %s5146_s3 }
  0x20   :  { %p3163_p10 = pnand %p3161_p9, %p3158_p8 }
  0x22   :  { %3166 = shalt.err (!%p3163_p10)
}
  0x23   :  { %s3167_s1 = scalar_lea.vmem %s68_s18, 64  ;;  %p3172_p12 = scmp.lt.s32.totalorder %s68_s18, %s68_s18 }
  0x24   :  { %p3168_p11 = scmp.ne.s32.totalorder %s68_s18, %s3167_s1  ;;  %p3173_p13 = scmp.lt.s32.totalorder %s3167_s1, %s3167_s1 }
  0x26   :  { %p3174_p0 = por %p3173_p13, %p3172_p12 }
  0x28   :  { %p3175_p1 = pnand %p3174_p0, %p3168_p11 }
  0x2a   :  { %3178 = shalt.err (!%p3175_p1)
}
  0x2b   :  { %70 = dma.hbm_to_vmem [thread:$0]  %s5146_s3, 64, %s68_s18, [#allocation9]  }
  0x2c   :  { %s3179_s20 = scalar_lea.hbm %s5148_s5, 16 }
  0x2d   :  { %p3180_p2 = scmp.ne.s32.totalorder %s5148_s5, %s3179_s20  ;;  %p3183_p3 = scmp.lt.u32.totalorder %s3179_s20, %s5148_s5 }
  0x2f   :  { %p3185_p4 = pnand %p3183_p3, %p3180_p2 }
  0x31   :  { %3188 = shalt.err (!%p3185_p4)
}
  0x32   :  { %s3189_s25 = scalar_lea.vmem %s90_s21, 16  ;;  %s3193_s26 = scalar_lea.vmem %s90_s21, 32 }
  0x33   :  { %p3190_p5 = scmp.ne.s32.totalorder %s90_s21, %s3189_s25  ;;  %p3194_p6 = scmp.lt.s32.totalorder %s90_s21, %s90_s21 }
  0x34   :  { %p3195_p7 = scmp.lt.s32.totalorder %s3193_s26, %s3189_s25 }
  0x36   :  { %p3196_p8 = por %p3195_p7, %p3194_p6 }
  0x38   :  { %p3197_p9 = pnand %p3196_p8, %p3190_p5 }
  0x3a   :  { %3200 = shalt.err (!%p3197_p9)
}
  0x3b   :  { %92 = dma.hbm_to_vmem [thread:$0]  %s5148_s5, 16, %s90_s21, [#allocation12]  }
  0x3c   :  { %s3510_s27 = smov [#allocation14]   ;;  %s3511_s19 = smov [#allocation17]  }
  0x3d   :  { %s111_s1 = sshll.u32 %s3510_s27, 4  ;;  %s133_s30 = sshll.u32 %s3511_s19, 4  ;;  %s112_s1 = int_to_ptr.vmem [resolvable:$true] %s111_s1  ;;  %s134_s30 = int_to_ptr.vmem [resolvable:$true] %s133_s30 }
  0x3e   :  { %s3201_s20 = scalar_lea.hbm %s5150_s7, 32 }
  0x3f   :  { %p3202_p10 = scmp.ne.s32.totalorder %s5150_s7, %s3201_s20  ;;  %p3205_p11 = scmp.lt.u32.totalorder %s3201_s20, %s5150_s7 }
  0x41   :  { %p3207_p12 = pnand %p3205_p11, %p3202_p10 }
  0x43   :  { %3210 = shalt.err (!%p3207_p12)
}
  0x44   :  { %s3211_s5 = scalar_lea.vmem %s112_s1, 32  ;;  %p3216_p0 = scmp.lt.s32.totalorder %s112_s1, %s112_s1 }
  0x45   :  { %p3212_p13 = scmp.ne.s32.totalorder %s112_s1, %s3211_s5  ;;  %p3217_p1 = scmp.lt.s32.totalorder %s3211_s5, %s3211_s5 }
  0x47   :  { %p3218_p2 = por %p3217_p1, %p3216_p0 }
  0x49   :  { %p3219_p3 = pnand %p3218_p2, %p3212_p13 }
  0x4b   :  { %3222 = shalt.err (!%p3219_p3)
}
  0x4c   :  { %114 = dma.hbm_to_vmem [thread:$0]  %s5150_s7, 32, %s112_s1, [#allocation15]  }
  0x4d   :  { %s3223_s18 = scalar_lea.hbm %s5152_s9, 16 }
  0x4e   :  { %p3224_p4 = scmp.ne.s32.totalorder %s5152_s9, %s3223_s18  ;;  %p3227_p5 = scmp.lt.u32.totalorder %s3223_s18, %s5152_s9 }
  0x50   :  { %p3229_p6 = pnand %p3227_p5, %p3224_p4 }
  0x52   :  { %3232 = shalt.err (!%p3229_p6)
}
  0x53   :  { %s3233_s20 = scalar_lea.vmem %s134_s30, 16  ;;  %s3237_s15 = scalar_lea.vmem %s134_s30, 32 }
  0x54   :  { %p3234_p7 = scmp.ne.s32.totalorder %s134_s30, %s3233_s20  ;;  %p3238_p8 = scmp.lt.s32.totalorder %s134_s30, %s134_s30 }
  0x55   :  { %p3239_p9 = scmp.lt.s32.totalorder %s3237_s15, %s3233_s20 }
  0x57   :  { %p3240_p10 = por %p3239_p9, %p3238_p8 }
  0x59   :  { %p3241_p11 = pnand %p3240_p10, %p3234_p7 }
  0x5b   :  { %3244 = shalt.err (!%p3241_p11)
}
  0x5c   :  { %136 = dma.hbm_to_vmem [thread:$0]  %s5152_s9, 16, %s134_s30, [#allocation18]  }
  0x5d   :  { %s3512_s22 = smov [#allocation20]   ;;  %s3513_s24 = smov [#allocation23]  }
  0x5e   :  { %s155_s23 = sshll.u32 %s3512_s22, 4  ;;  %s177_s5 = sshll.u32 %s3513_s24, 4  ;;  %s156_s23 = int_to_ptr.vmem [resolvable:$true] %s155_s23  ;;  %s178_s5 = int_to_ptr.vmem [resolvable:$true] %s177_s5 }
  0x5f   :  { %s3245_s26 = scalar_lea.hbm %s5154_s11, 16 }
  0x60   :  { %p3246_p12 = scmp.ne.s32.totalorder %s5154_s11, %s3245_s26  ;;  %p3249_p13 = scmp.lt.u32.totalorder %s3245_s26, %s5154_s11 }
  0x62   :  { %p3251_p0 = pnand %p3249_p13, %p3246_p12 }
  0x64   :  { %3254 = shalt.err (!%p3251_p0)
}
  0x65   :  { %s3255_s9 = scalar_lea.vmem %s156_s23, 16  ;;  %s3259_s30 = scalar_lea.vmem %s156_s23, 32 }
  0x66   :  { %p3256_p1 = scmp.ne.s32.totalorder %s156_s23, %s3255_s9  ;;  %p3260_p2 = scmp.lt.s32.totalorder %s156_s23, %s156_s23 }
  0x67   :  { %p3261_p3 = scmp.lt.s32.totalorder %s3259_s30, %s3255_s9 }
  0x69   :  { %p3262_p4 = por %p3261_p3, %p3260_p2 }
  0x6b   :  { %p3263_p5 = pnand %p3262_p4, %p3256_p1 }
  0x6d   :  { %3266 = shalt.err (!%p3263_p5)
}
  0x6e   :  { %158 = dma.hbm_to_vmem [thread:$0]  %s5154_s11, 16, %s156_s23, [#allocation21]  }
  0x6f   :  { %s3267_s7 = scalar_lea.hbm %s5156_s13, 16 }
  0x70   :  { %p3268_p6 = scmp.ne.s32.totalorder %s5156_s13, %s3267_s7  ;;  %p3271_p7 = scmp.lt.u32.totalorder %s3267_s7, %s5156_s13 }
  0x72   :  { %p3273_p8 = pnand %p3271_p7, %p3268_p6 }
  0x74   :  { %3276 = shalt.err (!%p3273_p8)
}
  0x75   :  { %s3277_s25 = scalar_lea.vmem %s178_s5, 16  ;;  %s3281_s26 = scalar_lea.vmem %s178_s5, 32 }
  0x76   :  { %p3278_p9 = scmp.ne.s32.totalorder %s178_s5, %s3277_s25  ;;  %p3282_p10 = scmp.lt.s32.totalorder %s178_s5, %s178_s5 }
  0x77   :  { %p3283_p11 = scmp.lt.s32.totalorder %s3281_s26, %s3277_s25 }
  0x79   :  { %p3284_p12 = por %p3283_p11, %p3282_p10 }
  0x7b   :  { %p3285_p13 = pnand %p3284_p12, %p3278_p9 }
  0x7d   :  { %3288 = shalt.err (!%p3285_p13)
}
  0x7e   :  { %180 = dma.hbm_to_vmem [thread:$0]  %s5156_s13, 16, %s178_s5, [#allocation24]  }
  0x7f   :  { %s3514_s3 = smov [#allocation2]   ;;  %s3515_s27 = smov [#allocation7]  }
  0x80   :  { %s35_s18 = sshll.u32 %s3514_s3, 4  ;;  %s57_s19 = sshll.u32 %s3515_s27, 4  ;;  %s36_s18 = int_to_ptr.vmem [resolvable:$true] %s35_s18  ;;  %s58_s19 = int_to_ptr.vmem [resolvable:$true] %s57_s19 }
  0x81   :  { %s3289_s16 = scalar_lea.hbm %s5143_s0, 128 }
  0x82   :  { %p3290_p0 = scmp.ne.s32.totalorder %s5143_s0, %s3289_s16  ;;  %p3293_p1 = scmp.lt.u32.totalorder %s3289_s16, %s5143_s0 }
  0x84   :  { %p3295_p2 = pnand %p3293_p1, %p3290_p0 }
  0x86   :  { %3298 = shalt.err (!%p3295_p2)
}
  0x87   :  { %s3299_s13 = scalar_lea.vmem %s36_s18, 128  ;;  %p3304_p4 = scmp.lt.s32.totalorder %s36_s18, %s36_s18 }
  0x88   :  { %p3300_p3 = scmp.ne.s32.totalorder %s36_s18, %s3299_s13  ;;  %p3305_p5 = scmp.lt.s32.totalorder %s3299_s13, %s3299_s13 }
  0x8a   :  { %p3306_p6 = por %p3305_p5, %p3304_p4 }
  0x8c   :  { %p3307_p7 = pnand %p3306_p6, %p3300_p3 }
  0x8e   :  { %3310 = shalt.err (!%p3307_p7)
}
  0x8f   :  { %38 = dma.hbm_to_vmem [thread:$0]  %s5143_s0, 128, %s36_s18, [#allocation3]  }
  0x90   :  { %s3311_s21 = scalar_lea.hbm %s5145_s2, 64 }
  0x91   :  { %p3312_p8 = scmp.ne.s32.totalorder %s5145_s2, %s3311_s21  ;;  %p3315_p9 = scmp.lt.u32.totalorder %s3311_s21, %s5145_s2 }
  0x93   :  { %p3317_p10 = pnand %p3315_p9, %p3312_p8 }
  0x95   :  { %3320 = shalt.err (!%p3317_p10)
}
  0x96   :  { %s3321_s3 = scalar_lea.vmem %s58_s19, 64  ;;  %p3326_p12 = scmp.lt.s32.totalorder %s58_s19, %s58_s19 }
  0x97   :  { %p3322_p11 = scmp.ne.s32.totalorder %s58_s19, %s3321_s3  ;;  %p3327_p13 = scmp.lt.s32.totalorder %s3321_s3, %s3321_s3 }
  0x99   :  { %p3328_p0 = por %p3327_p13, %p3326_p12 }
  0x9b   :  { %p3329_p1 = pnand %p3328_p0, %p3322_p11 }
  0x9d   :  { %3332 = shalt.err (!%p3329_p1)
}
  0x9e   :  { %60 = dma.hbm_to_vmem [thread:$0]  %s5145_s2, 64, %s58_s19, [#allocation6]  }
  0x9f   :  { %s3516_s27 = smov [#allocation10]   ;;  %s3517_s30 = smov [#allocation13]  }
  0xa0   :  { %s76_s9 = sshll.u32 %s3516_s27, 4  ;;  %s98_s16 = sshll.u32 %s3517_s30, 4  ;;  %s77_s9 = int_to_ptr.vmem [resolvable:$true] %s76_s9  ;;  %s99_s16 = int_to_ptr.vmem [resolvable:$true] %s98_s16 }
  0xa1   :  { %s3333_s15 = scalar_lea.hbm %s5147_s4, 256 }
  0xa2   :  { %p3334_p2 = scmp.ne.s32.totalorder %s5147_s4, %s3333_s15  ;;  %p3337_p3 = scmp.lt.u32.totalorder %s3333_s15, %s5147_s4 }
  0xa4   :  { %p3339_p4 = pnand %p3337_p3, %p3334_p2 }
  0xa6   :  { %3342 = shalt.err (!%p3339_p4)
}
  0xa7   :  { %s3343_s2 = scalar_lea.vmem %s77_s9, 256  ;;  %p3348_p6 = scmp.lt.s32.totalorder %s77_s9, %s77_s9 }
  0xa8   :  { %p3344_p5 = scmp.ne.s32.totalorder %s77_s9, %s3343_s2  ;;  %p3349_p7 = scmp.lt.s32.totalorder %s3343_s2, %s3343_s2 }
  0xaa   :  { %p3350_p8 = por %p3349_p7, %p3348_p6 }
  0xac   :  { %p3351_p9 = pnand %p3350_p8, %p3344_p5 }
  0xae   :  { %3354 = shalt.err (!%p3351_p9)
}
  0xaf   :  { %82 = dma.hbm_to_vmem [thread:$0]  %s5147_s4, 256, %s77_s9, [#allocation9], %s3506_s28, %s3506_s28, %s3507_s29  }
  0xb0   :  { %s3355_s25 = scalar_lea.hbm %s5149_s6, 768 }
  0xb1   :  { %p3356_p10 = scmp.ne.s32.totalorder %s5149_s6, %s3355_s25  ;;  %p3359_p11 = scmp.lt.u32.totalorder %s3355_s25, %s5149_s6 }
  0xb3   :  { %p3361_p12 = pnand %p3359_p11, %p3356_p10 }
  0xb5   :  { %3364 = shalt.err (!%p3361_p12)
}
  0xb6   :  { %s3365_s0 = scalar_lea.vmem %s99_s16, 768  ;;  %p3370_p0 = scmp.lt.s32.totalorder %s99_s16, %s99_s16 }
  0xb7   :  { %p3366_p13 = scmp.ne.s32.totalorder %s99_s16, %s3365_s0  ;;  %p3371_p1 = scmp.lt.s32.totalorder %s3365_s0, %s3365_s0 }
  0xb9   :  { %p3372_p2 = por %p3371_p1, %p3370_p0 }
  0xbb   :  { %p3373_p3 = pnand %p3372_p2, %p3366_p13 }
  0xbd   :  { %3376 = shalt.err (!%p3373_p3)
}
  0xbe   :  { %s3518_s4 = smov 128   ;;  %s3519_s18 = smov 8  }
  0xbf   :  { %104 = dma.hbm_to_vmem [thread:$0]  %s5149_s6, 768, %s99_s16, [#allocation12], %s3518_s4, %s3518_s4, %s3519_s18  }
  0xc0   :  { %s3520_s30 = smov [#allocation16]   ;;  %s3521_s20 = smov [#allocation19]  }
  0xc1   :  { %s120_s17 = sshll.u32 %s3520_s30, 4  ;;  %s142_s15 = sshll.u32 %s3521_s20, 4  ;;  %s121_s17 = int_to_ptr.vmem [resolvable:$true] %s120_s17  ;;  %s143_s15 = int_to_ptr.vmem [resolvable:$true] %s142_s15 }
  0xc2   :  { %s3377_s5 = scalar_lea.hbm %s5151_s8, 256 }
  0xc3   :  { %p3378_p4 = scmp.ne.s32.totalorder %s5151_s8, %s3377_s5  ;;  %p3381_p5 = scmp.lt.u32.totalorder %s3377_s5, %s5151_s8 }
  0xc5   :  { %p3383_p6 = pnand %p3381_p5, %p3378_p4 }
  0xc7   :  { %3386 = shalt.err (!%p3383_p6)
}
  0xc8   :  { %s3387_s6 = scalar_lea.vmem %s121_s17, 256  ;;  %p3392_p8 = scmp.lt.s32.totalorder %s121_s17, %s121_s17 }
  0xc9   :  { %p3388_p7 = scmp.ne.s32.totalorder %s121_s17, %s3387_s6  ;;  %p3393_p9 = scmp.lt.s32.totalorder %s3387_s6, %s3387_s6 }
  0xcb   :  { %p3394_p10 = por %p3393_p9, %p3392_p8 }
  0xcd   :  { %p3395_p11 = pnand %p3394_p10, %p3388_p7 }
  0xcf   :  { %3398 = shalt.err (!%p3395_p11)
}
  0xd0   :  { %126 = dma.hbm_to_vmem [thread:$0]  %s5151_s8, 256, %s121_s17, [#allocation15], %s3506_s28, %s3506_s28, %s3507_s29  }
  0xd1   :  { %s3399_s26 = scalar_lea.hbm %s5153_s10, 256 }
  0xd2   :  { %p3400_p12 = scmp.ne.s32.totalorder %s5153_s10, %s3399_s26  ;;  %p3403_p13 = scmp.lt.u32.totalorder %s3399_s26, %s5153_s10 }
  0xd4   :  { %p3405_p0 = pnand %p3403_p13, %p3400_p12 }
  0xd6   :  { %3408 = shalt.err (!%p3405_p0)
}
  0xd7   :  { %s3409_s27 = scalar_lea.vmem %s143_s15, 256  ;;  %p3414_p2 = scmp.lt.s32.totalorder %s143_s15, %s143_s15 }
  0xd8   :  { %p3410_p1 = scmp.ne.s32.totalorder %s143_s15, %s3409_s27  ;;  %p3415_p3 = scmp.lt.s32.totalorder %s3409_s27, %s3409_s27 }
  0xda   :  { %p3416_p4 = por %p3415_p3, %p3414_p2 }
  0xdc   :  { %p3417_p5 = pnand %p3416_p4, %p3410_p1 }
  0xde   :  { %3420 = shalt.err (!%p3417_p5)
}
  0xdf   :  { %148 = dma.hbm_to_vmem [thread:$0]  %s5153_s10, 256, %s143_s15, [#allocation18], %s3506_s28, %s3506_s28, %s3507_s29  }
  0xe0   :  { %s3522_s30 = smov [#allocation22]   ;;  %s3523_s20 = smov [#allocation25]  }
  0xe1   :  { %s164_s17 = sshll.u32 %s3522_s30, 4  ;;  %s186_s7 = sshll.u32 %s3523_s20, 4  ;;  %s165_s17 = int_to_ptr.vmem [resolvable:$true] %s164_s17  ;;  %s187_s7 = int_to_ptr.vmem [resolvable:$true] %s186_s7 }
  0xe2   :  { %s3421_s1 = scalar_lea.hbm %s5155_s12, 512 }
  0xe3   :  { %p3422_p6 = scmp.ne.s32.totalorder %s5155_s12, %s3421_s1  ;;  %p3425_p7 = scmp.lt.u32.totalorder %s3421_s1, %s5155_s12 }
  0xe5   :  { %p3427_p8 = pnand %p3425_p7, %p3422_p6 }
  0xe7   :  { %3430 = shalt.err (!%p3427_p8)
}
  0xe8   :  { %s3431_s10 = scalar_lea.vmem %s165_s17, 512  ;;  %p3436_p10 = scmp.lt.s32.totalorder %s165_s17, %s165_s17 }
  0xe9   :  { %p3432_p9 = scmp.ne.s32.totalorder %s165_s17, %s3431_s10  ;;  %p3437_p11 = scmp.lt.s32.totalorder %s3431_s10, %s3431_s10 }
  0xeb   :  { %p3438_p12 = por %p3437_p11, %p3436_p10 }
  0xed   :  { %p3439_p13 = pnand %p3438_p12, %p3432_p9 }
  0xef   :  { %3442 = shalt.err (!%p3439_p13)
}
  0xf0   :  { %170 = dma.hbm_to_vmem [thread:$0]  %s5155_s12, 512, %s165_s17, [#allocation21], %s3506_s28, %s3506_s28, %s3507_s29  }
  0xf1   :  { %s3443_s25 = scalar_lea.hbm %s5157_s14, 512 }
  0xf2   :  { %p3444_p0 = scmp.ne.s32.totalorder %s5157_s14, %s3443_s25  ;;  %p3447_p1 = scmp.lt.u32.totalorder %s3443_s25, %s5157_s14 }
  0xf4   :  { %p3449_p2 = pnand %p3447_p1, %p3444_p0 }
  0xf6   :  { %3452 = shalt.err (!%p3449_p2)
}
  0xf7   :  { %s3453_s0 = scalar_lea.vmem %s187_s7, 512  ;;  %p3458_p4 = scmp.lt.s32.totalorder %s187_s7, %s187_s7 }
  0xf8   :  { %p3454_p3 = scmp.ne.s32.totalorder %s187_s7, %s3453_s0  ;;  %p3459_p5 = scmp.lt.s32.totalorder %s3453_s0, %s3453_s0 }
  0xfa   :  { %p3460_p6 = por %p3459_p5, %p3458_p4 }
  0xfc   :  { %p3461_p7 = pnand %p3460_p6, %p3454_p3 }
  0xfe   :  { %3464 = shalt.err (!%p3461_p7)
}
  0xff   :  { %192 = dma.hbm_to_vmem [thread:$0]  %s5157_s14, 512, %s187_s7, [#allocation24], %s3518_s4, %s3518_s4, %s3519_s18  }
 0x100   :  { %3487 = dma.done.wait [#allocation3], 128  }
 0x101   :  { %3488 = vsyncadd [#allocation3], 4294967168 }
 0x102   :  { %3489 = dma.done.wait [#allocation6], 2624  }
 0x103   :  { %3490 = vsyncadd [#allocation6], 4294964672 }
 0x104   :  { %3491 = dma.done.wait [#allocation9], 320  }
 0x105   :  { %3492 = vsyncadd [#allocation9], 4294966976 }
 0x106   :  { %3493 = dma.done.wait [#allocation12], 784  }
 0x107   :  { %3494 = vsyncadd [#allocation12], 4294966512 }
 0x108   :  { %3495 = dma.done.wait [#allocation15], 288  }
 0x109   :  { %3496 = vsyncadd [#allocation15], 4294967008 }
 0x10a   :  { %3497 = dma.done.wait [#allocation18], 272  }
 0x10b   :  { %3498 = vsyncadd [#allocation18], 4294967024 }
 0x10c   :  { %3499 = dma.done.wait [#allocation21], 528  }
 0x10d   :  { %3500 = vsyncadd [#allocation21], 4294966768 }
 0x10e   :  { %3501 = dma.done.wait [#allocation24], 528  }
 0x10f   :  { %3502 = vsyncadd [#allocation24], 4294966768  ;;  %vm242_vm0 = vcmask 261120   ;;  %v239_v0 = vld [vmem:[#allocation2] sm:$0xff]  ;;  %v3818_v5 = vld [vmem:[#allocation13 + $0x10] ss:$8 sps:$4 sm:$0xff]   ;;  %v390_v28 = vlaneseq }
 0x110   :  { %v243_v1 = vsel %vm242_vm0, %v239_v0, 0.0  ;;  %v2993_v2 = vld [vmem:[#allocation13 + $0x4] ss:$8 sps:$4 sm:$0xff]   ;;  %v3813_v3 = vld [vmem:[#allocation13] ss:$8 sps:$4 sm:$0xff]   ;;  %v3524_v8 = vmov 0  }
 0x111   :  { %244 = vadd.xlane.f32.xlu0 %v243_v1  ;;  %2961 = vmatprep.subr.bf16.mxu1 %v2993_v2  ;;  %v3816_v4 = vld [vmem:[#allocation13 + $0x14] ss:$8 sps:$4 sm:$0xff]   ;;  %v3822_v6 = vld [vmem:[#allocation13 + $0x24] ss:$8 sps:$4 sm:$0xff]   ;;  %v3824_v7 = vld [vmem:[#allocation13 + $0x20] ss:$8 sps:$4 sm:$0xff]  }
 0x112   :  { %2964 = vmatpush1.bf16.msra.mxu1 %v3813_v3  ;;  %643 = vmatprep.mubr.bf16.mxu1 %v3524_v8  ;;  %v3002_v9 = vld [vmem:[#allocation5 + $0x10] sm:$0xff]   ;;  %vm530_vm1 = vcmask 392192   ;;  %v3003_v10 = vld [vmem:[#allocation5 + $0x18] sm:$0xff]   ;;  %v3004_v11 = vld [vmem:[#allocation5 + $0x20] sm:$0xff]   ;;  %v5160_v22 = vmov 0.0   ;;  %vm3526_vm2 = vmmov 0  }
 0x113   :  { %2962 = vmatprep.subr.bf16.mxu1 %v3816_v4  ;;  %v3005_v12 = vld [vmem:[#allocation5 + $0x28] sm:$0xff]   ;;  %v3006_v13 = vld [vmem:[#allocation5 + $0x30] sm:$0xff]   ;;  %v3007_v14 = vld [vmem:[#allocation5 + $0x38] sm:$0xff]   ;;  %2849 = vmatprep.subr.bf16.mxu0 %v5160_v22  ;;  %v3860_v30 = vshrl.u32 %v390_v28, 7  ;;  %s3527_s14 = smov 96   ;;  %vm2402_vm4 = vcmask 1041409  }
 0x114   :  { %v3008_v20 = vld [vmem:[#allocation10] sm:$0xff]   ;;  %v3010_v21 = vld [vmem:[#allocation5 + $0x40] sm:$0xff]   ;;  %2853 = vmatprep.mubr.msk.bf16.mxu0 %vm3526_vm2, %v5160_v22  ;;  %v3009_v23 = vld [vmem:[#allocation10 + $0x8] sm:$0xff]   ;;  %vm2404_vm5 = vcmask 1042434   ;;  %vm2406_vm6 = vcmask 1043459   ;;  %vm2408_vm7 = vcmask 1044484  }
 0x115   :  { %2850 = vmatpush3.bf16.msra.mxu0 %v3008_v20  ;;  %v3011_v24 = vld [vmem:[#allocation5 + $0x48] sm:$0xff]   ;;  %v3013_v25 = vld [vmem:[#allocation5 + $0x50] sm:$0xff]   ;;  %v3015_v26 = vld [vmem:[#allocation5 + $0x58] sm:$0xff]   ;;  %5168 = vst [vmem:[#allocation36_spill] sm:$0xff] %v3860_v30  ;;  %v3864_v31 = vsub.s32 0, %v3860_v30  ;;  %v396_v33 = vsub.s32 1, %v3860_v30 }
 0x116   :  { %2965 = vmatpush1.bf16.msra.mxu1 %v3818_v5  ;;  %2851 = vmatprep.subr.bf16.mxu0 %v5160_v22  ;;  %v3016_v27 = vld [vmem:[#allocation5 + $0x60] sm:$0xff]   ;;  %v3017_v29 = vld [vmem:[#allocation5 + $0x68] sm:$0xff]   ;;  %v3018_v35 = vld [vmem:[#allocation5 + $0x70] sm:$0xff]   ;;  %vm2410_vm8 = vcmask 1045509   ;;  %vm2412_vm9 = vcmask 1046534   ;;  %vm2414_vm10 = vcmask 1047559  }
 0x117   :  { %2963 = vmatprep.subr.bf16.mxu1 %v3822_v6  ;;  %v388_v32 = vld [vmem:[#allocation14] sm:$0x3]  ;;  %v3019_v45 = vld [vmem:[#allocation5 + $0x78] sm:$0xff]   ;;  %v3020_v54 = vld [vmem:[#allocation5 + $0x80] sm:$0xff]   ;;  %vm2607_vm11 = vcmask 523264  }
 0x118   :  { %v3869_v34 = vrot.slane %v388_v32, %v3864_v31  ;;  %v3871_v36 = vrot.slane %v388_v32, %v396_v33  ;;  %v3021_v63 = vld [vmem:[#allocation5 + $0x88] sm:$0xff]  }
 0x119   :  { %2852 = vmatpush3.bf16.msra.mxu0 %v3009_v23 }
 0x11a   :  { %2966 = vmatpush1.bf16.msra.mxu1 %v3824_v7  ;;  %591 = vmatprep.subr.bf16.mxu0 %v2993_v2 }
 0x11d   :  { %2717 = vmatmul.mubr.msk.bf16.vlgmr.msra.gmra.mrb[0].mxu1 %vm530_vm1, %v3002_v9 }
 0x11e   :  { %653 = vmatprep.mubr.bf16.mxu1 %v3524_v8 }
 0x125   :  { %2718 = vmatmul.mubr.msk.bf16.gmra.mrb[4].mxu1 %vm530_vm1, %v3003_v10 }
 0x126   :  { %663 = vmatprep.mubr.bf16.mxu1 %v3524_v8 }
 0x12d   :  { %2719 = vmatmul.mubr.msk.bf16.gmra.mrb[8].mxu1 %vm530_vm1, %v3004_v11 }
 0x12e   :  { %673 = vmatprep.mubr.bf16.mxu1 %v3524_v8 }
 0x135   :  { %2720 = vmatmul.mubr.msk.bf16.gmra.mrb[12].mxu1 %vm530_vm1, %v3005_v12 }
 0x136   :  { %683 = vmatprep.mubr.bf16.mxu1 %v3524_v8 }
 0x13d   :  { %2721 = vmatmul.mubr.msk.bf16.gmra.mrb[16].mxu1 %vm530_vm1, %v3006_v13 }
 0x13e   :  { %693 = vmatprep.mubr.bf16.mxu1 %v3524_v8 }
 0x145   :  { %2722 = vmatmul.mubr.msk.bf16.gmra.mrb[20].mxu1 %vm530_vm1, %v3007_v14  ;;  %v3022_v14 = vld [vmem:[#allocation5 + $0x90] sm:$0xff]  }
 0x146   :  { %703 = vmatprep.mubr.bf16.mxu1 %v3524_v8 }
 0x14d   :  { %2723 = vmatmul.mubr.msk.bf16.gmra.mrb[24].mxu1 %vm530_vm1, %v3010_v21 }
 0x14e   :  { %713 = vmatprep.mubr.bf16.mxu1 %v3524_v8 }
 0x155   :  { %2724 = vmatmul.mubr.msk.bf16.gmra.mrb[28].mxu1 %vm530_vm1, %v3011_v24 }
 0x156   :  { %723 = vmatprep.mubr.bf16.mxu1 %v3524_v8 }
 0x15d   :  { %2725 = vmatmul.mubr.msk.bf16.gmra.mrb[32].mxu1 %vm530_vm1, %v3013_v25  ;;  %v3023_v25 = vld [vmem:[#allocation5 + $0x98] sm:$0xff]  }
 0x15e   :  { %733 = vmatprep.mubr.bf16.mxu1 %v3524_v8 }
 0x165   :  { %2726 = vmatmul.mubr.msk.bf16.gmra.mrb[36].mxu1 %vm530_vm1, %v3015_v26 }
 0x166   :  { %743 = vmatprep.mubr.bf16.mxu1 %v3524_v8 }
 0x16d   :  { %2727 = vmatmul.mubr.msk.bf16.gmra.mrb[40].mxu1 %vm530_vm1, %v3016_v27 }
 0x16e   :  { %753 = vmatprep.mubr.bf16.mxu1 %v3524_v8 }
 0x175   :  { %2728 = vmatmul.mubr.msk.bf16.gmra.mrb[44].mxu1 %vm530_vm1, %v3017_v29 }
 0x176   :  { %763 = vmatprep.mubr.bf16.mxu1 %v3524_v8 }
 0x17d   :  { %2729 = vmatmul.mubr.msk.bf16.gmra.mrb[48].mxu1 %vm530_vm1, %v3018_v35 }
 0x17e   :  { %773 = vmatprep.mubr.bf16.mxu1 %v3524_v8 }
 0x185   :  { %2730 = vmatmul.mubr.msk.bf16.gmra.mrb[52].mxu1 %vm530_vm1, %v3019_v45  ;;  %v2683_v45 = vld [vmem:[#allocation8] ss:$0 sm:$0xff] }
 0x186   :  { %783 = vmatprep.mubr.bf16.mxu1 %v3524_v8 }
 0x18d   :  { %2731 = vmatmul.mubr.msk.bf16.gmra.mrb[56].mxu1 %vm530_vm1, %v3020_v54 }
 0x18e   :  { %793 = vmatprep.mubr.bf16.mxu1 %v3524_v8 }
 0x195   :  { %2732 = vmatmul.mubr.msk.bf16.gmra.mrb[60].mxu1 %vm530_vm1, %v3021_v63 }
 0x196   :  { %803 = vmatprep.mubr.bf16.mxu1 %v3524_v8 }
 0x19d   :  { %2733 = vmatmul.mubr.msk.bf16.gmra.mrb[64].mxu1 %vm530_vm1, %v3022_v14 }
 0x19e   :  { %v245_v15 = vpop.xlane.xlu0 %244  ;;  %813 = vmatprep.mubr.bf16.mxu1 %v3524_v8 }
 0x19f   :  { %v247_v16 = vmul.f32 0.03125, %v245_v15 }
 0x1a1   :  { %v3841_v17 = vsub.f32 %v239_v0, %v247_v16 }
 0x1a3   :  { %v249_v18 = vmul.f32 %v3841_v17, %v3841_v17 }
 0x1a5   :  { %v250_v19 = vsel %vm242_vm0, %v249_v18, 0.0  ;;  %2734 = vmatmul.mubr.msk.bf16.gmra.mrb[68].mxu1 %vm530_vm1, %v3023_v25 }
 0x1a6   :  { %251 = vadd.xlane.f32.xlu0 %v250_v19 }
 0x1f0   :  { %v645_v37 = vpop.f32.mrb[0].mxu1 }
 0x1f1   :  { %v3874_v38 = vadd.f32 %v645_v37, %v3869_v34  ;;  %v647_v39 = vpop.f32.mrb[1].mxu1 }
 0x1f2   :  { %v3878_v40 = vadd.f32 %v647_v39, %v3871_v36  ;;  %v649_v41 = vpop.f32.mrb[2].mxu1 }
 0x1f3   :  { %872 = vrot.lane.b32.xlu1 %v3874_v38, %s3506_s28  ;;  %v3884_v42 = vadd.f32 %v649_v41, %v3869_v34  ;;  %v651_v43 = vpop.f32.mrb[3].mxu1 }
 0x1f4   :  { %5169 = vst [vmem:[#allocation37_spill] sm:$0xff] %v3878_v40  ;;  %v3887_v44 = vadd.f32 %v651_v43, %v3871_v36 }
 0x1f6   :  { %5170 = vst [vmem:[#allocation38_spill] sm:$0xff] %v3887_v44 }
 0x1f7   :  { %874 = vrot.lane.b32.xlu1 %v3884_v42, %s3506_s28 }
 0x1f8   :  { %v655_v46 = vpop.f32.mrb[4].mxu1 }
 0x1f9   :  { %v3892_v47 = vadd.f32 %v655_v46, %v3869_v34  ;;  %v657_v48 = vpop.f32.mrb[5].mxu1 }
 0x1fa   :  { %v3896_v49 = vadd.f32 %v657_v48, %v3871_v36  ;;  %v659_v50 = vpop.f32.mrb[6].mxu1  ;;  %v2684_v48 = vld [vmem:[#allocation8 + $0x1] ss:$0 sm:$0xff] }
 0x1fb   :  { %876 = vrot.lane.b32.xlu1 %v3892_v47, %s3506_s28  ;;  %v3902_v51 = vadd.f32 %v659_v50, %v3869_v34  ;;  %v661_v52 = vpop.f32.mrb[7].mxu1 }
 0x1fc   :  { %5171 = vst [vmem:[#allocation39_spill] sm:$0xff] %v3896_v49  ;;  %v3905_v53 = vadd.f32 %v661_v52, %v3871_v36 }
 0x1fe   :  { %5172 = vst [vmem:[#allocation40_spill] sm:$0xff] %v3905_v53 }
 0x1ff   :  { %878 = vrot.lane.b32.xlu1 %v3902_v51, %s3506_s28 }
 0x200   :  { %v665_v55 = vpop.f32.mrb[8].mxu1 }
 0x201   :  { %v3911_v56 = vadd.f32 %v665_v55, %v3869_v34  ;;  %v667_v57 = vpop.f32.mrb[9].mxu1  ;;  %v3012_v55 = vld [vmem:[#allocation5] sm:$0xff]  }
 0x202   :  { %v3914_v58 = vadd.f32 %v667_v57, %v3871_v36  ;;  %v669_v59 = vpop.f32.mrb[10].mxu1 }
 0x203   :  { %v3918_v60 = vadd.f32 %v669_v59, %v3869_v34  ;;  %880 = vrot.lane.b32.xlu1 %v3911_v56, %s3506_s28  ;;  %v671_v61 = vpop.f32.mrb[11].mxu1 }
 0x204   :  { %5173 = vst [vmem:[#allocation41_spill] sm:$0xff] %v3914_v58  ;;  %v3923_v62 = vadd.f32 %v671_v61, %v3871_v36 }
 0x205   :  { %882 = vrot.lane.b32.xlu0 %v3918_v60, %s3506_s28 }
 0x206   :  { %5174 = vst [vmem:[#allocation42_spill] sm:$0xff] %v3923_v62 }
 0x208   :  { %v675_v0 = vpop.f32.mrb[12].mxu1 }
 0x209   :  { %v3929_v1 = vadd.f32 %v675_v0, %v3869_v34  ;;  %v677_v2 = vpop.f32.mrb[13].mxu1 }
 0x20a   :  { %v3932_v9 = vadd.f32 %v677_v2, %v3871_v36  ;;  %v679_v10 = vpop.f32.mrb[14].mxu1 }
 0x20b   :  { %v3936_v11 = vadd.f32 %v679_v10, %v3869_v34  ;;  %884 = vrot.lane.b32.xlu1 %v3929_v1, %s3506_s28  ;;  %v681_v12 = vpop.f32.mrb[15].mxu1 }
 0x20c   :  { %5175 = vst [vmem:[#allocation43_spill] sm:$0xff] %v3932_v9  ;;  %v3941_v13 = vadd.f32 %v681_v12, %v3871_v36 }
 0x20d   :  { %886 = vrot.lane.b32.xlu0 %v3936_v11, %s3506_s28 }
 0x20e   :  { %5176 = vst [vmem:[#allocation44_spill] sm:$0xff] %v3941_v13 }
 0x210   :  { %v685_v15 = vpop.f32.mrb[16].mxu1 }
 0x211   :  { %v3947_v16 = vadd.f32 %v685_v15, %v3869_v34  ;;  %v687_v18 = vpop.f32.mrb[17].mxu1 }
 0x212   :  { %v3950_v19 = vadd.f32 %v687_v18, %v3871_v36  ;;  %v689_v20 = vpop.f32.mrb[18].mxu1 }
 0x213   :  { %v3954_v21 = vadd.f32 %v689_v20, %v3869_v34  ;;  %888 = vrot.lane.b32.xlu1 %v3947_v16, %s3506_s28  ;;  %v691_v23 = vpop.f32.mrb[19].mxu1 }
 0x214   :  { %5177 = vst [vmem:[#allocation45_spill] sm:$0xff] %v3950_v19  ;;  %v3959_v24 = vadd.f32 %v691_v23, %v3871_v36 }
 0x215   :  { %890 = vrot.lane.b32.xlu0 %v3954_v21, %s3506_s28 }
 0x216   :  { %5178 = vst [vmem:[#allocation46_spill] sm:$0xff] %v3959_v24 }
 0x218   :  { %v695_v26 = vpop.f32.mrb[20].mxu1 }
 0x219   :  { %v3965_v27 = vadd.f32 %v695_v26, %v3869_v34  ;;  %v697_v28 = vpop.f32.mrb[21].mxu1 }
 0x21a   :  { %v3968_v29 = vadd.f32 %v697_v28, %v3871_v36  ;;  %v3970_v32 = vpop.f32.mrb[22].mxu1 }
 0x21b   :  { %892 = vrot.lane.b32.xlu1 %v3965_v27, %s3506_s28  ;;  %v701_v33 = vpop.f32.mrb[23].mxu1 }
 0x21c   :  { %5179 = vst [vmem:[#allocation47_spill] sm:$0xff] %v3968_v29  ;;  %v3975_v35 = vadd.f32 %v701_v33, %v3871_v36  ;;  %v4140_v29 = vadd.f32 %v3970_v32, %v3869_v34 }
 0x21e   :  { %5180 = vst [vmem:[#allocation48_spill] sm:$0xff] %v3975_v35 }
 0x220   :  { %v3988_v57 = vpop.f32.mrb[24].mxu1 }
 0x233   :  { %v252_v37 = vpop.xlane.xlu0 %251 }
 0x234   :  { %v253_v39 = vmul.f32 0.03125, %v252_v37 }
 0x236   :  { %v254_v41 = vadd.f32 1e-05, %v253_v39 }
 0x238   :  { %3032 = vrsqrt.f32 %v254_v41 }
 0x242   :  { %v3033_v43 = vpop.eup %3032 }
 0x243   :  { %v256_v46 = vmul.f32 %v3033_v43, %v3841_v17  ;;  %v3014_v17 = vld [vmem:[#allocation5 + $0x8] sm:$0xff]  }
 0x245   :  { %v261_v50 = vmul.f32 %v2683_v45, %v256_v46 }
 0x247   :  { %v266_v52 = vadd.f32 %v2684_v48, %v261_v50 }
 0x249   :  { %v267_v54 = vpack.c.bf16 %v266_v52, %v266_v52 }
 0x24b   :  { %2854 = vmatmul.mubr.msk.bf16.vlgmr.msra.gmra.mrb[0].mxu0 %vm242_vm0, %v267_v54 }
 0x24c   :  { %592 = vmatpush1.bf16.msra.mxu0 %v3813_v3  ;;  %623 = vmatprep.mubr.bf16.mxu0 %v3524_v8  ;;  %v707_v3 = vpop.f32.mrb[25].mxu1 }
 0x24d   :  { %593 = vmatprep.subr.bf16.mxu0 %v3816_v4  ;;  %v3991_v59 = vadd.f32 %v707_v3, %v3871_v36  ;;  %v3993_v4 = vpop.f32.mrb[26].mxu1 }
 0x24f   :  { %5181 = vst [vmem:[#allocation49_spill] sm:$0xff] %v3991_v59 }
 0x250   :  { %594 = vmatpush1.bf16.msra.mxu0 %v3818_v5  ;;  %v711_v5 = vpop.f32.mrb[27].mxu1 }
 0x251   :  { %595 = vmatprep.subr.bf16.mxu0 %v3822_v6  ;;  %v3996_v6 = vadd.f32 %v711_v5, %v3871_v36 }
 0x253   :  { %5182 = vst [vmem:[#allocation50_spill] sm:$0xff] %v3996_v6 }
 0x254   :  { %596 = vmatpush1.bf16.msra.mxu0 %v3824_v7  ;;  %v3998_v7 = vpop.f32.mrb[28].mxu1 }
 0x255   :  { %v717_v61 = vpop.f32.mrb[29].mxu1 }
 0x256   :  { %v4003_v63 = vpop.f32.mrb[30].mxu1 }
 0x257   :  { %2715 = vmatmul.mubr.msk.bf16.vlgmr.msra.gmra.mrb[4].mxu0 %vm530_vm1, %v3012_v55  ;;  %v721_v0 = vpop.f32.mrb[31].mxu1  ;;  %v4164_v32 = vadd.f32 %v4003_v63, %v3869_v34 }
 0x258   :  { %633 = vmatprep.mubr.bf16.mxu0 %v3524_v8  ;;  %v4001_v8 = vadd.f32 %v717_v61, %v3871_v36  ;;  %v4006_v2 = vadd.f32 %v721_v0, %v3871_v36  ;;  %v4008_v10 = vpop.f32.mrb[32].mxu1 }
 0x259   :  { %v727_v12 = vpop.f32.mrb[33].mxu1 }
 0x25a   :  { %5183 = vst [vmem:[#allocation51_spill] sm:$0xff] %v4001_v8  ;;  %5184 = vst [vmem:[#allocation52_spill] sm:$0xff] %v4006_v2  ;;  %v4011_v14 = vadd.f32 %v727_v12, %v3871_v36  ;;  %v4013_v15 = vpop.f32.mrb[34].mxu1 }
 0x25b   :  { %v731_v18 = vpop.f32.mrb[35].mxu1 }
 0x25c   :  { %5185 = vst [vmem:[#allocation53_spill] sm:$0xff] %v4011_v14  ;;  %v4016_v20 = vadd.f32 %v731_v18, %v3871_v36  ;;  %v4018_v23 = vpop.f32.mrb[36].mxu1 }
 0x25d   :  { %v737_v25 = vpop.f32.mrb[37].mxu1 }
 0x25e   :  { %5186 = vst [vmem:[#allocation54_spill] sm:$0xff] %v4016_v20  ;;  %v4021_v26 = vadd.f32 %v737_v25, %v3871_v36  ;;  %v4023_v28 = vpop.f32.mrb[38].mxu1 }
 0x25f   :  { %2716 = vmatmul.mubr.msk.bf16.gmra.mrb[8].mxu0 %vm530_vm1, %v3014_v17  ;;  %v741_v33 = vpop.f32.mrb[39].mxu1  ;;  %v4188_v63 = vadd.f32 %v4023_v28, %v3869_v34 }
 0x260   :  { %5187 = vst [vmem:[#allocation55_spill] sm:$0xff] %v4021_v26  ;;  %v4026_v37 = vadd.f32 %v741_v33, %v3871_v36  ;;  %v4028_v39 = vpop.f32.mrb[40].mxu1 }
 0x261   :  { %v747_v41 = vpop.f32.mrb[41].mxu1 }
 0x262   :  { %5188 = vst [vmem:[#allocation56_spill] sm:$0xff] %v4026_v37  ;;  %v4031_v43 = vadd.f32 %v747_v41, %v3871_v36  ;;  %v4033_v45 = vpop.f32.mrb[42].mxu1 }
 0x263   :  { %v751_v46 = vpop.f32.mrb[43].mxu1 }
 0x264   :  { %5189 = vst [vmem:[#allocation57_spill] sm:$0xff] %v4031_v43  ;;  %v4036_v48 = vadd.f32 %v751_v46, %v3871_v36  ;;  %v4038_v50 = vpop.f32.mrb[44].mxu1 }
 0x265   :  { %v757_v52 = vpop.f32.mrb[45].mxu1  ;;  %v4206_v24 = vadd.f32 %v4038_v50, %v3869_v34  ;;  %v873_v50 = vpop.permute.xlu1 %872 }
 0x266   :  { %5190 = vst [vmem:[#allocation58_spill] sm:$0xff] %v4036_v48  ;;  %v4041_v54 = vadd.f32 %v757_v52, %v3871_v36  ;;  %v4043_v55 = vpop.f32.mrb[46].mxu1 }
 0x267   :  { %v761_v17 = vpop.f32.mrb[47].mxu1 }
 0x268   :  { %5191 = vst [vmem:[#allocation59_spill] sm:$0xff] %v4041_v54  ;;  %v4046_v3 = vadd.f32 %v761_v17, %v3871_v36  ;;  %v4048_v5 = vpop.f32.mrb[48].mxu1 }
 0x269   :  { %v767_v61 = vpop.f32.mrb[49].mxu1 }
 0x26a   :  { %5192 = vst [vmem:[#allocation60_spill] sm:$0xff] %v4046_v3  ;;  %v4051_v0 = vadd.f32 %v767_v61, %v3871_v36  ;;  %v4053_v12 = vpop.f32.mrb[50].mxu1 }
 0x26b   :  { %v771_v18 = vpop.f32.mrb[51].mxu1 }
 0x26c   :  { %5193 = vst [vmem:[#allocation61_spill] sm:$0xff] %v4051_v0  ;;  %v4056_v25 = vadd.f32 %v771_v18, %v3871_v36  ;;  %v4058_v33 = vpop.f32.mrb[52].mxu1 }
 0x26d   :  { %v777_v41 = vpop.f32.mrb[53].mxu1 }
 0x26e   :  { %5194 = vst [vmem:[#allocation62_spill] sm:$0xff] %v4056_v25  ;;  %v4061_v46 = vadd.f32 %v777_v41, %v3871_v36  ;;  %v4063_v52 = vpop.f32.mrb[54].mxu1 }
 0x26f   :  { %v781_v17 = vpop.f32.mrb[55].mxu1 }
 0x270   :  { %5195 = vst [vmem:[#allocation63_spill] sm:$0xff] %v4061_v46  ;;  %v4066_v22 = vadd.f32 %v781_v17, %v3871_v36  ;;  %v4068_v61 = vpop.f32.mrb[56].mxu1 }
 0x271   :  { %v787_v0 = vpop.f32.mrb[57].mxu1 }
 0x272   :  { %5196 = vst [vmem:[#allocation64_spill] sm:$0xff] %v4066_v22  ;;  %v4071_v3 = vadd.f32 %v787_v0, %v3871_v36  ;;  %v4073_v18 = vpop.f32.mrb[58].mxu1 }
 0x273   :  { %v791_v25 = vpop.f32.mrb[59].mxu1 }
 0x274   :  { %5197 = vst [vmem:[#allocation65_spill] sm:$0xff] %v4071_v3  ;;  %v4076_v54 = vadd.f32 %v791_v25, %v3871_v36  ;;  %v4078_v41 = vpop.f32.mrb[60].mxu1 }
 0x275   :  { %v797_v46 = vpop.f32.mrb[61].mxu1 }
 0x276   :  { %5198 = vst [vmem:[#allocation66_spill] sm:$0xff] %v4076_v54  ;;  %v4081_v48 = vadd.f32 %v797_v46, %v3871_v36  ;;  %v4083_v17 = vpop.f32.mrb[62].mxu1 }
 0x277   :  { %v801_v22 = vpop.f32.mrb[63].mxu1 }
 0x278   :  { %5199 = vst [vmem:[#allocation67_spill] sm:$0xff] %v4081_v48  ;;  %v4086_v43 = vadd.f32 %v801_v22, %v3871_v36  ;;  %v4088_v0 = vpop.f32.mrb[64].mxu1 }
 0x279   :  { %v807_v3 = vpop.f32.mrb[65].mxu1 }
 0x27a   :  { %5200 = vst [vmem:[#allocation68_spill] sm:$0xff] %v4086_v43  ;;  %v4091_v37 = vadd.f32 %v807_v3, %v3871_v36  ;;  %v4093_v25 = vpop.f32.mrb[66].mxu1 }
 0x27b   :  { %v811_v54 = vpop.f32.mrb[67].mxu1 }
 0x27c   :  { %5201 = vst [vmem:[#allocation69_spill] sm:$0xff] %v4091_v37  ;;  %v4096_v26 = vadd.f32 %v811_v54, %v3871_v36  ;;  %v4098_v46 = vpop.f32.mrb[68].mxu1 }
 0x27d   :  { %v817_v48 = vpop.f32.mrb[69].mxu1 }
 0x27e   :  { %5202 = vst [vmem:[#allocation70_spill] sm:$0xff] %v4096_v26  ;;  %v4101_v20 = vadd.f32 %v817_v48, %v3871_v36  ;;  %v4103_v22 = vpop.f32.mrb[70].mxu1 }
 0x27f   :  { %v821_v43 = vpop.f32.mrb[71].mxu1 }
 0x280   :  { %5203 = vst [vmem:[#allocation71_spill] sm:$0xff] %v4101_v20  ;;  %v4106_v14 = vadd.f32 %v821_v43, %v3871_v36 }
 0x282   :  { %5204 = vst [vmem:[#allocation72_spill] sm:$0xff] %v4106_v14 }
 0x31e   :  { %v328_v3 = vpop.f32.mrb[0].mxu0 }
 0x31f   :  { %v2855_v37 = vpop.f32.mrb[1].mxu0 }
 0x320   :  { %v331_v2 = vpop.f32.mrb[2].mxu0 }
 0x321   :  { %v2856_v8 = vpop.f32.mrb[3].mxu0 }
 0x32a   :  { %v625_v6 = vpop.f32.mrb[4].mxu0 }
 0x32b   :  { %v4109_v54 = vadd.f32 %v625_v6, %v3869_v34  ;;  %v627_v26 = vpop.f32.mrb[5].mxu0 }
 0x32c   :  { %v4112_v59 = vadd.f32 %v627_v26, %v3871_v36  ;;  %v629_v48 = vpop.f32.mrb[6].mxu0 }
 0x32d   :  { %v631_v20 = vpop.f32.mrb[7].mxu0  ;;  %864 = vrot.lane.b32.xlu1 %v4109_v54, %s3506_s28  ;;  %v4120_v37 = vadd.f32 %v629_v48, %v3869_v34 }
 0x32e   :  { %5205 = vst [vmem:[#allocation73_spill] sm:$0xff] %v4112_v59  ;;  %v4117_v43 = vadd.f32 %v631_v20, %v3871_v36 }
 0x330   :  { %5206 = vst [vmem:[#allocation74_spill] sm:$0xff] %v4117_v43 }
 0x331   :  { %866 = vrot.lane.b32.xlu1 %v4120_v37, %s3506_s28 }
 0x332   :  { %v635_v6 = vpop.f32.mrb[8].mxu0 }
 0x333   :  { %v4125_v8 = vadd.f32 %v635_v6, %v3869_v34  ;;  %v637_v2 = vpop.f32.mrb[9].mxu0  ;;  %v4146_v6 = vadd.f32 %v3988_v57, %v3869_v34  ;;  %v4170_v57 = vadd.f32 %v4008_v10, %v3869_v34  ;;  %v4194_v10 = vadd.f32 %v4028_v39, %v3869_v34 }
 0x334   :  { %v4128_v26 = vadd.f32 %v637_v2, %v3871_v36  ;;  %v639_v14 = vpop.f32.mrb[10].mxu0  ;;  %v4200_v2 = vadd.f32 %v4033_v45, %v3869_v34  ;;  %v4212_v39 = vadd.f32 %v4043_v55, %v3869_v34  ;;  %v4228_v55 = vadd.f32 %v4053_v12, %v3869_v34  ;;  %v875_v12 = vpop.permute.xlu1 %874 }
 0x335   :  { %v4131_v35 = vadd.f32 %v639_v14, %v3869_v34  ;;  %v641_v20 = vpop.f32.mrb[11].mxu0  ;;  %868 = vrot.lane.b32.xlu0 %v4125_v8, %s3506_s28  ;;  %v4152_v14 = vadd.f32 %v3993_v4, %v3869_v34  ;;  %v4176_v4 = vadd.f32 %v4013_v15, %v3869_v34  ;;  %v2685_v15 = vld [vmem:[#allocation11] ss:$0 sm:$0xff] }
 0x336   :  { %5207 = vst [vmem:[#allocation75_spill] sm:$0xff] %v4128_v26  ;;  %v4136_v48 = vadd.f32 %v641_v20, %v3871_v36  ;;  %v4158_v36 = vadd.f32 %v3998_v7, %v3869_v34  ;;  %v4182_v7 = vadd.f32 %v4018_v23, %v3869_v34  ;;  %v334_v23 = vld [vmem:[#allocation7] sm:$0xf]  ;;  %v329_v28 = vadd.f32 %v2685_v15, %v328_v3 }
 0x337   :  { %870 = vrot.lane.b32.xlu1 %v4131_v35, %s3506_s28  ;;  %v335_v20 = vunpack.c.l.bf16 %v334_v23  ;;  %v4220_v3 = vadd.f32 %v4048_v5, %v3869_v34  ;;  %v4234_v15 = vadd.f32 %v4058_v33, %v3869_v34  ;;  %v4239_v5 = vmul.f32 %v873_v50, %v3874_v38 }
 0x338   :  { %5208 = vst [vmem:[#allocation76_spill] sm:$0xff] %v4136_v48  ;;  %v4243_v23 = vadd.f32 %v4063_v52, %v3869_v34  ;;  %v4250_v33 = vmul.f32 %v875_v12, %v3884_v42  ;;  %v4256_v38 = vadd.f32 %v4068_v61, %v3869_v34  ;;  %v877_v52 = vpop.permute.xlu1 %876  ;;  %v4275_v42 = vadd.f32 %v4078_v41, %v3869_v34  ;;  %v1354_v12 = vld [vmem:[#allocation25] sm:$0xff] }
 0x339   :  { %894 = vrot.lane.b32.xlu0 %v4140_v29, %s3506_s28  ;;  %v4216_v45 = vmul.f32 %v335_v20, %v329_v28  ;;  %v4261_v28 = vmul.f32 %v877_v52, %v3892_v47  ;;  %v4265_v20 = vadd.f32 %v4073_v18, %v3869_v34  ;;  %v4279_v47 = vadd.f32 %v4083_v17, %v3869_v34  ;;  %v1355_v52 = vld [vmem:[#allocation25 + $0x8] sm:$0xff] }
 0x33a   :  { %v4287_v61 = vadd.f32 %v4088_v0, %v3869_v34  ;;  %v4291_v18 = vadd.f32 %v4093_v25, %v3869_v34  ;;  %v4299_v17 = vadd.f32 %v4098_v46, %v3869_v34  ;;  %v4303_v0 = vadd.f32 %v4103_v22, %v3869_v34 }
 0x33b   :  { %896 = vrot.lane.b32.xlu1 %v4146_v6, %s3506_s28  ;;  %v2953_v13 = vpack.c.bf16 %v1355_v52, %v1354_v12  ;;  %v883_v52 = vpop.permute.xlu0 %882 }
 0x33c   :  { %v879_v41 = vpop.permute.xlu1 %878 }
 0x33d   :  { %898 = vrot.lane.b32.xlu0 %v4152_v14, %s3506_s28  ;;  %2954 = vmatprep.subr.bf16.mxu0 %v2953_v13 }
 0x33e   :  { %2956 = vmatpush3.bf16.msra.mxu0 %v2953_v13  ;;  %v5209_v13 = vmov 0.0  }
 0x33f   :  { %900 = vrot.lane.b32.xlu1 %v4158_v36, %s3506_s28 }
 0x340   :  { %v881_v50 = vpop.permute.xlu1 %880 }
 0x341   :  { %902 = vrot.lane.b32.xlu0 %v4164_v32, %s3506_s28 }
 0x343   :  { %904 = vrot.lane.b32.xlu1 %v4170_v57, %s3506_s28 }
 0x344   :  { %v885_v25 = vpop.permute.xlu1 %884 }
 0x345   :  { %906 = vrot.lane.b32.xlu0 %v4176_v4, %s3506_s28  ;;  %v4310_v19 = vmul.f32 %v885_v25, %v3929_v1  ;;  %v1356_v1 = vld [vmem:[#allocation25 + $0x10] sm:$0xff]  ;;  %v1357_v25 = vld [vmem:[#allocation25 + $0x18] sm:$0xff] }
 0x346   :  { %v2957_v12 = vpack.c.bf16 %v1357_v25, %v1356_v1 }
 0x347   :  { %908 = vrot.lane.b32.xlu1 %v4182_v7, %s3506_s28 }
 0x348   :  { %v889_v46 = vpop.permute.xlu1 %888  ;;  %2958 = vmatprep.subr.bf16.mxu0 %v2957_v12 }
 0x349   :  { %910 = vrot.lane.b32.xlu0 %v4188_v63, %s3506_s28  ;;  %v4315_v34 = vmul.f32 %v889_v46, %v3947_v16  ;;  %2960 = vmatpush3.bf16.msra.mxu0 %v2957_v12  ;;  %v887_v16 = vpop.permute.xlu0 %886 }
 0x34a   :  { %2925 = vmatprep.subr.bf16.mxu0 %v5209_v13 }
 0x34b   :  { %912 = vrot.lane.b32.xlu1 %v4194_v10, %s3506_s28 }
 0x34c   :  { %v893_v22 = vpop.permute.xlu1 %892 }
 0x34d   :  { %914 = vrot.lane.b32.xlu0 %v4200_v2, %s3506_s28  ;;  %v4320_v9 = vmul.f32 %v893_v22, %v3965_v27  ;;  %v891_v27 = vpop.permute.xlu0 %890 }
 0x34f   :  { %916 = vrot.lane.b32.xlu1 %v4206_v24, %s3506_s28 }
 0x351   :  { %918 = vrot.lane.b32.xlu0 %v4212_v39, %s3506_s28 }
 0x353   :  { %338 = vrot.lane.b32.xlu1 %v4216_v45, %s3527_s14 }
 0x355   :  { %920 = vrot.lane.b32.xlu0 %v4220_v3, %s3506_s28 }
 0x357   :  { %922 = vrot.lane.b32.xlu1 %v4228_v55, %s3506_s28 }
 0x359   :  { %924 = vrot.lane.b32.xlu0 %v4234_v15, %s3506_s28 }
 0x35b   :  { %1072 = vrot.lane.b32.xlu1 %v4239_v5, %s3527_s14 }
 0x35d   :  { %926 = vrot.lane.b32.xlu0 %v4243_v23, %s3506_s28 }
 0x35f   :  { %1074 = vrot.lane.b32.xlu1 %v4250_v33, %s3527_s14 }
 0x361   :  { %928 = vrot.lane.b32.xlu0 %v4256_v38, %s3506_s28 }
 0x363   :  { %1076 = vrot.lane.b32.xlu1 %v4261_v28, %s3527_s14 }
 0x365   :  { %930 = vrot.lane.b32.xlu0 %v4265_v20, %s3506_s28 }
 0x369   :  { %932 = vrot.lane.b32.xlu0 %v4275_v42, %s3506_s28 }
 0x36d   :  { %934 = vrot.lane.b32.xlu0 %v4279_v47, %s3506_s28 }
 0x371   :  { %936 = vrot.lane.b32.xlu0 %v4287_v61, %s3506_s28 }
 0x375   :  { %938 = vrot.lane.b32.xlu0 %v4291_v18, %s3506_s28 }
 0x379   :  { %940 = vrot.lane.b32.xlu0 %v4299_v17, %s3506_s28 }
 0x37d   :  { %942 = vrot.lane.b32.xlu0 %v4303_v0, %s3506_s28  ;;  %s3530_s28 = smov [#allocation26]  }
 0x37e   :  { %s2667_s4 = sshll.u32 %s3530_s28, 4  ;;  %s2668_s4 = int_to_ptr.vmem [resolvable:$true] %s2667_s4 }
 0x37f   :  { %s3465_s18 = scalar_lea.vmem %s2668_s4, 128  ;;  %p3470_p9 = scmp.lt.s32.totalorder %s2668_s4, %s2668_s4 }
 0x380   :  { %p3466_p8 = scmp.ne.s32.totalorder %s2668_s4, %s3465_s18  ;;  %p3471_p10 = scmp.lt.s32.totalorder %s3465_s18, %s3465_s18 }
 0x381   :  { %1084 = vrot.lane.b32.xlu0 %v4310_v19, %s3527_s14 }
 0x382   :  { %p3472_p11 = por %p3471_p10, %p3470_p9 }
 0x384   :  { %p3473_p12 = pnand %p3472_p11, %p3466_p8 }
 0x385   :  { %1088 = vrot.lane.b32.xlu0 %v4315_v34, %s3527_s14 }
 0x389   :  { %1092 = vrot.lane.b32.xlu0 %v4320_v9, %s3527_s14 }
 0x39f   :  { %v865_v46 = vpop.permute.xlu1 %864 }
 0x3a0   :  { %v4326_v62 = vmul.f32 %v865_v46, %v4109_v54 }
 0x3a2   :  { %1064 = vrot.lane.b32.xlu1 %v4326_v62, %s3527_s14 }
 0x3a3   :  { %v867_v22 = vpop.permute.xlu1 %866 }
 0x3a4   :  { %v4331_v58 = vmul.f32 %v867_v22, %v4120_v37  ;;  %v4349_v22 = vmul.f32 %v879_v41, %v3902_v51 }
 0x3a6   :  { %1066 = vrot.lane.b32.xlu1 %v4331_v58, %s3527_s14 }
 0x3a7   :  { %v869_v1 = vpop.permute.xlu0 %868 }
 0x3a8   :  { %v4336_v25 = vmul.f32 %v869_v1, %v4125_v8 }
 0x3a9   :  { %v871_v12 = vpop.permute.xlu1 %870 }
 0x3aa   :  { %1068 = vrot.lane.b32.xlu1 %v4336_v25, %s3527_s14  ;;  %v4341_v46 = vmul.f32 %v871_v12, %v4131_v35 }
 0x3ab   :  { %v895_v54 = vpop.permute.xlu0 %894 }
 0x3ad   :  { %v897_v53 = vpop.permute.xlu1 %896 }
 0x3ae   :  { %v4344_v49 = vmul.f32 %v897_v53, %v4146_v6  ;;  %1070 = vrot.lane.b32.xlu1 %v4341_v46, %s3527_s14  ;;  %v4359_v53 = vmul.f32 %v881_v50, %v3911_v56 }
 0x3af   :  { %v899_v37 = vpop.permute.xlu0 %898 }
 0x3b0   :  { %1096 = vrot.lane.b32.xlu0 %v4344_v49, %s3527_s14 }
 0x3b1   :  { %v901_v8 = vpop.permute.xlu1 %900 }
 0x3b2   :  { %v4354_v1 = vmul.f32 %v901_v8, %v4158_v36  ;;  %1078 = vrot.lane.b32.xlu1 %v4349_v22, %s3527_s14  ;;  %v4369_v36 = vmul.f32 %v883_v52, %v3918_v60 }
 0x3b3   :  { %v903_v35 = vpop.permute.xlu0 %902 }
 0x3b4   :  { %1100 = vrot.lane.b32.xlu0 %v4354_v1, %s3527_s14 }
 0x3b5   :  { %v905_v6 = vpop.permute.xlu1 %904 }
 0x3b6   :  { %v4364_v51 = vmul.f32 %v905_v6, %v4170_v57  ;;  %1080 = vrot.lane.b32.xlu1 %v4359_v53, %s3527_s14  ;;  %v4379_v57 = vmul.f32 %v887_v16, %v3936_v11 }
 0x3b7   :  { %v907_v41 = vpop.permute.xlu0 %906 }
 0x3b8   :  { %1104 = vrot.lane.b32.xlu0 %v4364_v51, %s3527_s14 }
 0x3b9   :  { %v909_v12 = vpop.permute.xlu1 %908 }
 0x3ba   :  { %v4374_v56 = vmul.f32 %v909_v12, %v4182_v7  ;;  %1082 = vrot.lane.b32.xlu1 %v4369_v36, %s3527_s14  ;;  %v4389_v7 = vmul.f32 %v891_v27, %v3954_v21  ;;  %v4406_v27 = vmul.f32 %v899_v37, %v4152_v14 }
 0x3bb   :  { %v911_v50 = vpop.permute.xlu0 %910 }
 0x3bc   :  { %1108 = vrot.lane.b32.xlu0 %v4374_v56, %s3527_s14 }
 0x3bd   :  { %v913_v8 = vpop.permute.xlu1 %912 }
 0x3be   :  { %v4384_v60 = vmul.f32 %v913_v8, %v4194_v10  ;;  %1086 = vrot.lane.b32.xlu1 %v4379_v57, %s3527_s14  ;;  %v4399_v10 = vmul.f32 %v895_v54, %v4140_v29  ;;  %v4416_v54 = vmul.f32 %v903_v35, %v4164_v32  ;;  %v4431_v32 = vmul.f32 %v911_v50, %v4188_v63 }
 0x3bf   :  { %v915_v52 = vpop.permute.xlu0 %914 }
 0x3c0   :  { %1112 = vrot.lane.b32.xlu0 %v4384_v60, %s3527_s14 }
 0x3c1   :  { %v917_v6 = vpop.permute.xlu1 %916 }
 0x3c2   :  { %v4394_v11 = vmul.f32 %v917_v6, %v4206_v24  ;;  %1090 = vrot.lane.b32.xlu1 %v4389_v7, %s3527_s14 }
 0x3c3   :  { %v919_v16 = vpop.permute.xlu0 %918 }
 0x3c4   :  { %1116 = vrot.lane.b32.xlu0 %v4394_v11, %s3527_s14  ;;  %v4446_v63 = vmul.f32 %v919_v16, %v4212_v39 }
 0x3c5   :  { %v339_v35 = vpop.permute.xlu1 %338 }
 0x3c6   :  { %1094 = vrot.lane.b32.xlu1 %v4399_v10, %s3527_s14 }
 0x3c7   :  { %v921_v21 = vpop.permute.xlu0 %920 }
 0x3c8   :  { %v4409_v24 = vmul.f32 %v921_v21, %v4220_v3  ;;  %v4426_v3 = vmul.f32 %v907_v41, %v4176_v4  ;;  %v4441_v4 = vmul.f32 %v915_v52, %v4200_v2 }
 0x3c9   :  { %v923_v50 = vpop.permute.xlu1 %922 }
 0x3ca   :  { %1098 = vrot.lane.b32.xlu1 %v4406_v27, %s3527_s14  ;;  %1120 = vrot.lane.b32.xlu0 %v4409_v24, %s3527_s14  ;;  %v4456_v2 = vmul.f32 %v923_v50, %v4228_v55 }
 0x3cb   :  { %v925_v29 = vpop.permute.xlu0 %924 }
 0x3cc   :  { %v4419_v12 = vmul.f32 %v925_v29, %v4234_v15 }
 0x3ce   :  { %1102 = vrot.lane.b32.xlu1 %v4416_v54, %s3527_s14  ;;  %1124 = vrot.lane.b32.xlu0 %v4419_v12, %s3527_s14 }
 0x3cf   :  { %v927_v14 = vpop.permute.xlu0 %926 }
 0x3d0   :  { %v4461_v39 = vmul.f32 %v927_v14, %v4243_v23 }
 0x3d2   :  { %1106 = vrot.lane.b32.xlu1 %v4426_v3, %s3527_s14 }
 0x3d3   :  { %v929_v37 = vpop.permute.xlu0 %928 }
 0x3d4   :  { %v4434_v15 = vmul.f32 %v929_v37, %v4256_v38  ;;  %v1073_v37 = vpop.permute.xlu1 %1072 }
 0x3d5   :  { %v1188_v59 = vadd.f32 %v1073_v37, %v4239_v5 }
 0x3d6   :  { %1110 = vrot.lane.b32.xlu1 %v4431_v32, %s3527_s14  ;;  %1128 = vrot.lane.b32.xlu0 %v4434_v15, %s3527_s14 }
 0x3d7   :  { %v931_v8 = vpop.permute.xlu0 %930 }
 0x3d8   :  { %v4471_v55 = vmul.f32 %v931_v8, %v4265_v20  ;;  %v1075_v50 = vpop.permute.xlu1 %1074 }
 0x3da   :  { %1114 = vrot.lane.b32.xlu1 %v4441_v4, %s3527_s14 }
 0x3db   :  { %v933_v41 = vpop.permute.xlu0 %932 }
 0x3dc   :  { %v4449_v38 = vmul.f32 %v933_v41, %v4275_v42 }
 0x3de   :  { %1118 = vrot.lane.b32.xlu1 %v4446_v63, %s3527_s14  ;;  %1132 = vrot.lane.b32.xlu0 %v4449_v38, %s3527_s14 }
 0x3df   :  { %v935_v6 = vpop.permute.xlu0 %934 }
 0x3e0   :  { %v4476_v23 = vmul.f32 %v935_v6, %v4279_v47  ;;  %v3528_v47 = vmov 1966171168  }
 0x3e2   :  { %1122 = vrot.lane.b32.xlu1 %v4456_v2, %s3527_s14 }
 0x3e3   :  { %v937_v52 = vpop.permute.xlu0 %936 }
 0x3e4   :  { %v4464_v42 = vmul.f32 %v937_v52, %v4287_v61  ;;  %v1077_v52 = vpop.permute.xlu1 %1076 }
 0x3e6   :  { %1126 = vrot.lane.b32.xlu1 %v4461_v39, %s3527_s14  ;;  %1136 = vrot.lane.b32.xlu0 %v4464_v42, %s3527_s14 }
 0x3e7   :  { %v939_v16 = vpop.permute.xlu0 %938 }
 0x3e8   :  { %v4486_v29 = vmul.f32 %v939_v16, %v4291_v18  ;;  %v4499_v18 = vadd.f32 %v339_v35, %v4216_v45 }
 0x3ea   :  { %1130 = vrot.lane.b32.xlu1 %v4471_v55, %s3527_s14 }
 0x3eb   :  { %v941_v21 = vpop.permute.xlu0 %940 }
 0x3ec   :  { %v4479_v61 = vmul.f32 %v941_v21, %v4299_v17  ;;  %v1227_v17 = vunpack.c.l.s4 %v3528_v47 }
 0x3ee   :  { %1134 = vrot.lane.b32.xlu1 %v4476_v23, %s3527_s14  ;;  %1140 = vrot.lane.b32.xlu0 %v4479_v61, %s3527_s14  ;;  %v1228_v8 = vunpack.c.0.s8 %v1227_v17 }
 0x3ef   :  { %v943_v20 = vpop.permute.xlu0 %942 }
 0x3f0   :  { %v4491_v14 = vmul.f32 %v943_v20, %v4303_v0  ;;  %v4496_v41 = vsub.s32 %v1228_v8, %v3860_v30 }
 0x3f2   :  { %1138 = vrot.lane.b32.xlu1 %v4486_v29, %s3527_s14  ;;  %v1232_v6 = vrot.slane %v4499_v18, %v4496_v41 }
 0x3f3   :  { %v1085_v44 = vpop.permute.xlu0 %1084 }
 0x3f4   :  { %v1248_v0 = vrot.slane %v1232_v6, %v4496_v41  ;;  %v1240_v40 = vcombine.high %v1232_v6, %v1232_v6  ;;  %v1190_v6 = vadd.f32 %v1077_v52, %v4261_v28  ;;  %v1194_v37 = vadd.f32 %v1085_v44, %v4310_v19 }
 0x3f6   :  { %1142 = vrot.lane.b32.xlu1 %v4491_v14, %s3527_s14  ;;  %v1277_v21 = vrot.slane %v1248_v0, %v3864_v31 }
 0x3f7   :  { %v1089_v26 = vpop.permute.xlu0 %1088 }
 0x414   :  { %v1065_v16 = vpop.permute.xlu1 %1064 }
 0x415   :  { %v1184_v20 = vadd.f32 %v1065_v16, %v4326_v62  ;;  %v1262_v62 = vrot.slane %v1240_v40, %v4496_v41 }
 0x417   :  { %v1314_v47 = vmul.f32 %v1277_v21, %v1184_v20 }
 0x418   :  { %v1067_v17 = vpop.permute.xlu1 %1066 }
 0x419   :  { %v1185_v8 = vadd.f32 %v1067_v17, %v4331_v58  ;;  %2865 = vmatprep.mubr.msk.f32.mxu0 %vm242_vm0, %v1314_v47  ;;  %v1189_v58 = vadd.f32 %v1075_v50, %v4250_v33  ;;  %v1318_v47 = vmul.f32 %v1277_v21, %v1188_v59  ;;  %v1281_v17 = vrot.slane %v1262_v62, %v3864_v31 }
 0x41a   :  { %v1270_v59 = vcombine.high %v1248_v0, %v1248_v0  ;;  %v1196_v0 = vadd.f32 %v1089_v26, %v4315_v34  ;;  %v1225_v26 = vcombine.high %v4499_v18, %v4499_v18 }
 0x41b   :  { %v1315_v45 = vmul.f32 %v1277_v21, %v1185_v8  ;;  %v1093_v8 = vpop.permute.xlu0 %1092 }
 0x41c   :  { %v1069_v35 = vpop.permute.xlu1 %1068 }
 0x41d   :  { %v1186_v48 = vadd.f32 %v1069_v35, %v4336_v25  ;;  %2866 = vmatmul.mubr.msk.f32.vlgmr.msra.gmra.mrb[12].mxu0 %vm242_vm0, %v1315_v45 }
 0x41f   :  { %v1316_v43 = vmul.f32 %v1277_v21, %v1186_v48  ;;  %v1319_v48 = vmul.f32 %v1281_v17, %v1189_v58 }
 0x420   :  { %v1071_v30 = vpop.permute.xlu1 %1070 }
 0x421   :  { %v1187_v16 = vadd.f32 %v1071_v30, %v4341_v46  ;;  %2868 = vmatprep.mubr.msk.f32.mxu0 %vm242_vm0, %v1316_v43  ;;  %v1320_v30 = vmul.f32 %v1281_v17, %v1190_v6 }
 0x422   :  { %v1097_v43 = vpop.permute.xlu0 %1096 }
 0x423   :  { %v1317_v20 = vmul.f32 %v1277_v21, %v1187_v16 }
 0x424   :  { %v1079_v25 = vpop.permute.xlu1 %1078 }
 0x425   :  { %2869 = vmatmul.mubr.msk.f32.gmra.mrb[14].mxu0 %vm242_vm0, %v1317_v20  ;;  %v1191_v40 = vadd.f32 %v1079_v25, %v4349_v22  ;;  %v1285_v22 = vrot.slane %v1270_v59, %v3864_v31  ;;  %v1272_v20 = vcombine.high %v1262_v62, %v1262_v62  ;;  %v1200_v25 = vadd.f32 %v1097_v43, %v4344_v49 }
 0x426   :  { %2871 = vmatprep.mubr.msk.f32.mxu0 %vm242_vm0, %v1318_v47  ;;  %v1101_v21 = vpop.permute.xlu0 %1100 }
 0x427   :  { %v1321_v28 = vmul.f32 %v1281_v17, %v1191_v40  ;;  %v1324_v45 = vmul.f32 %v1285_v22, %v1194_v37  ;;  %v1326_v19 = vmul.f32 %v1285_v22, %v1196_v0  ;;  %v1202_v40 = vadd.f32 %v1101_v21, %v4354_v1 }
 0x428   :  { %v1081_v5 = vpop.permute.xlu1 %1080 }
 0x429   :  { %v1192_v33 = vadd.f32 %v1081_v5, %v4359_v53  ;;  %2872 = vmatmul.mubr.msk.f32.gmra.mrb[16].mxu0 %vm242_vm0, %v1319_v48  ;;  %v1289_v48 = vrot.slane %v1272_v20, %v3864_v31 }
 0x42a   :  { %2874 = vmatprep.mubr.msk.f32.mxu0 %vm242_vm0, %v1320_v30  ;;  %v1105_v47 = vpop.permute.xlu0 %1104 }
 0x42b   :  { %v1322_v46 = vmul.f32 %v1281_v17, %v1192_v33  ;;  %v1330_v18 = vmul.f32 %v1289_v48, %v1200_v25  ;;  %v1332_v43 = vmul.f32 %v1289_v48, %v1202_v40  ;;  %v1204_v33 = vadd.f32 %v1105_v47, %v4364_v51 }
 0x42c   :  { %v1083_v50 = vpop.permute.xlu1 %1082 }
 0x42d   :  { %v1193_v52 = vadd.f32 %v1083_v50, %v4369_v36  ;;  %2875 = vmatmul.mubr.msk.f32.gmra.mrb[18].mxu0 %vm242_vm0, %v1321_v28  ;;  %v1198_v36 = vadd.f32 %v1093_v8, %v4320_v9 }
 0x42e   :  { %2877 = vmatprep.mubr.msk.f32.mxu0 %vm242_vm0, %v1322_v46  ;;  %v1109_v62 = vpop.permute.xlu0 %1108 }
 0x42f   :  { %v1323_v53 = vmul.f32 %v1281_v17, %v1193_v52  ;;  %v1206_v50 = vadd.f32 %v1109_v62, %v4374_v56 }
 0x430   :  { %v1087_v35 = vpop.permute.xlu1 %1086 }
 0x431   :  { %v1195_v16 = vadd.f32 %v1087_v35, %v4379_v57  ;;  %2878 = vmatmul.mubr.msk.f32.gmra.mrb[20].mxu0 %vm242_vm0, %v1323_v53  ;;  %v1328_v57 = vmul.f32 %v1285_v22, %v1198_v36 }
 0x432   :  { %2880 = vmatprep.mubr.msk.f32.mxu0 %vm242_vm0, %v1324_v45  ;;  %v1113_v28 = vpop.permute.xlu0 %1112 }
 0x433   :  { %v1325_v44 = vmul.f32 %v1285_v22, %v1195_v16  ;;  %v1208_v45 = vadd.f32 %v1113_v28, %v4384_v60 }
 0x434   :  { %v1091_v58 = vpop.permute.xlu1 %1090 }
 0x435   :  { %v1197_v6 = vadd.f32 %v1091_v58, %v4389_v7  ;;  %2881 = vmatmul.mubr.msk.f32.gmra.mrb[22].mxu0 %vm242_vm0, %v1325_v44  ;;  %v1239_v7 = vrot.slane %v1225_v26, %v4496_v41 }
 0x436   :  { %2883 = vmatprep.mubr.msk.f32.mxu0 %vm242_vm0, %v1326_v19  ;;  %v1117_v51 = vpop.permute.xlu0 %1116 }
 0x437   :  { %v1327_v34 = vmul.f32 %v1285_v22, %v1197_v6  ;;  %v1255_v49 = vrot.slane %v1239_v7, %v4496_v41  ;;  %v1241_v22 = vcombine.high %v1239_v7, %v1239_v7  ;;  %v1210_v19 = vadd.f32 %v1117_v51, %v4394_v11 }
 0x438   :  { %v1095_v17 = vpop.permute.xlu1 %1094 }
 0x439   :  { %v1199_v9 = vadd.f32 %v1095_v17, %v4399_v10  ;;  %2884 = vmatmul.mubr.msk.f32.gmra.mrb[24].mxu0 %vm242_vm0, %v1327_v34  ;;  %v1293_v1 = vrot.slane %v1255_v49, %v3864_v31  ;;  %v1269_v35 = vrot.slane %v1241_v22, %v4496_v41  ;;  %v1271_v11 = vcombine.high %v1255_v49, %v1255_v49 }
 0x43a   :  { %2886 = vmatprep.mubr.msk.f32.mxu0 %vm242_vm0, %v1328_v57 }
 0x43b   :  { %v1329_v8 = vmul.f32 %v1289_v48, %v1199_v9  ;;  %v1334_v37 = vmul.f32 %v1293_v1, %v1204_v33  ;;  %v1336_v53 = vmul.f32 %v1293_v1, %v1206_v50  ;;  %v1338_v44 = vmul.f32 %v1293_v1, %v1208_v45 }
 0x43c   :  { %v1099_v30 = vpop.permute.xlu1 %1098  ;;  %v1121_v56 = vpop.permute.xlu0 %1120  ;;  %v1297_v58 = vrot.slane %v1269_v35, %v3864_v31 }
 0x43d   :  { %v1201_v5 = vadd.f32 %v1099_v30, %v4406_v27  ;;  %2887 = vmatmul.mubr.msk.f32.gmra.mrb[26].mxu0 %vm242_vm0, %v1329_v8  ;;  %v1212_v41 = vadd.f32 %v1121_v56, %v4409_v24  ;;  %v1301_v24 = vrot.slane %v1271_v11, %v3864_v31 }
 0x43e   :  { %2889 = vmatprep.mubr.msk.f32.mxu0 %vm242_vm0, %v1330_v18 }
 0x43f   :  { %v1331_v10 = vmul.f32 %v1289_v48, %v1201_v5  ;;  %v1342_v57 = vmul.f32 %v1297_v58, %v1212_v41  ;;  %v1273_v5 = vcombine.high %v1269_v35, %v1269_v35 }
 0x440   :  { %v1103_v59 = vpop.permute.xlu1 %1102  ;;  %v1125_v6 = vpop.permute.xlu0 %1124 }
 0x441   :  { %v1203_v46 = vadd.f32 %v1103_v59, %v4416_v54  ;;  %2890 = vmatmul.mubr.msk.f32.gmra.mrb[28].mxu0 %vm242_vm0, %v1331_v10  ;;  %v1305_v59 = vrot.slane %v1273_v5, %v3864_v31 }
 0x442   :  { %2892 = vmatprep.mubr.msk.f32.mxu0 %vm242_vm0, %v1332_v43 }
 0x443   :  { %v1333_v27 = vmul.f32 %v1289_v48, %v1203_v46 }
 0x444   :  { %v1107_v52 = vpop.permute.xlu1 %1106 }
 0x445   :  { %v1205_v21 = vadd.f32 %v1107_v52, %v4426_v3  ;;  %2893 = vmatmul.mubr.msk.f32.gmra.mrb[30].mxu0 %vm242_vm0, %v1333_v27 }
 0x446   :  { %2895 = vmatprep.mubr.msk.f32.mxu0 %vm242_vm0, %v1334_v37 }
 0x447   :  { %v1335_v54 = vmul.f32 %v1293_v1, %v1205_v21 }
 0x448   :  { %v1111_v0 = vpop.permute.xlu1 %1110  ;;  %v1129_v17 = vpop.permute.xlu0 %1128 }
 0x449   :  { %v1207_v16 = vadd.f32 %v1111_v0, %v4431_v32  ;;  %2896 = vmatmul.mubr.msk.f32.gmra.mrb[32].mxu0 %vm242_vm0, %v1335_v54  ;;  %v1340_v32 = vmul.f32 %v1297_v58, %v1210_v19  ;;  %v1216_v7 = vadd.f32 %v1129_v17, %v4434_v15  ;;  %v5210_v54 = vld [vmem:[#allocation36_spill] sm:$0xff] }
 0x44a   :  { %2898 = vmatprep.mubr.msk.f32.mxu0 %vm242_vm0, %v1336_v53  ;;  %v1748_v53 = vadd.s32 32, %v5210_v54 }
 0x44b   :  { %v1337_v3 = vmul.f32 %v1293_v1, %v1207_v16  ;;  %v3529_v16 = vmov -1e+30  }
 0x44c   :  { %v1115_v36 = vpop.permute.xlu1 %1114  ;;  %vm1753_vm3 = vcmp.lt.s32.totalorder %v1748_v53, 36 }
 0x44d   :  { %v1209_v20 = vadd.f32 %v1115_v36, %v4441_v4  ;;  %2899 = vmatmul.mubr.msk.f32.gmra.mrb[34].mxu0 %vm242_vm0, %v1337_v3  ;;  %v1214_v4 = vadd.f32 %v1125_v6, %v4419_v12  ;;  %v4604_v56 = vsel %vm1753_vm3, 0.0, %v3529_v16 }
 0x44e   :  { %2901 = vmatprep.mubr.msk.f32.mxu0 %vm242_vm0, %v1338_v44 }
 0x44f   :  { %v1339_v60 = vmul.f32 %v1297_v58, %v1209_v20  ;;  %v1344_v9 = vmul.f32 %v1301_v24, %v1214_v4 }
 0x450   :  { %v1119_v47 = vpop.permute.xlu1 %1118  ;;  %v1133_v8 = vpop.permute.xlu0 %1132 }
 0x451   :  { %v1211_v26 = vadd.f32 %v1119_v47, %v4446_v63  ;;  %2902 = vmatmul.mubr.msk.f32.gmra.mrb[36].mxu0 %vm242_vm0, %v1339_v60  ;;  %v1218_v40 = vadd.f32 %v1133_v8, %v4449_v38 }
 0x452   :  { %2904 = vmatprep.mubr.msk.f32.mxu0 %vm242_vm0, %v1340_v32 }
 0x453   :  { %v1341_v34 = vmul.f32 %v1297_v58, %v1211_v26  ;;  %v1348_v43 = vmul.f32 %v1301_v24, %v1218_v40 }
 0x454   :  { %v1123_v25 = vpop.permute.xlu1 %1122 }
 0x455   :  { %v1213_v48 = vadd.f32 %v1123_v25, %v4456_v2  ;;  %2905 = vmatmul.mubr.msk.f32.gmra.mrb[38].mxu0 %vm242_vm0, %v1341_v34  ;;  %v1346_v2 = vmul.f32 %v1301_v24, %v1216_v7 }
 0x456   :  { %2907 = vmatprep.mubr.msk.f32.mxu0 %vm242_vm0, %v1342_v57 }
 0x457   :  { %v1343_v63 = vmul.f32 %v1297_v58, %v1213_v48 }
 0x458   :  { %v1127_v62 = vpop.permute.xlu1 %1126  ;;  %v1137_v49 = vpop.permute.xlu0 %1136 }
 0x459   :  { %v1215_v18 = vadd.f32 %v1127_v62, %v4461_v39  ;;  %2908 = vmatmul.mubr.msk.f32.gmra.mrb[40].mxu0 %vm242_vm0, %v1343_v63  ;;  %v1220_v39 = vadd.f32 %v1137_v49, %v4464_v42 }
 0x45a   :  { %2910 = vmatprep.mubr.msk.f32.mxu0 %vm242_vm0, %v1344_v9 }
 0x45b   :  { %v1345_v12 = vmul.f32 %v1301_v24, %v1215_v18 }
 0x45c   :  { %v1131_v30 = vpop.permute.xlu1 %1130 }
 0x45d   :  { %v1217_v10 = vadd.f32 %v1131_v30, %v4471_v55  ;;  %2911 = vmatmul.mubr.msk.f32.gmra.mrb[42].mxu0 %vm242_vm0, %v1345_v12  ;;  %v1350_v55 = vmul.f32 %v1305_v59, %v1220_v39 }
 0x45e   :  { %2913 = vmatprep.mubr.msk.f32.mxu0 %vm242_vm0, %v1346_v2 }
 0x45f   :  { %v1347_v15 = vmul.f32 %v1301_v24, %v1217_v10 }
 0x460   :  { %v1135_v33 = vpop.permute.xlu1 %1134  ;;  %v1141_v46 = vpop.permute.xlu0 %1140 }
 0x461   :  { %v1219_v28 = vadd.f32 %v1135_v33, %v4476_v23  ;;  %2914 = vmatmul.mubr.msk.f32.gmra.mrb[44].mxu0 %vm242_vm0, %v1347_v15  ;;  %v1222_v1 = vadd.f32 %v1141_v46, %v4479_v61 }
 0x462   :  { %2916 = vmatprep.mubr.msk.f32.mxu0 %vm242_vm0, %v1348_v43 }
 0x463   :  { %v1349_v38 = vmul.f32 %v1305_v59, %v1219_v28  ;;  %v1352_v31 = vmul.f32 %v1305_v59, %v1222_v1 }
 0x464   :  { %v1139_v27 = vpop.permute.xlu1 %1138 }
 0x465   :  { %v1221_v37 = vadd.f32 %v1139_v27, %v4486_v29  ;;  %2917 = vmatmul.mubr.msk.f32.gmra.mrb[46].mxu0 %vm242_vm0, %v1349_v38 }
 0x466   :  { %2919 = vmatprep.mubr.msk.f32.mxu0 %vm242_vm0, %v1350_v55 }
 0x467   :  { %v1351_v42 = vmul.f32 %v1305_v59, %v1221_v37 }
 0x468   :  { %v1143_v50 = vpop.permute.xlu1 %1142 }
 0x469   :  { %v1223_v23 = vadd.f32 %v1143_v50, %v4491_v14  ;;  %2920 = vmatmul.mubr.msk.f32.gmra.mrb[48].mxu0 %vm242_vm0, %v1351_v42 }
 0x46a   :  { %2922 = vmatprep.mubr.msk.f32.mxu0 %vm242_vm0, %v1352_v31 }
 0x46b   :  { %v1353_v52 = vmul.f32 %v1305_v59, %v1223_v23 }
 0x46d   :  { %2923 = vmatmul.mubr.msk.f32.gmra.mrb[50].mxu0 %vm242_vm0, %v1353_v52 }
 0x46e   :  { %2929 = vmatprep.mubr.msk.bf16.mxu0 %vm3526_vm2, %v5209_v13 }
 0x4f0   :  { %v2867_v61 = vpop.f32.mrb[12].mxu0 }
 0x4f1   :  { %v1800_v29 = vsel %vm242_vm0, %v2867_v61, -inf  ;;  %v1544_v22 = vpop.f32.mrb[13].mxu0 }
 0x4f2   :  { %v1799_v21 = vsel %vm242_vm0, %v1544_v22, -inf }
 0x4f3   :  { %v1801_v51 = vmax.f32 %v1799_v21, %v1800_v29 }
 0x4f8   :  { %v2870_v14 = vpop.f32.mrb[14].mxu0 }
 0x4f9   :  { %v1554_v45 = vpop.f32.mrb[15].mxu0  ;;  %v1804_v3 = vsel %vm242_vm0, %v2870_v14, -inf }
 0x4fa   :  { %v1802_v0 = vsel %vm242_vm0, %v1554_v45, -inf }
 0x4fb   :  { %v1803_v35 = vmax.f32 %v1801_v51, %v1802_v0 }
 0x4fc   :  { %v4607_v44 = vpop.f32.mrb[16].mxu0 }
 0x4fd   :  { %v1805_v19 = vmax.f32 %v1803_v35, %v1804_v3  ;;  %v1564_v36 = vpop.f32.mrb[17].mxu0  ;;  %v1814_v47 = vsel %vm242_vm0, %v4607_v44, -inf }
 0x4fe   :  { %v1763_v58 = vadd.f32 %v4604_v56, %v1564_v36 }
 0x500   :  { %v1806_v20 = vsel %vm242_vm0, %v1763_v58, -inf  ;;  %v4611_v60 = vpop.f32.mrb[18].mxu0 }
 0x501   :  { %v1807_v32 = vmax.f32 %v1805_v19, %v1806_v20  ;;  %v4613_v41 = vpop.f32.mrb[19].mxu0  ;;  %v1817_v34 = vsel %vm242_vm0, %v4611_v60, -inf }
 0x502   :  { %v1815_v6 = vsel %vm242_vm0, %v4613_v41, -inf }
 0x503   :  { %v1808_v26 = vrot.slane %v1807_v32, 4  ;;  %v1816_v11 = vmax.f32 %v1814_v47, %v1815_v6 }
 0x504   :  { %v2879_v57 = vpop.f32.mrb[20].mxu0 }
 0x505   :  { %v1809_v4 = vmax.f32 %v1807_v32, %v1808_v26  ;;  %v4622_v25 = vadd.f32 %v2879_v57, %v4604_v56  ;;  %v4624_v17 = vpop.f32.mrb[21].mxu0  ;;  %v1818_v48 = vmax.f32 %v1816_v11, %v1817_v34 }
 0x506   :  { %v1819_v24 = vsel %vm242_vm0, %v4624_v17, -inf }
 0x507   :  { %v1810_v63 = vrot.slane %v1809_v4, 2  ;;  %v1821_v9 = vsel %vm242_vm0, %v4622_v25, -inf  ;;  %v1820_v7 = vmax.f32 %v1818_v48, %v1819_v24 }
 0x508   :  { %v4630_v62 = vpop.f32.mrb[22].mxu0 }
 0x509   :  { %v1811_v8 = vmax.f32 %v1809_v4, %v1810_v63  ;;  %v1822_v18 = vmax.f32 %v1820_v7, %v1821_v9  ;;  %v1830_v12 = vsel %vm242_vm0, %v4630_v62, -inf  ;;  %v4634_v2 = vpop.f32.mrb[23].mxu0 }
 0x50a   :  { %v1829_v40 = vsel %vm242_vm0, %v4634_v2, -inf }
 0x50b   :  { %v1812_v30 = vrot.slane %v1811_v8, 1  ;;  %v1823_v5 = vrot.slane %v1822_v18, 4  ;;  %v1831_v49 = vmax.f32 %v1829_v40, %v1830_v12 }
 0x50c   :  { %v4638_v10 = vpop.f32.mrb[24].mxu0 }
 0x50d   :  { %v1813_v15 = vmax.f32 %v1811_v8, %v1812_v30  ;;  %v1824_v43 = vmax.f32 %v1822_v18, %v1823_v5  ;;  %v4640_v39 = vpop.f32.mrb[25].mxu0  ;;  %v1834_v27 = vsel %vm242_vm0, %v4638_v10, -inf }
 0x50e   :  { %v1832_v33 = vsel %vm242_vm0, %v4640_v39, -inf }
 0x50f   :  { %v1919_v59 = vsub.f32 %v1544_v22, %v1813_v15  ;;  %v1920_v28 = vsub.f32 %v2867_v61, %v1813_v15  ;;  %v1921_v46 = vsub.f32 %v1554_v45, %v1813_v15  ;;  %v1922_v38 = vsub.f32 %v2870_v14, %v1813_v15 }
 0x510   :  { %v1923_v55 = vsub.f32 %v1763_v58, %v1813_v15  ;;  %v1825_v1 = vrot.slane %v1824_v43, 2  ;;  %v1833_v37 = vmax.f32 %v1831_v49, %v1832_v33  ;;  %v4646_v42 = vpop.f32.mrb[26].mxu0 }
 0x511   :  { %v1959_v31 = vmul.f32 1.442695, %v1919_v59  ;;  %v1961_v50 = vmul.f32 1.442695, %v1920_v28  ;;  %v1963_v23 = vmul.f32 1.442695, %v1921_v46 }
 0x512   :  { %v1965_v52 = vmul.f32 1.442695, %v1922_v38  ;;  %v1826_v29 = vmax.f32 %v1824_v43, %v1825_v1  ;;  %v1835_v21 = vmax.f32 %v1833_v37, %v1834_v27  ;;  %v1614_v51 = vpop.f32.mrb[27].mxu0  ;;  %v1967_v22 = vmul.f32 1.442695, %v1923_v55 }
 0x513   :  { %3034 = vpow2.f32 %v1959_v31  ;;  %v4649_v61 = vadd.f32 %v4604_v56, %v1614_v51  ;;  %v1844_v14 = vsel %vm242_vm0, %v4646_v42, -inf }
 0x514   :  { %3036 = vpow2.f32 %v1961_v50  ;;  %v1827_v54 = vrot.slane %v1826_v29, 1  ;;  %v4651_v53 = vpop.f32.mrb[28].mxu0 }
 0x515   :  { %3038 = vpow2.f32 %v1963_v23  ;;  %v1836_v45 = vsel %vm242_vm0, %v4649_v61, -inf  ;;  %v4657_v0 = vpop.f32.mrb[29].mxu0  ;;  %v1847_v19 = vsel %vm242_vm0, %v4651_v53, -inf }
 0x516   :  { %3040 = vpow2.f32 %v1965_v52  ;;  %v1828_v35 = vmax.f32 %v1826_v29, %v1827_v54  ;;  %v1837_v16 = vmax.f32 %v1835_v21, %v1836_v45  ;;  %v1845_v3 = vsel %vm242_vm0, %v4657_v0, -inf }
 0x517   :  { %3042 = vpow2.f32 %v1967_v22  ;;  %v1846_v36 = vmax.f32 %v1844_v14, %v1845_v3 }
 0x518   :  { %v1924_v58 = vsub.f32 %v4607_v44, %v1828_v35  ;;  %v1925_v20 = vsub.f32 %v4613_v41, %v1828_v35  ;;  %v1926_v32 = vsub.f32 %v4611_v60, %v1828_v35  ;;  %v1927_v47 = vsub.f32 %v4624_v17, %v1828_v35  ;;  %v2894_v6 = vpop.f32.mrb[30].mxu0 }
 0x519   :  { %v1928_v26 = vsub.f32 %v4622_v25, %v1828_v35  ;;  %v1838_v11 = vrot.slane %v1837_v16, 4  ;;  %v4669_v34 = vadd.f32 %v2894_v6, %v4604_v56  ;;  %v4671_v57 = vpop.f32.mrb[31].mxu0  ;;  %v1848_v4 = vmax.f32 %v1846_v36, %v1847_v19 }
 0x51a   :  { %v1969_v48 = vmul.f32 1.442695, %v1924_v58  ;;  %v1971_v24 = vmul.f32 1.442695, %v1925_v20  ;;  %v1973_v63 = vmul.f32 1.442695, %v1926_v32 }
 0x51b   :  { %v1975_v44 = vmul.f32 1.442695, %v1927_v47  ;;  %v1839_v9 = vmax.f32 %v1837_v16, %v1838_v11  ;;  %v1977_v41 = vmul.f32 1.442695, %v1928_v26  ;;  %v1851_v60 = vsel %vm242_vm0, %v4669_v34, -inf }
 0x51c   :  { %3044 = vpow2.f32 %v1969_v48  ;;  %v1849_v25 = vsel %vm242_vm0, %v4671_v57, -inf  ;;  %v4677_v17 = vpop.f32.mrb[32].mxu0 }
 0x51d   :  { %v4679_v7 = vpop.eup %3034  ;;  %3046 = vpow2.f32 %v1971_v24  ;;  %v1840_v8 = vrot.slane %v1839_v9, 2  ;;  %v1850_v18 = vmax.f32 %v1848_v4, %v1849_v25  ;;  %v1860_v12 = vsel %vm242_vm0, %v4677_v17, -inf  ;;  %v4683_v40 = vpop.f32.mrb[33].mxu0 }
 0x51e   :  { %v4685_v30 = vpop.eup %3036  ;;  %v2039_v5 = vsel %vm242_vm0, %v4679_v7, 0.0  ;;  %3048 = vpow2.f32 %v1973_v63  ;;  %v1859_v49 = vsel %vm242_vm0, %v4683_v40, -inf }
 0x51f   :  { %v4691_v15 = vpop.eup %3038  ;;  %v2040_v43 = vsel %vm242_vm0, %v4685_v30, 0.0  ;;  %3050 = vpow2.f32 %v1975_v44  ;;  %v1841_v33 = vmax.f32 %v1839_v9, %v1840_v8  ;;  %v1852_v59 = vmax.f32 %v1850_v18, %v1851_v60 }
 0x520   :  { %v4695_v28 = vpop.eup %3040  ;;  %v2041_v46 = vadd.f32 %v2040_v43, %v2039_v5  ;;  %3052 = vpow2.f32 %v1977_v41  ;;  %v1861_v38 = vmax.f32 %v1859_v49, %v1860_v12  ;;  %v4697_v55 = vpop.f32.mrb[34].mxu0  ;;  %v2042_v27 = vsel %vm242_vm0, %v4691_v15, 0.0 }
 0x521   :  { %v4699_v1 = vpop.eup %3042  ;;  %v1842_v37 = vrot.slane %v1841_v33, 1  ;;  %v1853_v31 = vrot.slane %v1852_v59, 4  ;;  %v4703_v50 = vpop.f32.mrb[35].mxu0  ;;  %v2044_v29 = vsel %vm242_vm0, %v4695_v28, 0.0  ;;  %v1864_v45 = vsel %vm242_vm0, %v4697_v55, -inf }
 0x522   :  { %v2043_v23 = vadd.f32 %v2042_v27, %v2041_v46  ;;  %v1862_v52 = vsel %vm242_vm0, %v4703_v50, -inf  ;;  %v2046_v14 = vsel %vm242_vm0, %v4699_v1, 0.0 }
 0x523   :  { %v1843_v21 = vmax.f32 %v1841_v33, %v1842_v37  ;;  %v1854_v51 = vmax.f32 %v1852_v59, %v1853_v31  ;;  %v1863_v22 = vmax.f32 %v1861_v38, %v1862_v52 }
 0x524   :  { %v2045_v54 = vadd.f32 %v2044_v29, %v2043_v23  ;;  %v4713_v35 = vpop.f32.mrb[36].mxu0 }
 0x525   :  { %v1929_v16 = vsub.f32 %v4634_v2, %v1843_v21  ;;  %v1930_v3 = vsub.f32 %v4630_v62, %v1843_v21  ;;  %v1931_v19 = vsub.f32 %v4640_v39, %v1843_v21  ;;  %v1932_v36 = vsub.f32 %v4638_v10, %v1843_v21  ;;  %v1664_v58 = vpop.f32.mrb[37].mxu0 }
 0x526   :  { %v4719_v20 = vpop.eup %3044  ;;  %v2047_v32 = vadd.f32 %v2046_v14, %v2045_v54  ;;  %v1933_v47 = vsub.f32 %v4649_v61, %v1843_v21  ;;  %v1855_v6 = vrot.slane %v1854_v51, 2  ;;  %v1865_v26 = vmax.f32 %v1863_v22, %v1864_v45 }
 0x527   :  { %v4722_v11 = vpop.eup %3046  ;;  %v2054_v4 = vsel %vm242_vm0, %v4719_v20, 0.0  ;;  %v1979_v2 = vmul.f32 1.442695, %v1929_v16  ;;  %v1981_v48 = vmul.f32 1.442695, %v1930_v3  ;;  %v1874_v41 = vsel %vm242_vm0, %v4713_v35, -inf }
 0x528   :  { %v4726_v62 = vpop.eup %3048  ;;  %v2048_v39 = vrot.slane %v2047_v32, 4  ;;  %v2055_v10 = vsel %vm242_vm0, %v4722_v11, 0.0  ;;  %v1983_v24 = vmul.f32 1.442695, %v1931_v19  ;;  %v1985_v63 = vmul.f32 1.442695, %v1932_v36 }
 0x529   :  { %v4730_v44 = vpop.eup %3050  ;;  %v2056_v61 = vadd.f32 %v2055_v10, %v2054_v4  ;;  %3054 = vpow2.f32 %v1979_v2  ;;  %v1987_v9 = vmul.f32 1.442695, %v1933_v47  ;;  %v4734_v60 = vpop.f32.mrb[38].mxu0  ;;  %v2057_v18 = vsel %vm242_vm0, %v4726_v62, 0.0 }
 0x52a   :  { %v4736_v25 = vpop.eup %3052  ;;  %v2049_v8 = vadd.f32 %v2048_v39, %v2047_v32  ;;  %3056 = vpow2.f32 %v1981_v48  ;;  %v1856_v12 = vmax.f32 %v1854_v51, %v1855_v6  ;;  %v4740_v5 = vpop.f32.mrb[39].mxu0  ;;  %v2059_v43 = vsel %vm242_vm0, %v4730_v44, 0.0 }
 0x52b   :  { %v2058_v49 = vadd.f32 %v2057_v18, %v2056_v61  ;;  %3058 = vpow2.f32 %v1983_v24  ;;  %v4745_v33 = vadd.f32 %v4604_v56, %v1664_v58  ;;  %v2061_v46 = vsel %vm242_vm0, %v4736_v25, 0.0 }
 0x52c   :  { %v2050_v59 = vrot.slane %v2049_v8, 2  ;;  %3060 = vpow2.f32 %v1985_v63  ;;  %v1857_v38 = vrot.slane %v1856_v12, 1  ;;  %v2909_v27 = vpop.f32.mrb[40].mxu0  ;;  %v1875_v23 = vsel %vm242_vm0, %v4740_v5, -inf }
 0x52d   :  { %v2060_v37 = vadd.f32 %v2059_v43, %v2058_v49  ;;  %3062 = vpow2.f32 %v1987_v9  ;;  %v1866_v31 = vsel %vm242_vm0, %v4745_v33, -inf  ;;  %v4753_v52 = vpop.f32.mrb[41].mxu0  ;;  %v1876_v22 = vmax.f32 %v1874_v41, %v1875_v23 }
 0x52e   :  { %v2051_v29 = vadd.f32 %v2050_v59, %v2049_v8  ;;  %v1858_v21 = vmax.f32 %v1856_v12, %v1857_v38  ;;  %v1867_v51 = vmax.f32 %v1865_v26, %v1866_v31  ;;  %v1877_v14 = vsel %vm242_vm0, %v4734_v60, -inf }
 0x52f   :  { %v2062_v54 = vadd.f32 %v2061_v46, %v2060_v37  ;;  %v4758_v45 = vadd.f32 %v2909_v27, %v4604_v56  ;;  %v1879_v16 = vsel %vm242_vm0, %v4753_v52, -inf  ;;  %v1878_v41 = vmax.f32 %v1876_v22, %v1877_v14 }
 0x530   :  { %v2052_v3 = vrot.slane %v2051_v29, 1  ;;  %v1934_v19 = vsub.f32 %v4646_v42, %v1858_v21  ;;  %v1935_v36 = vsub.f32 %v4657_v0, %v1858_v21  ;;  %v1936_v58 = vsub.f32 %v4651_v53, %v1858_v21  ;;  %v4765_v32 = vpop.f32.mrb[42].mxu0 }
 0x531   :  { %5211 = vst [vmem:[#allocation36_spill] sm:$0xff] %v4765_v32  ;;  %v2063_v47 = vrot.slane %v2062_v54, 4  ;;  %v1937_v6 = vsub.f32 %v4671_v57, %v1858_v21  ;;  %v1938_v26 = vsub.f32 %v4669_v34, %v1858_v21  ;;  %v1868_v4 = vrot.slane %v1867_v51, 4  ;;  %v4769_v2 = vpop.f32.mrb[43].mxu0 }
 0x532   :  { %v2053_v48 = vadd.f32 %v2052_v3, %v2051_v29  ;;  %v1989_v39 = vmul.f32 1.442695, %v1934_v19  ;;  %v1991_v10 = vmul.f32 1.442695, %v1935_v36  ;;  %v1993_v24 = vmul.f32 1.442695, %v1936_v58 }
 0x533   :  { %v4771_v63 = vpop.eup %3054  ;;  %v2064_v42 = vadd.f32 %v2063_v47, %v2062_v54  ;;  %v1995_v0 = vmul.f32 1.442695, %v1937_v6  ;;  %v1997_v61 = vmul.f32 1.442695, %v1938_v26  ;;  %v1869_v53 = vmax.f32 %v1867_v51, %v1868_v4 }
 0x534   :  { %v4773_v9 = vpop.eup %3056  ;;  %3064 = vrcp.f32 %v2053_v48  ;;  %v2069_v57 = vsel %vm242_vm0, %v4771_v63, 0.0  ;;  %v1881_v34 = vsel %vm242_vm0, %v4758_v45, -inf  ;;  %v4779_v8 = vpop.f32.mrb[44].mxu0  ;;  %v1880_v27 = vmax.f32 %v1878_v41, %v1879_v16 }
 0x535   :  { %5212 = vst [vmem:[#allocation77_spill] sm:$0xff] %v4779_v8  ;;  %v4781_v18 = vpop.eup %3058  ;;  %v2065_v12 = vrot.slane %v2064_v42, 2  ;;  %v2070_v49 = vsel %vm242_vm0, %v4773_v9, 0.0  ;;  %3066 = vpow2.f32 %v1989_v39  ;;  %v1870_v43 = vrot.slane %v1869_v53, 2  ;;  %v4785_v59 = vpop.f32.mrb[45].mxu0 }
 0x536   :  { %5213 = vst [vmem:[#allocation78_spill] sm:$0xff] %v4785_v59  ;;  %v4787_v46 = vpop.eup %3060  ;;  %v2071_v38 = vadd.f32 %v2070_v49, %v2069_v57  ;;  %3068 = vpow2.f32 %v1991_v10  ;;  %v2072_v23 = vsel %vm242_vm0, %v4781_v18, 0.0  ;;  %v1882_v22 = vmax.f32 %v1880_v27, %v1881_v34 }
 0x537   :  { %v4789_v37 = vpop.eup %3062  ;;  %v2066_v31 = vadd.f32 %v2065_v12, %v2064_v42  ;;  %3070 = vpow2.f32 %v1993_v24  ;;  %v1871_v29 = vmax.f32 %v1869_v53, %v1870_v43  ;;  %v2074_v51 = vsel %vm242_vm0, %v4787_v46, 0.0 }
 0x538   :  { %v2073_v21 = vadd.f32 %v2072_v23, %v2071_v38  ;;  %3072 = vpow2.f32 %v1995_v0  ;;  %v4795_v54 = vpop.f32.mrb[46].mxu0  ;;  %v4799_v16 = vsel %vm242_vm0, %v4765_v32, -inf  ;;  %v1883_v58 = vrot.slane %v1882_v22, 4 }
 0x539   :  { %5214 = vst [vmem:[#allocation79_spill] sm:$0xff] %v4795_v54  ;;  %v2067_v14 = vrot.slane %v2066_v31, 1  ;;  %3074 = vpow2.f32 %v1997_v61  ;;  %v1872_v3 = vrot.slane %v1871_v29, 1  ;;  %v4801_v19 = vpop.f32.mrb[47].mxu0  ;;  %v4805_v47 = vsel %vm242_vm0, %v4769_v2, -inf }
 0x53a   :  { %v2075_v36 = vadd.f32 %v2074_v51, %v2073_v21  ;;  %v2076_v26 = vsel %vm242_vm0, %v4789_v37, 0.0  ;;  %v1884_v10 = vmax.f32 %v1882_v22, %v1883_v58  ;;  %v4815_v24 = vsel %vm242_vm0, %v4779_v8, -inf }
 0x53b   :  { %v2068_v6 = vadd.f32 %v2067_v14, %v2066_v31  ;;  %v4809_v4 = vmax.f32 %v1871_v29, %v1872_v3  ;;  %v4819_v42 = vsel %vm242_vm0, %v4785_v59, -inf  ;;  %v4837_v38 = vsel %vm242_vm0, %v4795_v54, -inf }
 0x53c   :  { %v2077_v39 = vadd.f32 %v2076_v26, %v2075_v36  ;;  %v4821_v0 = vpop.f32.mrb[48].mxu0  ;;  %v1885_v48 = vrot.slane %v1884_v10, 2 }
 0x53d   :  { %3076 = vrcp.f32 %v2068_v6  ;;  %v1939_v61 = vsub.f32 %v4683_v40, %v4809_v4  ;;  %v1940_v53 = vsub.f32 %v4677_v17, %v4809_v4  ;;  %v1941_v57 = vsub.f32 %v4703_v50, %v4809_v4  ;;  %v4829_v34 = vpop.f32.mrb[49].mxu0 }
 0x53e   :  { %v3065_v41 = vpop.eup %3064  ;;  %v2078_v12 = vrot.slane %v2077_v39, 4  ;;  %v1942_v49 = vsub.f32 %v4697_v55, %v4809_v4 }
 0x53f   :  { %v4839_v40 = vpop.eup %3066  ;;  %v2167_v17 = vmul.f32 %v3065_v41, %v4679_v7  ;;  %v2168_v50 = vmul.f32 %v3065_v41, %v4685_v30  ;;  %v2169_v27 = vmul.f32 %v3065_v41, %v4691_v15  ;;  %v2170_v31 = vmul.f32 %v3065_v41, %v4695_v28  ;;  %v5215_v7 = vld [vmem:[#allocation73_spill] sm:$0xff]  ;;  %v5216_v30 = vld [vmem:[#allocation74_spill] sm:$0xff]  ;;  %v5217_v15 = vld [vmem:[#allocation75_spill] sm:$0xff] }
 0x540   :  { %v4845_v23 = vpop.eup %3068  ;;  %v2171_v55 = vmul.f32 %v3065_v41, %v4699_v1  ;;  %v2079_v29 = vadd.f32 %v2078_v12, %v2077_v39  ;;  %v2084_v21 = vsel %vm242_vm0, %v4839_v40, 0.0  ;;  %v1999_v51 = vmul.f32 1.442695, %v1939_v61  ;;  %v4850_v22 = vpop.f32.mrb[50].mxu0  ;;  %v5218_v28 = vld [vmem:[#allocation76_spill] sm:$0xff]  ;;  %v5219_v39 = vld [vmem:[#allocation37_spill] sm:$0xff] }
 0x541   :  { %v4852_v14 = vpop.eup %3070  ;;  %v2207_v3 = vmul.f32 %v2167_v17, %v5215_v7  ;;  %v2208_v36 = vmul.f32 %v2168_v50, %v5216_v30  ;;  %v2209_v58 = vmul.f32 %v2169_v27, %v5217_v15  ;;  %v2210_v6 = vmul.f32 %v2170_v31, %v5218_v28  ;;  %v4858_v26 = vpop.f32.mrb[51].mxu0  ;;  %v3024_v7 = vld [vmem:[#allocation16] sm:$0xff]  }
 0x542   :  { %v4860_v1 = vpop.eup %3072  ;;  %v2211_v41 = vmul.f32 %v2171_v55, %v5219_v39  ;;  %v2080_v12 = vrot.slane %v2079_v29, 2  ;;  %v2085_v61 = vsel %vm242_vm0, %v4845_v23, 0.0  ;;  %v2087_v31 = vsel %vm242_vm0, %v4852_v14, 0.0  ;;  %2926 = vmatpush3.bf16.msra.mxu0 %v3024_v7 }
 0x543   :  { %v4865_v43 = vpop.eup %3074  ;;  %v2247_v17 = vsel %vm242_vm0, %v2207_v3, 0.0  ;;  %v2248_v50 = vsel %vm242_vm0, %v2208_v36, 0.0  ;;  %v2250_v27 = vsel %vm242_vm0, %v2209_v58, 0.0  ;;  %v2252_v55 = vsel %vm242_vm0, %v2210_v6, 0.0  ;;  %v3025_v36 = vld [vmem:[#allocation16 + $0x8] sm:$0xff]   ;;  %2927 = vmatprep.subr.bf16.mxu0 %v5209_v13 }
 0x544   :  { %v2249_v30 = vadd.f32 %v2248_v50, %v2247_v17  ;;  %v2081_v15 = vadd.f32 %v2080_v12, %v2079_v29  ;;  %v2086_v28 = vadd.f32 %v2085_v61, %v2084_v21  ;;  %v2254_v39 = vsel %vm242_vm0, %v2211_v41, 0.0 }
 0x545   :  { %v2089_v54 = vsel %vm242_vm0, %v4860_v1, 0.0  ;;  %3078 = vpow2.f32 %v1999_v51  ;;  %v2001_v3 = vmul.f32 1.442695, %v1940_v53  ;;  %v2091_v32 = vsel %vm242_vm0, %v4865_v43, 0.0 }
 0x546   :  { %v2251_v8 = vadd.f32 %v2250_v27, %v2249_v30  ;;  %v2082_v58 = vrot.slane %v2081_v15, 1  ;;  %v2088_v59 = vadd.f32 %v2087_v31, %v2086_v28  ;;  %v2003_v29 = vmul.f32 1.442695, %v1941_v57  ;;  %2928 = vmatpush3.bf16.msra.mxu0 %v3025_v36  ;;  %v5220_v30 = vld [vmem:[#allocation38_spill] sm:$0xff]  ;;  %v5221_v57 = vld [vmem:[#allocation39_spill] sm:$0xff] }
 0x547   :  { %v3077_v6 = vpop.eup %3076  ;;  %3080 = vpow2.f32 %v2001_v3  ;;  %v2005_v21 = vmul.f32 1.442695, %v1942_v49  ;;  %v1886_v41 = vmax.f32 %v1884_v10, %v1885_v48  ;;  %v5222_v48 = vld [vmem:[#allocation40_spill] sm:$0xff]  ;;  %2933 = vmatprep.subr.bf16.mxu0 %v5209_v13  ;;  %v5224_v10 = vld [vmem:[#allocation42_spill] sm:$0xff] }
 0x548   :  { %v2253_v12 = vadd.f32 %v2252_v55, %v2251_v8  ;;  %v2172_v61 = vmul.f32 %v3077_v6, %v4719_v20  ;;  %v2173_v53 = vmul.f32 %v3077_v6, %v4722_v11  ;;  %v2174_v51 = vmul.f32 %v3077_v6, %v4726_v62  ;;  %v5223_v20 = vld [vmem:[#allocation41_spill] sm:$0xff] }
 0x549   :  { %v2175_v17 = vmul.f32 %v3077_v6, %v4730_v44  ;;  %v2176_v50 = vmul.f32 %v3077_v6, %v4736_v25  ;;  %v2083_v27 = vadd.f32 %v2082_v58, %v2081_v15  ;;  %v2090_v31 = vadd.f32 %v2089_v54, %v2088_v59 }
 0x54a   :  { %v2255_v7 = vadd.f32 %v2254_v39, %v2253_v12  ;;  %v2212_v28 = vmul.f32 %v2172_v61, %v5220_v30  ;;  %v2213_v49 = vmul.f32 %v2173_v53, %v5221_v57  ;;  %v2214_v8 = vmul.f32 %v2174_v51, %v5222_v48 }
 0x54b   :  { %v2215_v11 = vmul.f32 %v2175_v17, %v5223_v20  ;;  %v2216_v62 = vmul.f32 %v2176_v50, %v5224_v10  ;;  %3082 = vrcp.f32 %v2083_v27  ;;  %v2092_v44 = vadd.f32 %v2091_v32, %v2090_v31 }
 0x54c   :  { %v2256_v55 = vrot.slane %v2255_v7, 4  ;;  %v2262_v25 = vsel %vm242_vm0, %v2212_v28, 0.0  ;;  %v2263_v59 = vsel %vm242_vm0, %v2213_v49, 0.0  ;;  %v5225_v54 = vsub.f32 %v4745_v33, %v4809_v4 }
 0x54d   :  { %v2264_v39 = vadd.f32 %v2263_v59, %v2262_v25  ;;  %v2265_v3 = vsel %vm242_vm0, %v2214_v8, 0.0  ;;  %v2093_v36 = vrot.slane %v2092_v44, 4  ;;  %v4898_v58 = vadd.f32 %v4604_v56, %v4801_v19 }
 0x54e   :  { %v2007_v15 = vmul.f32 1.442695, %v5225_v54  ;;  %v2257_v6 = vadd.f32 %v2256_v55, %v2255_v7  ;;  %3084 = vpow2.f32 %v2003_v29  ;;  %v1887_v32 = vrot.slane %v1886_v41, 1 }
 0x54f   :  { %v5226_v12 = vmax.f32 %v4805_v47, %v4799_v16  ;;  %v4906_v53 = vpop.eup %3078  ;;  %v2266_v33 = vadd.f32 %v2265_v3, %v2264_v39  ;;  %v2267_v4 = vsel %vm242_vm0, %v2215_v11, 0.0  ;;  %v2094_v51 = vadd.f32 %v2093_v36, %v2092_v44  ;;  %v5227_v39 = vld [vmem:[#allocation43_spill] sm:$0xff]  ;;  %v5228_v36 = vld [vmem:[#allocation44_spill] sm:$0xff] }
 0x550   :  { %3086 = vpow2.f32 %v2005_v21  ;;  %v2258_v17 = vrot.slane %v2257_v6, 2  ;;  %v2099_v19 = vsel %vm242_vm0, %v4906_v53, 0.0  ;;  %v1888_v29 = vmax.f32 %v1886_v41, %v1887_v32  ;;  %v5229_v32 = vld [vmem:[#allocation45_spill] sm:$0xff] }
 0x551   :  { %v4904_v61 = vmax.f32 %v5226_v12, %v4819_v42  ;;  %3088 = vpow2.f32 %v2007_v15  ;;  %v4911_v50 = vpop.eup %3080  ;;  %v2268_v27 = vadd.f32 %v2267_v4, %v2266_v33  ;;  %v2269_v16 = vsel %vm242_vm0, %v2216_v62, 0.0  ;;  %v5230_v33 = vld [vmem:[#allocation46_spill] sm:$0xff]  ;;  %v5231_v4 = vld [vmem:[#allocation47_spill] sm:$0xff] }
 0x552   :  { %v2095_v47 = vrot.slane %v2094_v51, 2  ;;  %v2259_v31 = vadd.f32 %v2258_v17, %v2257_v6  ;;  %v2100_v7 = vsel %vm242_vm0, %v4911_v50, 0.0  ;;  %v1944_v21 = vsub.f32 %v4713_v35, %v1888_v29 }
 0x553   :  { %v1895_v42 = vmax.f32 %v4904_v61, %v4815_v24  ;;  %v1945_v30 = vsub.f32 %v4740_v5, %v1888_v29  ;;  %v2270_v28 = vadd.f32 %v2269_v16, %v2268_v27  ;;  %v2101_v41 = vadd.f32 %v2100_v7, %v2099_v19 }
 0x554   :  { %v2096_v57 = vadd.f32 %v2095_v47, %v2094_v51  ;;  %v1946_v49 = vsub.f32 %v4734_v60, %v1888_v29  ;;  %v2260_v48 = vrot.slane %v2259_v31, 1  ;;  %v1947_v8 = vsub.f32 %v4753_v52, %v1888_v29 }
 0x555   :  { %v1948_v20 = vsub.f32 %v4758_v45, %v1888_v29  ;;  %v1896_v24 = vsel %vm242_vm0, %v4898_v58, -inf  ;;  %v3083_v11 = vpop.eup %3082  ;;  %v2271_v10 = vrot.slane %v2270_v28, 4  ;;  %v2009_v44 = vmul.f32 1.442695, %v1944_v21 }
 0x556   :  { %v2097_v62 = vrot.slane %v2096_v57, 1  ;;  %v2011_v35 = vmul.f32 1.442695, %v1945_v30  ;;  %v2261_v55 = vadd.f32 %v2260_v48, %v2259_v31  ;;  %v2177_v5 = vmul.f32 %v3083_v11, %v4771_v63 }
 0x557   :  { %v2178_v25 = vmul.f32 %v3083_v11, %v4773_v9  ;;  %v2179_v60 = vmul.f32 %v3083_v11, %v4781_v18  ;;  %v2272_v59 = vadd.f32 %v2271_v10, %v2270_v28  ;;  %v2180_v52 = vmul.f32 %v3083_v11, %v4787_v46 }
 0x558   :  { %v2181_v45 = vmul.f32 %v3083_v11, %v4789_v37  ;;  %v2098_v54 = vadd.f32 %v2097_v62, %v2096_v57  ;;  %v4930_v15 = vpop.eup %3084  ;;  %v2217_v3 = vmul.f32 %v2177_v5, %v5227_v39  ;;  %v2013_v61 = vmul.f32 1.442695, %v1946_v49 }
 0x559   :  { %v2218_v6 = vmul.f32 %v2178_v25, %v5228_v36  ;;  %v2219_v12 = vmul.f32 %v2179_v60, %v5229_v32  ;;  %v2273_v9 = vrot.slane %v2272_v59, 2  ;;  %v2220_v18 = vmul.f32 %v2180_v52, %v5230_v33 }
 0x55a   :  { %v4935_v63 = vpop.eup %3086  ;;  %v2221_v51 = vmul.f32 %v2181_v45, %v5231_v4  ;;  %3090 = vrcp.f32 %v2098_v54  ;;  %v2367_v37 = vpack.c.bf16 %v2261_v55, %v2261_v55  ;;  %v2277_v17 = vsel %vm242_vm0, %v2217_v3, 0.0 }
 0x55b   :  { %v4939_v46 = vpop.eup %3088  ;;  %v2278_v19 = vsel %vm242_vm0, %v2218_v6, 0.0  ;;  %v2280_v29 = vsel %vm242_vm0, %v2219_v12, 0.0  ;;  %v2274_v27 = vadd.f32 %v2273_v9, %v2272_v59  ;;  %v2282_v47 = vsel %vm242_vm0, %v2220_v18, 0.0  ;;  %v5232_v18 = vld [vmem:[#allocation48_spill] sm:$0xff] }
 0x55c   :  { %v2279_v16 = vadd.f32 %v2278_v19, %v2277_v17  ;;  %v2284_v31 = vsel %vm242_vm0, %v2221_v51, 0.0  ;;  %v2102_v7 = vsel %vm242_vm0, %v4930_v15, 0.0  ;;  %v2104_v21 = vsel %vm242_vm0, %v4935_v63, 0.0  ;;  %v5233_v51 = vld [vmem:[#allocation49_spill] sm:$0xff]  ;;  %v5234_v17 = vld [vmem:[#allocation50_spill] sm:$0xff] }
 0x55d   :  { %v2106_v30 = vsel %vm242_vm0, %v4939_v46, 0.0  ;;  %3092 = vpow2.f32 %v2009_v44  ;;  %v2275_v28 = vrot.slane %v2274_v27, 1  ;;  %v2103_v49 = vadd.f32 %v2102_v7, %v2101_v41 }
 0x55e   :  { %v2281_v57 = vadd.f32 %v2280_v29, %v2279_v16  ;;  %3094 = vpow2.f32 %v2011_v35  ;;  %v2015_v48 = vmul.f32 1.442695, %v1947_v8  ;;  %v2017_v11 = vmul.f32 1.442695, %v1948_v20 }
 0x55f   :  { %3096 = vpow2.f32 %v2013_v61  ;;  %v1897_v10 = vmax.f32 %v1895_v42, %v1896_v24  ;;  %v2276_v62 = vadd.f32 %v2275_v28, %v2274_v27  ;;  %v2105_v5 = vadd.f32 %v2104_v21, %v2103_v49 }
 0x560   :  { %v2283_v55 = vadd.f32 %v2282_v47, %v2281_v57  ;;  %v1905_v25 = vsel %vm242_vm0, %v4829_v34, -inf  ;;  %3098 = vpow2.f32 %v2015_v48  ;;  %v4957_v44 = vadd.f32 %v4850_v22, %v4604_v56 }
 0x561   :  { %v1898_v60 = vrot.slane %v1897_v10, 4  ;;  %v1906_v59 = vmax.f32 %v4837_v38, %v1905_v25  ;;  %v2107_v35 = vadd.f32 %v2106_v30, %v2105_v5  ;;  %3100 = vpow2.f32 %v2017_v11 }
 0x562   :  { %v2285_v41 = vadd.f32 %v2284_v31, %v2283_v55  ;;  %v1907_v42 = vsel %vm242_vm0, %v4821_v0, -inf  ;;  %v2394_v8 = vunpack.c.l.b16 %v2367_v37  ;;  %v2368_v20 = vpack.c.bf16 %v2276_v62, %v2276_v62 }
 0x563   :  { %v1899_v24 = vmax.f32 %v1897_v10, %v1898_v60  ;;  %v1908_v52 = vmax.f32 %v1906_v59, %v1907_v42  ;;  %v2108_v39 = vrot.slane %v2107_v35, 4  ;;  %v1911_v38 = vsel %vm242_vm0, %v4957_v44, -inf }
 0x564   :  { %v3091_v45 = vpop.eup %3090  ;;  %v2286_v54 = vrot.slane %v2285_v41, 4  ;;  %v1909_v56 = vsel %vm242_vm0, %v4858_v26, -inf }
 0x565   :  { %v2182_v22 = vmul.f32 %v3091_v45, %v4839_v40  ;;  %v2183_v3 = vmul.f32 %v3091_v45, %v4845_v23  ;;  %v2184_v36 = vmul.f32 %v3091_v45, %v4852_v14  ;;  %v2185_v6 = vmul.f32 %v3091_v45, %v4860_v1  ;;  %v5235_v40 = vld [vmem:[#allocation51_spill] sm:$0xff]  ;;  %v5236_v1 = vld [vmem:[#allocation52_spill] sm:$0xff] }
 0x566   :  { %v2287_v32 = vadd.f32 %v2286_v54, %v2285_v41  ;;  %v2186_v12 = vmul.f32 %v3091_v45, %v4865_v43  ;;  %v2109_v61 = vadd.f32 %v2108_v39, %v2107_v35  ;;  %v1900_v9 = vrot.slane %v1899_v24, 2 }
 0x567   :  { %v4970_v33 = vpop.eup %3092  ;;  %v2222_v4 = vmul.f32 %v2182_v22, %v5232_v18  ;;  %v2223_v37 = vmul.f32 %v2183_v3, %v5233_v51  ;;  %v2224_v19 = vmul.f32 %v2184_v36, %v5234_v17  ;;  %v2225_v29 = vmul.f32 %v2185_v6, %v5235_v40  ;;  %v5237_v18 = vld [vmem:[#allocation36_spill] sm:$0xff] }
 0x568   :  { %v4976_v23 = vpop.eup %3094  ;;  %v2395_v14 = vunpack.c.l.b16 %v2368_v20  ;;  %v2288_v27 = vrot.slane %v2287_v32, 2  ;;  %v2226_v16 = vmul.f32 %v2186_v12, %v5236_v1  ;;  %v2110_v47 = vrot.slane %v2109_v61, 2 }
 0x569   :  { %v4979_v43 = vpop.eup %3096  ;;  %v2292_v31 = vsel %vm242_vm0, %v2222_v4, 0.0  ;;  %v2293_v7 = vsel %vm242_vm0, %v2223_v37, 0.0  ;;  %v2295_v21 = vsel %vm242_vm0, %v2224_v19, 0.0  ;;  %v2114_v30 = vsel %vm242_vm0, %v4970_v33, 0.0  ;;  %v5239_v37 = vld [vmem:[#allocation77_spill] sm:$0xff] }
 0x56a   :  { %v2289_v28 = vadd.f32 %v2288_v27, %v2287_v32  ;;  %v2294_v57 = vadd.f32 %v2293_v7, %v2292_v31  ;;  %v2297_v49 = vsel %vm242_vm0, %v2225_v29, 0.0  ;;  %v2111_v48 = vadd.f32 %v2110_v47, %v2109_v61  ;;  %v4987_v11 = vpop.eup %3098 }
 0x56b   :  { %v2299_v10 = vsel %vm242_vm0, %v2226_v16, 0.0  ;;  %v2115_v62 = vsel %vm242_vm0, %v4976_v23, 0.0  ;;  %v1901_v55 = vmax.f32 %v1899_v24, %v1900_v9  ;;  %v1910_v5 = vmax.f32 %v1908_v52, %v1909_v56  ;;  %v4992_v25 = vpop.eup %3100 }
 0x56c   :  { %v2290_v60 = vrot.slane %v2289_v28, 1  ;;  %v2296_v59 = vadd.f32 %v2295_v21, %v2294_v57  ;;  %v2112_v41 = vrot.slane %v2111_v48, 1  ;;  %v2116_v35 = vadd.f32 %v2115_v62, %v2114_v30 }
 0x56d   :  { %v2117_v42 = vsel %vm242_vm0, %v4979_v43, 0.0  ;;  %v2119_v20 = vsel %vm242_vm0, %v4987_v11, 0.0  ;;  %v1902_v45 = vrot.slane %v1901_v55, 1  ;;  %v1912_v54 = vmax.f32 %v1910_v5, %v1911_v38  ;;  %v5238_v38 = vld [vmem:[#allocation78_spill] sm:$0xff] }
 0x56e   :  { %v2291_v39 = vadd.f32 %v2290_v60, %v2289_v28  ;;  %v2298_v22 = vadd.f32 %v2297_v49, %v2296_v59  ;;  %v2113_v3 = vadd.f32 %v2112_v41, %v2111_v48  ;;  %v2118_v36 = vadd.f32 %v2117_v42, %v2116_v35 }
 0x56f   :  { %v2121_v24 = vsel %vm242_vm0, %v4992_v25, 0.0  ;;  %v1903_v52 = vmax.f32 %v1901_v55, %v1902_v45  ;;  %v1913_v56 = vrot.slane %v1912_v54, 4  ;;  %v2403_v6 = vsel %vm2402_vm4, %v2395_v14, %v2394_v8 }
 0x570   :  { %v2369_v32 = vpack.c.bf16 %v2291_v39, %v2291_v39  ;;  %v2300_v12 = vadd.f32 %v2299_v10, %v2298_v22  ;;  %3102 = vrcp.f32 %v2113_v3  ;;  %v2120_v61 = vadd.f32 %v2119_v20, %v2118_v36  ;;  %v5240_v39 = vld [vmem:[#allocation53_spill] sm:$0xff]  ;;  %v5241_v3 = vld [vmem:[#allocation54_spill] sm:$0xff] }
 0x571   :  { %v1949_v9 = vsub.f32 %v4769_v2, %v1903_v52  ;;  %v1950_v4 = vsub.f32 %v5237_v18, %v1903_v52  ;;  %v1951_v51 = vsub.f32 %v5238_v38, %v1903_v52  ;;  %v1952_v17 = vsub.f32 %v5239_v37, %v1903_v52 }
 0x572   :  { %v2396_v19 = vunpack.c.l.b16 %v2369_v32  ;;  %v2301_v40 = vrot.slane %v2300_v12, 4  ;;  %v2122_v29 = vadd.f32 %v2121_v24, %v2120_v61  ;;  %v1953_v27 = vsub.f32 %v4898_v58, %v1903_v52  ;;  %v5242_v24 = vld [vmem:[#allocation55_spill] sm:$0xff]  ;;  %v5244_v32 = vld [vmem:[#allocation57_spill] sm:$0xff] }
 0x573   :  { %v2019_v1 = vmul.f32 1.442695, %v1949_v9  ;;  %v2021_v16 = vmul.f32 1.442695, %v1950_v4  ;;  %v2023_v8 = vmul.f32 1.442695, %v1951_v51  ;;  %v1914_v14 = vmax.f32 %v1912_v54, %v1913_v56 }
 0x574   :  { %v2302_v47 = vadd.f32 %v2301_v40, %v2300_v12  ;;  %v2123_v31 = vrot.slane %v2122_v29, 4  ;;  %v2025_v7 = vmul.f32 1.442695, %v1952_v17  ;;  %v5007_v21 = vsel %vm2404_vm5, %v2396_v19, %v2403_v6  ;;  %v5243_v56 = vld [vmem:[#allocation56_spill] sm:$0xff] }
 0x575   :  { %3104 = vpow2.f32 %v2019_v1  ;;  %v1915_v2 = vrot.slane %v1914_v14, 2  ;;  %v2027_v57 = vmul.f32 1.442695, %v1953_v27 }
 0x576   :  { %v2303_v30 = vrot.slane %v2302_v47, 2  ;;  %v2124_v28 = vadd.f32 %v2123_v31, %v2122_v29  ;;  %3106 = vpow2.f32 %v2021_v16 }
 0x577   :  { %3108 = vpow2.f32 %v2023_v8  ;;  %v1916_v49 = vmax.f32 %v1914_v14, %v1915_v2 }
 0x578   :  { %v2304_v48 = vadd.f32 %v2303_v30, %v2302_v47  ;;  %v2125_v58 = vrot.slane %v2124_v28, 2  ;;  %3110 = vpow2.f32 %v2025_v7 }
 0x579   :  { %v1917_v10 = vrot.slane %v1916_v49, 1  ;;  %3112 = vpow2.f32 %v2027_v57 }
 0x57a   :  { %v3103_v62 = vpop.eup %3102  ;;  %v2305_v55 = vrot.slane %v2304_v48, 1  ;;  %v2126_v5 = vadd.f32 %v2125_v58, %v2124_v28 }
 0x57b   :  { %v2187_v60 = vmul.f32 %v3103_v62, %v4906_v53  ;;  %v2188_v59 = vmul.f32 %v3103_v62, %v4911_v50  ;;  %v2189_v41 = vmul.f32 %v3103_v62, %v4930_v15  ;;  %v2190_v35 = vmul.f32 %v3103_v62, %v4935_v63  ;;  %v5245_v15 = vld [vmem:[#allocation79_spill] sm:$0xff] }
 0x57c   :  { %v2306_v42 = vadd.f32 %v2305_v55, %v2304_v48  ;;  %v2191_v20 = vmul.f32 %v3103_v62, %v4939_v46  ;;  %v2127_v45 = vrot.slane %v2126_v5, 1  ;;  %v1918_v54 = vmax.f32 %v1916_v49, %v1917_v10 }
 0x57d   :  { %v2227_v22 = vmul.f32 %v2187_v60, %v5240_v39  ;;  %v2228_v36 = vmul.f32 %v2188_v59, %v5241_v3  ;;  %v2229_v52 = vmul.f32 %v2189_v41, %v5242_v24  ;;  %v2230_v6 = vmul.f32 %v2190_v35, %v5243_v56 }
 0x57e   :  { %v2370_v53 = vpack.c.bf16 %v2306_v42, %v2306_v42  ;;  %v2231_v50 = vmul.f32 %v2191_v20, %v5244_v32  ;;  %v2128_v12 = vadd.f32 %v2127_v45, %v2126_v5  ;;  %v1954_v61 = vsub.f32 %v5245_v15, %v1918_v54 }
 0x57f   :  { %v5020_v63 = vpop.eup %3104  ;;  %v2307_v46 = vsel %vm242_vm0, %v2227_v22, 0.0  ;;  %v2308_v9 = vsel %vm242_vm0, %v2228_v36, 0.0  ;;  %v2310_v51 = vsel %vm242_vm0, %v2229_v52, 0.0  ;;  %v1955_v40 = vsub.f32 %v4829_v34, %v1918_v54  ;;  %v5246_v22 = vld [vmem:[#allocation58_spill] sm:$0xff]  ;;  %v5247_v36 = vld [vmem:[#allocation59_spill] sm:$0xff]  ;;  %v5248_v52 = vld [vmem:[#allocation60_spill] sm:$0xff] }
 0x580   :  { %v5024_v18 = vpop.eup %3106  ;;  %v2397_v4 = vunpack.c.l.b16 %v2370_v53  ;;  %v2309_v38 = vadd.f32 %v2308_v9, %v2307_v46  ;;  %3114 = vrcp.f32 %v2128_v12  ;;  %v2129_v17 = vsel %vm242_vm0, %v5020_v63, 0.0 }
 0x581   :  { %v5027_v37 = vpop.eup %3108  ;;  %v2130_v19 = vsel %vm242_vm0, %v5024_v18, 0.0  ;;  %v1956_v29 = vsub.f32 %v4821_v0, %v1918_v54  ;;  %v2312_v16 = vsel %vm242_vm0, %v2230_v6, 0.0  ;;  %v1957_v14 = vsub.f32 %v4858_v26, %v1918_v54  ;;  %v5249_v6 = vld [vmem:[#allocation61_spill] sm:$0xff] }
 0x582   :  { %v5035_v27 = vpop.eup %3110  ;;  %v2311_v1 = vadd.f32 %v2310_v51, %v2309_v38  ;;  %v2131_v8 = vadd.f32 %v2130_v19, %v2129_v17  ;;  %v2132_v47 = vsel %vm242_vm0, %v5027_v37, 0.0  ;;  %v1958_v31 = vsub.f32 %v4957_v44, %v1918_v54 }
 0x583   :  { %v2029_v7 = vmul.f32 1.442695, %v1954_v61  ;;  %v2031_v2 = vmul.f32 1.442695, %v1955_v40  ;;  %v5042_v30 = vpop.eup %3112  ;;  %v2314_v0 = vsel %vm242_vm0, %v2231_v50, 0.0  ;;  %v2134_v49 = vsel %vm242_vm0, %v5035_v27, 0.0 }
 0x584   :  { %v2313_v34 = vadd.f32 %v2312_v16, %v2311_v1  ;;  %v2133_v28 = vadd.f32 %v2132_v47, %v2131_v8  ;;  %v2033_v57 = vmul.f32 1.442695, %v1956_v29  ;;  %v2035_v48 = vmul.f32 1.442695, %v1957_v14 }
 0x585   :  { %3116 = vpow2.f32 %v2029_v7  ;;  %v2407_v26 = vsel %vm2406_vm6, %v2397_v4, %v5007_v21  ;;  %v2037_v44 = vmul.f32 1.442695, %v1958_v31  ;;  %v2136_v62 = vsel %vm242_vm0, %v5042_v30, 0.0 }
 0x586   :  { %v2315_v58 = vadd.f32 %v2314_v0, %v2313_v34  ;;  %v2135_v10 = vadd.f32 %v2134_v49, %v2133_v28  ;;  %3118 = vpow2.f32 %v2031_v2 }
 0x587   :  { %3120 = vpow2.f32 %v2033_v57 }
 0x588   :  { %v2316_v55 = vrot.slane %v2315_v58, 4  ;;  %v2137_v5 = vadd.f32 %v2136_v62, %v2135_v10  ;;  %3122 = vpow2.f32 %v2035_v48 }
 0x589   :  { %3124 = vpow2.f32 %v2037_v44 }
 0x58a   :  { %v3115_v60 = vpop.eup %3114  ;;  %v2317_v59 = vadd.f32 %v2316_v55, %v2315_v58  ;;  %v2138_v41 = vrot.slane %v2137_v5, 4 }
 0x58b   :  { %v2192_v35 = vmul.f32 %v3115_v60, %v4970_v33  ;;  %v2193_v42 = vmul.f32 %v3115_v60, %v4976_v23  ;;  %v2194_v21 = vmul.f32 %v3115_v60, %v4979_v43  ;;  %v2195_v20 = vmul.f32 %v3115_v60, %v4987_v11  ;;  %v5250_v33 = vld [vmem:[#allocation62_spill] sm:$0xff] }
 0x58c   :  { %v2318_v45 = vrot.slane %v2317_v59, 2  ;;  %v2196_v54 = vmul.f32 %v3115_v60, %v4992_v25  ;;  %v2139_v39 = vadd.f32 %v2138_v41, %v2137_v5 }
 0x58d   :  { %v2232_v3 = vmul.f32 %v2192_v35, %v5246_v22  ;;  %v2233_v24 = vmul.f32 %v2193_v42, %v5247_v36  ;;  %v2234_v56 = vmul.f32 %v2194_v21, %v5248_v52  ;;  %v2235_v53 = vmul.f32 %v2195_v20, %v5249_v6  ;;  %v5251_v36 = vld [vmem:[#allocation63_spill] sm:$0xff]  ;;  %v5252_v52 = vld [vmem:[#allocation64_spill] sm:$0xff]  ;;  %v5253_v6 = vld [vmem:[#allocation65_spill] sm:$0xff] }
 0x58e   :  { %v2319_v32 = vadd.f32 %v2318_v45, %v2317_v59  ;;  %v2236_v50 = vmul.f32 %v2196_v54, %v5250_v33  ;;  %v2140_v23 = vrot.slane %v2139_v39, 2 }
 0x58f   :  { %v5061_v12 = vpop.eup %3116  ;;  %v2322_v43 = vsel %vm242_vm0, %v2232_v3, 0.0  ;;  %v2323_v11 = vsel %vm242_vm0, %v2233_v24, 0.0  ;;  %v2325_v4 = vsel %vm242_vm0, %v2234_v56, 0.0  ;;  %v2327_v16 = vsel %vm242_vm0, %v2235_v53, 0.0 }
 0x590   :  { %v5065_v25 = vpop.eup %3118  ;;  %v2320_v15 = vrot.slane %v2319_v32, 1  ;;  %v2324_v61 = vadd.f32 %v2323_v11, %v2322_v43  ;;  %v2141_v46 = vadd.f32 %v2140_v23, %v2139_v39  ;;  %v2144_v38 = vsel %vm242_vm0, %v5061_v12, 0.0 }
 0x591   :  { %v5067_v9 = vpop.eup %3120  ;;  %v2145_v51 = vsel %vm242_vm0, %v5065_v25, 0.0  ;;  %v2329_v34 = vsel %vm242_vm0, %v2236_v50, 0.0  ;;  %v5255_v50 = vld [vmem:[#allocation67_spill] sm:$0xff] }
 0x592   :  { %v5074_v17 = vpop.eup %3122  ;;  %v2321_v19 = vadd.f32 %v2320_v15, %v2319_v32  ;;  %v2326_v40 = vadd.f32 %v2325_v4, %v2324_v61  ;;  %v2142_v29 = vrot.slane %v2141_v46, 1  ;;  %v2146_v1 = vadd.f32 %v2145_v51, %v2144_v38  ;;  %v5254_v32 = vld [vmem:[#allocation66_spill] sm:$0xff] }
 0x593   :  { %v2147_v8 = vsel %vm242_vm0, %v5067_v9, 0.0  ;;  %v3125_v14 = vpop.eup %3124  ;;  %v2149_v0 = vsel %vm242_vm0, %v5074_v17, 0.0 }
 0x594   :  { %v2371_v47 = vpack.c.bf16 %v2321_v19, %v2321_v19  ;;  %v2328_v31 = vadd.f32 %v2327_v16, %v2326_v40  ;;  %v2143_v7 = vadd.f32 %v2142_v29, %v2141_v46  ;;  %v2148_v2 = vadd.f32 %v2147_v8, %v2146_v1 }
 0x595   :  { %v2151_v48 = vsel %vm242_vm0, %v3125_v14, 0.0 }
 0x596   :  { %v2398_v28 = vunpack.c.l.b16 %v2371_v47  ;;  %v2330_v57 = vadd.f32 %v2329_v34, %v2328_v31  ;;  %3126 = vrcp.f32 %v2143_v7  ;;  %v2150_v49 = vadd.f32 %v2149_v0, %v2148_v2  ;;  %v5256_v2 = vld [vmem:[#allocation68_spill] sm:$0xff]  ;;  %v5257_v0 = vld [vmem:[#allocation69_spill] sm:$0xff] }
 0x598   :  { %v2331_v58 = vrot.slane %v2330_v57, 4  ;;  %v2152_v10 = vadd.f32 %v2151_v48, %v2150_v49  ;;  %v2409_v44 = vsel %vm2408_vm7, %v2398_v28, %v2407_v26  ;;  %v5259_v48 = vld [vmem:[#allocation71_spill] sm:$0xff] }
 0x59a   :  { %v2332_v62 = vadd.f32 %v2331_v58, %v2330_v57  ;;  %v2153_v55 = vrot.slane %v2152_v10, 4  ;;  %v5258_v57 = vld [vmem:[#allocation70_spill] sm:$0xff] }
 0x59c   :  { %v2333_v5 = vrot.slane %v2332_v62, 2  ;;  %v2154_v60 = vadd.f32 %v2153_v55, %v2152_v10 }
 0x59e   :  { %v2334_v59 = vadd.f32 %v2333_v5, %v2332_v62  ;;  %v2155_v41 = vrot.slane %v2154_v60, 2 }
 0x5a0   :  { %v3127_v35 = vpop.eup %3126  ;;  %v2335_v42 = vrot.slane %v2334_v59, 1  ;;  %v2156_v21 = vadd.f32 %v2155_v41, %v2154_v60 }
 0x5a1   :  { %v2197_v20 = vmul.f32 %v3127_v35, %v5020_v63  ;;  %v2198_v45 = vmul.f32 %v3127_v35, %v5024_v18  ;;  %v2199_v54 = vmul.f32 %v3127_v35, %v5027_v37  ;;  %v2200_v39 = vmul.f32 %v3127_v35, %v5035_v27 }
 0x5a2   :  { %v2336_v22 = vadd.f32 %v2335_v42, %v2334_v59  ;;  %v2201_v26 = vmul.f32 %v3127_v35, %v5042_v30  ;;  %v2157_v3 = vrot.slane %v2156_v21, 1 }
 0x5a3   :  { %v2237_v24 = vmul.f32 %v2197_v20, %v5251_v36  ;;  %v2238_v56 = vmul.f32 %v2198_v45, %v5252_v52  ;;  %v2239_v53 = vmul.f32 %v2199_v54, %v5253_v6  ;;  %v2240_v33 = vmul.f32 %v2200_v39, %v5254_v32  ;;  %v2775_v6 = vld [vmem:[#allocation17] ss:$0 sm:$0xff] }
 0x5a4   :  { %v2241_v63 = vmul.f32 %v2201_v26, %v5255_v50  ;;  %v2158_v23 = vadd.f32 %v2157_v3, %v2156_v21  ;;  %v2372_v18 = vpack.c.bf16 %v2336_v22, %v2336_v22 }
 0x5a5   :  { %v2337_v37 = vsel %vm242_vm0, %v2237_v24, 0.0  ;;  %v2338_v27 = vsel %vm242_vm0, %v2238_v56, 0.0  ;;  %v2340_v11 = vsel %vm242_vm0, %v2239_v53, 0.0  ;;  %v2342_v46 = vsel %vm242_vm0, %v2240_v33, 0.0 }
 0x5a6   :  { %v2339_v43 = vadd.f32 %v2338_v27, %v2337_v37  ;;  %3128 = vrcp.f32 %v2158_v23  ;;  %v2399_v30 = vunpack.c.l.b16 %v2372_v18  ;;  %v2344_v38 = vsel %vm242_vm0, %v2241_v63, 0.0  ;;  %v3134_v63 = vld [vmem:[#allocation2] sm:$0xff] }
 0x5a8   :  { %v2341_v15 = vadd.f32 %v2340_v11, %v2339_v43  ;;  %v2411_v61 = vsel %vm2410_vm8, %v2399_v30, %v2409_v44  ;;  %v5260_v44 = vld [vmem:[#allocation72_spill] sm:$0xff] }
 0x5aa   :  { %v2343_v4 = vadd.f32 %v2342_v46, %v2341_v15  ;;  %v3027_v46 = vld [vmem:[#allocation19 + $0x8] sm:$0xff]  }
 0x5ac   :  { %v2345_v51 = vadd.f32 %v2344_v38, %v2343_v4 }
 0x5ae   :  { %v2346_v19 = vrot.slane %v2345_v51, 4 }
 0x5b0   :  { %v3129_v40 = vpop.eup %3128  ;;  %v2347_v29 = vadd.f32 %v2346_v19, %v2345_v51 }
 0x5b1   :  { %v2202_v1 = vmul.f32 %v3129_v40, %v5061_v12  ;;  %v2203_v16 = vmul.f32 %v3129_v40, %v5065_v25  ;;  %v2204_v8 = vmul.f32 %v3129_v40, %v5067_v9  ;;  %v2205_v47 = vmul.f32 %v3129_v40, %v5074_v17 }
 0x5b2   :  { %v2348_v31 = vrot.slane %v2347_v29, 2  ;;  %v2206_v7 = vmul.f32 %v3129_v40, %v3125_v14  ;;  %v2779_v40 = vld [vmem:[#allocation8 + $0x2] ss:$0 sm:$0xff] }
 0x5b3   :  { %v2242_v34 = vmul.f32 %v2202_v1, %v5256_v2  ;;  %v2243_v28 = vmul.f32 %v2203_v16, %v5257_v0  ;;  %v2244_v49 = vmul.f32 %v2204_v8, %v5258_v57  ;;  %v2245_v58 = vmul.f32 %v2205_v47, %v5259_v48  ;;  %v2780_v1 = vld [vmem:[#allocation8 + $0x3] ss:$0 sm:$0xff]  ;;  %v2781_v0 = vld [vmem:[#allocation20] ss:$0 sm:$0xff] }
 0x5b4   :  { %v2349_v10 = vadd.f32 %v2348_v31, %v2347_v29  ;;  %v2246_v62 = vmul.f32 %v2206_v7, %v5260_v44  ;;  %v3028_v31 = vld [vmem:[#allocation22] sm:$0xff]   ;;  %v3029_v7 = vld [vmem:[#allocation22 + $0x8] sm:$0xff]   ;;  %v3030_v2 = vld [vmem:[#allocation22 + $0x10] sm:$0xff]  }
 0x5b5   :  { %v2352_v12 = vsel %vm242_vm0, %v2242_v34, 0.0  ;;  %v2353_v25 = vsel %vm242_vm0, %v2243_v28, 0.0  ;;  %v2355_v17 = vsel %vm242_vm0, %v2244_v49, 0.0  ;;  %v2357_v60 = vsel %vm242_vm0, %v2245_v58, 0.0  ;;  %v3031_v34 = vld [vmem:[#allocation22 + $0x18] sm:$0xff]  }
 0x5b6   :  { %v2350_v9 = vrot.slane %v2349_v10, 1  ;;  %v2354_v55 = vadd.f32 %v2353_v25, %v2352_v12  ;;  %v2359_v35 = vsel %vm242_vm0, %v2246_v62, 0.0 }
 0x5b8   :  { %v2356_v14 = vadd.f32 %v2355_v17, %v2354_v55  ;;  %v2351_v5 = vadd.f32 %v2350_v9, %v2349_v10 }
 0x5ba   :  { %v2358_v59 = vadd.f32 %v2357_v60, %v2356_v14  ;;  %v2373_v41 = vpack.c.bf16 %v2351_v5, %v2351_v5  ;;  %v2790_v60 = vld [vmem:[#allocation23] ss:$0 sm:$0xff] }
 0x5bc   :  { %v2360_v42 = vadd.f32 %v2359_v35, %v2358_v59  ;;  %v2400_v21 = vunpack.c.l.b16 %v2373_v41 }
 0x5be   :  { %v2361_v20 = vrot.slane %v2360_v42, 4  ;;  %v2413_v45 = vsel %vm2412_vm9, %v2400_v21, %v2411_v61  ;;  %v3026_v61 = vld [vmem:[#allocation19] sm:$0xff]  }
 0x5c0   :  { %v2362_v54 = vadd.f32 %v2361_v20, %v2360_v42 }
 0x5c2   :  { %v2363_v39 = vrot.slane %v2362_v54, 2 }
 0x5c4   :  { %v2364_v22 = vadd.f32 %v2363_v39, %v2362_v54 }
 0x5c6   :  { %v2365_v26 = vrot.slane %v2364_v22, 1 }
 0x5c8   :  { %v2366_v3 = vadd.f32 %v2365_v26, %v2364_v22 }
 0x5ca   :  { %v2374_v36 = vpack.c.bf16 %v2366_v3, %v2366_v3 }
 0x5cc   :  { %v2401_v24 = vunpack.c.l.b16 %v2374_v36 }
 0x5ce   :  { %v2415_v52 = vsel %vm2414_vm10, %v2401_v24, %v2413_v45 }
 0x5cf   :  { %v2416_v56 = vpack.c.b16 %v2415_v52, %v2415_v52 }
 0x5d1   :  { %2930 = vmatmul.mubr.msk.bf16.vlgmr.msra.gmra.mrb[52].mxu0 %vm242_vm0, %v2416_v56 }
 0x5d2   :  { %2937 = vmatprep.mubr.msk.bf16.mxu0 %vm3526_vm2, %v5209_v13  ;;  %2934 = vmatpush3.bf16.msra.mxu0 %v3026_v61 }
 0x5d3   :  { %2935 = vmatprep.subr.bf16.mxu0 %v5209_v13 }
 0x5d6   :  { %2936 = vmatpush3.bf16.msra.mxu0 %v3027_v46 }
 0x5d7   :  { %2941 = vmatprep.subr.bf16.mxu0 %v5209_v13 }
 0x6a4   :  { %v2466_v53 = vpop.f32.mrb[52].mxu0 }
 0x6a5   :  { %v2467_v32 = vadd.f32 %v2775_v6, %v2466_v53  ;;  %v2931_v33 = vpop.f32.mrb[53].mxu0 }
 0x6a6   :  { %v2469_v50 = vpop.f32.mrb[54].mxu0 }
 0x6a7   :  { %v5115_v23 = vadd.f32 %v3134_v63, %v2467_v32  ;;  %v2932_v18 = vpop.f32.mrb[55].mxu0 }
 0x6a9   :  { %v2475_v37 = vsel %vm242_vm0, %v5115_v23, 0.0 }
 0x6aa   :  { %2476 = vadd.xlane.f32.xlu0 %v2475_v37 }
 0x737   :  { %v2477_v27 = vpop.xlane.xlu0 %2476 }
 0x738   :  { %v2478_v43 = vmul.f32 0.03125, %v2477_v27 }
 0x73a   :  { %v2479_v30 = vsub.f32 %v5115_v23, %v2478_v43 }
 0x73c   :  { %v2480_v11 = vmul.f32 %v2479_v30, %v2479_v30 }
 0x73e   :  { %v2481_v15 = vsel %vm242_vm0, %v2480_v11, 0.0 }
 0x73f   :  { %2482 = vadd.xlane.f32.xlu1 %v2481_v15 }
 0x7cc   :  { %v2483_v4 = vpop.xlane.xlu1 %2482 }
 0x7cd   :  { %v2484_v38 = vmul.f32 0.03125, %v2483_v4 }
 0x7cf   :  { %v2485_v51 = vadd.f32 1e-05, %v2484_v38 }
 0x7d1   :  { %3130 = vrsqrt.f32 %v2485_v51 }
 0x7db   :  { %v3131_v19 = vpop.eup %3130 }
 0x7dc   :  { %v2487_v29 = vmul.f32 %v3131_v19, %v2479_v30 }
 0x7de   :  { %v2492_v16 = vmul.f32 %v2779_v40, %v2487_v29 }
 0x7e0   :  { %v2497_v8 = vadd.f32 %v2780_v1, %v2492_v16 }
 0x7e2   :  { %v2498_v47 = vpack.c.bf16 %v2497_v8, %v2497_v8 }
 0x7e4   :  { %2938 = vmatmul.mubr.msk.bf16.vlgmr.msra.gmra.mrb[56].mxu0 %vm242_vm0, %v2498_v47 }
 0x7e5   :  { %2949 = vmatprep.mubr.msk.bf16.mxu0 %vm3526_vm2, %v5209_v13  ;;  %2942 = vmatpush3.bf16.msra.mxu0 %v3028_v31 }
 0x7e6   :  { %2943 = vmatprep.subr.bf16.mxu0 %v5209_v13 }
 0x7e9   :  { %2944 = vmatpush3.bf16.msra.mxu0 %v3029_v7 }
 0x7ea   :  { %2945 = vmatprep.subr.bf16.mxu0 %v5209_v13 }
 0x7ed   :  { %2946 = vmatpush3.bf16.msra.mxu0 %v3030_v2 }
 0x7ee   :  { %2947 = vmatprep.subr.bf16.mxu0 %v5209_v13 }
 0x7f1   :  { %2948 = vmatpush3.bf16.msra.mxu0 %v3031_v34 }
 0x8b7   :  { %v2559_v28 = vpop.f32.mrb[56].mxu0 }
 0x8b8   :  { %v2560_v57 = vadd.f32 %v2781_v0, %v2559_v28  ;;  %v2939_v49 = vpop.f32.mrb[57].mxu0 }
 0x8b9   :  { %v2562_v48 = vpop.f32.mrb[58].mxu0 }
 0x8ba   :  { %v2566_v58 = vmul.f32 0.044715, %v2560_v57  ;;  %v2940_v10 = vpop.f32.mrb[59].mxu0  ;;  %v2565_v55 = vmul.f32 0.5, %v2560_v57 }
 0x8bc   :  { %v2567_v44 = vmul.f32 %v2566_v58, %v2560_v57 }
 0x8be   :  { %v2568_v62 = vmul.f32 %v2567_v44, %v2560_v57 }
 0x8c0   :  { %v2569_v12 = vadd.f32 %v2568_v62, %v2560_v57 }
 0x8c2   :  { %v2570_v25 = vmul.f32 0.7978846, %v2569_v12 }
 0x8c4   :  { %3132 = vtanh.f32 %v2570_v25 }
 0x8ce   :  { %v3133_v9 = vpop.eup %3132 }
 0x8cf   :  { %v2572_v17 = vadd.f32 1.0, %v3133_v9 }
 0x8d1   :  { %v2573_v14 = vmul.f32 %v2572_v17, %v2565_v55 }
 0x8d3   :  { %v2574_v5 = vpack.c.bf16 %v2573_v14, %v2573_v14 }
 0x8d5   :  { %2950 = vmatmul.mubr.msk.bf16.vlgmr.msra.gmra.mrb[60].mxu0 %vm2607_vm11, %v2574_v5 }
 0x9a8   :  { %v2645_v13 = vpop.f32.mrb[60].mxu0 }
 0x9a9   :  { %v2651_v59 = vadd.f32 %v2645_v13, %v5115_v23  ;;  %v2951_v41 = vpop.f32.mrb[61].mxu0 }
 0x9aa   :  { %v2648_v35 = vpop.f32.mrb[62].mxu0 }
 0x9ab   :  { %v2659_v42 = vadd.f32 %v2790_v60, %v2651_v59  ;;  %v2952_v21 = vpop.f32.mrb[63].mxu0 }
 0x9ad   :  { %2660 = vst.msk [vmem:[#allocation26] sm:$0xff] %vm242_vm0, %v2659_v42 }
 0x9ae   :  { %3476 = shalt.err (!%p3473_p12)
}
 0x9af   :  { %s5261_s9 = sld [smem:[#allocation80_spill]] }
 0x9b5   :  { %s3477_s30 = scalar_lea.hbm %s5261_s9, 128 }
 0x9b6   :  { %p3478_p13 = scmp.ne.s32.totalorder %s5261_s9, %s3477_s30  ;;  %p3481_p0 = scmp.lt.u32.totalorder %s3477_s30, %s5261_s9 }
 0x9b8   :  { %p3483_p1 = pnand %p3481_p0, %p3478_p13 }
 0x9ba   :  { %3486 = shalt.err (!%p3483_p1)
}
 0x9bb   :  { %2670 = dma.vmem_to_hbm [thread:$0]  %s2668_s4, 128, %s5261_s9, [#allocation4]  }
 0x9bc   :  { %3503 = dma.done.wait [#allocation4], 128  }
 0x9bd   :  { %3504 = vsyncadd [#allocation4], 4294967168 }
 0x9be   :  { %2674 = vsyncpa [#allocation3], 1 }
 0x9bf   :  { %2675 = vsyncpa [#allocation6], 1 }
 0x9c0   :  { %2676 = vsyncpa [#allocation9], 1 }
 0x9c1   :  { %2677 = vsyncpa [#allocation12], 1 }
 0x9c2   :  { %2678 = vsyncpa [#allocation15], 1 }
 0x9c3   :  { %2679 = vsyncpa [#allocation18], 1 }
 0x9c4   :  { %2680 = vsyncpa [#allocation21], 1 }
 0x9c5   :  { %2681 = vsyncpa [#allocation24], 1 }
 0x9c6   :  { %2682 = vsyncpa [#allocation4], 1 }

</bundles_post_ra>
